<compile_context>
chip_gen: v7x
topology: tpu7x:2x2x1
jax: 0.10.0
libtpu: 0.0.40
codegen_flags: <defaults>
</compile_context>

<pallas_src>
import functools
import math

import numpy as np
import jax
import jax.numpy as jnp
from jax import lax
from jax.experimental import pallas as pl
from jax.experimental.pallas import tpu as pltpu

LEAKY_SLOPE = 0.2


def _leaky(x):
    return jnp.where(x > 0, x, jnp.float32(LEAKY_SLOPE) * x)


# --------------------------------------------------------------------------
# Fused decoder kernel: one batch-tile per grid step, all layers in-register.
# --------------------------------------------------------------------------
def _decoder_kernel(*args, uprate, mm_dtype):
    code_ref = args[0]
    n_w = 3 * uprate + 2
    wrefs = args[1:1 + n_w]
    out_ref = args[1 + n_w]

    # (B_TILE, F) activation slab; spatial*channels flattened on lanes.
    h = code_ref[...].astype(jnp.float32)
    wi = 0
    for _ in range(uprate):
        c1_ref, c2_ref, uc_ref = wrefs[wi:wi + 3]
        wi += 3

        # ---- ResBlockv2: h + conv2(LeakyReLU(conv1(h))) --------------------
        r = jnp.dot(h.astype(mm_dtype), c1_ref[...],
                    preferred_element_type=jnp.float32)
        r = _leaky(r)
        r = jnp.dot(r.astype(mm_dtype), c2_ref[...],
                    preferred_element_type=jnp.float32)
        h = h + r

        # ---- upBlock: (bilinear x2 . conv3x3) fused matrix -> LeakyReLU ----
        h = jnp.dot(h.astype(mm_dtype), uc_ref[...],
                    preferred_element_type=jnp.float32)
        h = _leaky(h)

    # ---- to_img: 1x1 conv (+bias) -> tanh ----------------------------------
    t_ref = wrefs[wi]
    b_ref = wrefs[wi + 1]                      # (1,) bias in SMEM
    v = jnp.dot(h.astype(mm_dtype), t_ref[...],
                preferred_element_type=jnp.float32) + b_ref[0]
    out_ref[...] = jnp.tanh(v)


# --------------------------------------------------------------------------
# Host-side (numpy) construction of the whole-image layer matrices.
# Activation layout per sample: row-major flatten of (y, x, channel).
# --------------------------------------------------------------------------
def _bilinear_matrix(n):
    """2x bilinear upsample matrix, PyTorch nn.Upsample(align_corners=False)."""
    out = 2 * n
    dst = np.arange(out, dtype=np.float64)
    src = np.clip((dst + 0.5) / 2.0 - 0.5, 0.0, float(n - 1))
    lo = np.floor(src).astype(np.int64)
    hi = np.minimum(lo + 1, n - 1)
    w_hi = src - lo
    w_lo = 1.0 - w_hi
    m = np.zeros((out, n), np.float64)
    idx = np.arange(out)
    np.add.at(m, (idx, lo), w_lo)
    np.add.at(m, (idx, hi), w_hi)
    return m.astype(np.float32)


def _conv3x3_matrix(w_oihw, h, w):
    """3x3 'same' conv (pad=1, no bias) as one (h*w*Cin, h*w*Cout) matrix."""
    wnp = np.asarray(w_oihw, dtype=np.float32)          # (Cout, Cin, 3, 3)
    m = None
    for ky in range(3):
        sh = np.eye(h, h, k=1 - ky, dtype=np.float32)    # in_row -> out_row shift
        for kx in range(3):
            sw = np.eye(w, w, k=1 - kx, dtype=np.float32)
            blk = np.kron(sh, np.kron(sw, wnp[:, :, ky, kx].T))
            m = blk if m is None else m + blk
    return m


def _upconv_matrix(w_oihw, s):
    """Bilinear x2 (s->2s) followed by conv3x3, fused: (s*s*Cin, 4*s*s*Cout)."""
    c = int(np.asarray(w_oihw).shape[1])
    mb = _bilinear_matrix(s)                                           # (2s, s)
    up = np.kron(mb.T, np.kron(mb.T, np.eye(c, dtype=np.float32)))     # (s²c, 4s²c)
    conv = _conv3x3_matrix(w_oihw, 2 * s, 2 * s)                       # (4s²c, 4s²c/2)
    return up @ conv


def _toimg_matrix(w, s):
    """1x1 conv (c_last -> 1): (s*s*c_last, s*s)."""
    wv = np.asarray(w, dtype=np.float32).reshape(-1)
    return np.kron(np.eye(s * s, dtype=np.float32), wv[:, None])


def prepare_decoder(params, *, feature_base_dim, uprate,
                    matmul_dtype=jnp.bfloat16):
    """Precompute (once) the per-layer matrices consumed by the kernel."""
    F = feature_base_dim
    mats = []
    for i in range(uprate):
        s = 2 ** i
        st = params['stages'][i]
        mats.append(_conv3x3_matrix(np.asarray(st['res_w1']), s, s))
        mats.append(_conv3x3_matrix(np.asarray(st['res_w2']), s, s))
        mats.append(_upconv_matrix(np.asarray(st['up_w']), s))
    S = 2 ** uprate
    mats.append(_toimg_matrix(np.asarray(params['to_img_w']), S))
    weights = [jnp.asarray(m, dtype=matmul_dtype) for m in mats]
    weights.append(jnp.asarray(params['to_img_b'], dtype=jnp.float32).reshape(1))
    return weights


# --------------------------------------------------------------------------
# Public forward
# --------------------------------------------------------------------------
def decoder_forward(weights, x, *, feature_base_dim, uprate, block_b=None):
    """x: (B, feature_base_dim)  (Decoder.forward views input as (-1, F, 1, 1))."""
    F = feature_base_dim
    S = 2 ** uprate
    code = x.reshape(-1, F).astype(jnp.float32)
    B = code.shape[0]

    if block_b is None:
        # Large M per matmul, but keep >= 2 grid steps when possible so both
        # v7x TensorCores get work; round to a sublane multiple.
        block_b = min(256, max(8, pl.cdiv(B, 2)))
        block_b = ((block_b + 7) // 8) * 8
    n_steps = pl.cdiv(B, block_b)
    b_pad = n_steps * block_b
    if b_pad != B:
        code = jnp.pad(code, ((0, b_pad - B), (0, 0)))

    mm_dtype = weights[0].dtype

    in_specs = [pl.BlockSpec((block_b, F), lambda b: (b, 0))]
    for wm in weights[:-1]:
        # Grid-invariant weight matrices: full-array blocks, fetched once.
        in_specs.append(pl.BlockSpec(wm.shape, lambda b: (0, 0)))
    in_specs.append(pl.BlockSpec(memory_space=pltpu.MemorySpace.SMEM))  # bias

    kernel = functools.partial(_decoder_kernel, uprate=uprate, mm_dtype=mm_dtype)
    out = pl.pallas_call(
        kernel,
        out_shape=jax.ShapeDtypeStruct((b_pad, S * S), jnp.float32),
        grid=(n_steps,),
        in_specs=in_specs,
        out_specs=pl.BlockSpec((block_b, S * S), lambda b: (b, 0)),
        compiler_params=pltpu.CompilerParams(
            dimension_semantics=("parallel",)),
    )(code, *weights)
    return out[:B].reshape(B, 1, S, S)


# --------------------------------------------------------------------------
# Parameter init (PyTorch layouts: conv (O, I, 3, 3), no bias except to_img)
# --------------------------------------------------------------------------
def init_params(key, feature_base_dim, uprate):
    F = feature_base_dim
    keys = iter(jax.random.split(key, 3 * uprate + 2))

    def conv_w(cout, cin):
        scale = 1.0 / math.sqrt(9 * cin)
        return scale * jax.random.normal(next(keys), (cout, cin, 3, 3), jnp.float32)

    stages = []
    for i in range(uprate):
        c = F // (2 ** i)
        stages.append(dict(res_w1=conv_w(c, c),
                           res_w2=conv_w(c, c),
                           up_w=conv_w(c // 2, c)))
    c_last = F // (2 ** uprate)
    to_img_w = (1.0 / math.sqrt(c_last)) * jax.random.normal(
        next(keys), (1, c_last, 1, 1), jnp.float32)
    to_img_b = 0.1 * jax.random.normal(next(keys), (1,), jnp.float32)
    return dict(stages=stages, to_img_w=to_img_w, to_img_b=to_img_b)


# --------------------------------------------------------------------------
# Pure-JAX f32 reference (same math via lax.conv) for correctness check
# --------------------------------------------------------------------------
def decoder_reference(params, x, *, feature_base_dim, uprate):
    F = feature_base_dim
    B = x.reshape(-1, F).shape[0]
    h = x.reshape(B, 1, 1, F).astype(jnp.float32)         # NHWC, 1x1 spatial

    def conv_ref(t, w_oihw):
        w = jnp.transpose(w_oihw, (2, 3, 1, 0))           # HWIO
        return lax.conv_general_dilated(
            t, w, window_strides=(1, 1), padding='SAME',
            dimension_numbers=('NHWC', 'HWIO', 'NHWC'))

    for i in range(uprate):
        st = params['stages'][i]
        r = _leaky(conv_ref(h, st['res_w1']))
        r = conv_ref(r, st['res_w2'])
        h = h + r
        n = h.shape[1]
        m = jnp.asarray(_bilinear_matrix(n))
        h = jnp.einsum('ph,bhwc->bpwc', m, h)
        h = jnp.einsum('qw,bpwc->bpqc', m, h)
        h = _leaky(conv_ref(h, st['up_w']))

    w_img = params['to_img_w'].reshape(-1)
    v = jnp.einsum('bhwc,c->bhw', h, w_img) + params['to_img_b'][0]
    return jnp.tanh(v)[:, None, :, :]


# --------------------------------------------------------------------------
if __name__ == "__main__":
    B = 256                               # batched into the matmul M dimension
    FEATURE_BASE_DIM = 64
    UPRATE = 3                            # output spatial = 2**UPRATE = 8

    key = jax.random.PRNGKey(0)
    kp, kx = jax.random.split(key)
    params = init_params(kp, FEATURE_BASE_DIM, UPRATE)
    x = jax.random.normal(kx, (B, FEATURE_BASE_DIM), dtype=jnp.float32)

    ref = decoder_reference(params, x, feature_base_dim=FEATURE_BASE_DIM,
                            uprate=UPRATE)

    fwd = jax.jit(functools.partial(decoder_forward,
                                    feature_base_dim=FEATURE_BASE_DIM,
                                    uprate=UPRATE))

    # 1) f32 matmul operands: validates the whole-image-matrix formulation tightly.
    w_f32 = prepare_decoder(params, feature_base_dim=FEATURE_BASE_DIM,
                            uprate=UPRATE, matmul_dtype=jnp.float32)
    out_f32 = jax.block_until_ready(fwd(w_f32, x))
    assert out_f32.shape == (B, 1, 2 ** UPRATE, 2 ** UPRATE), out_f32.shape
    err_f32 = float(jnp.max(jnp.abs(out_f32 - ref)))
    assert err_f32 < 5e-3, f"f32 kernel max abs err vs reference: {err_f32}"

    # 2) bf16 matmul operands (f32 accumulation): the fast MXU path.
    #    bf16 operand rounding gives ~1e-2 abs error through 10 stacked layers.
    w_bf16 = prepare_decoder(params, feature_base_dim=FEATURE_BASE_DIM,
                             uprate=UPRATE, matmul_dtype=jnp.bfloat16)
    out_bf16 = jax.block_until_ready(fwd(w_bf16, x))
    assert out_bf16.shape == (B, 1, 2 ** UPRATE, 2 ** UPRATE), out_bf16.shape
    err_bf16 = float(jnp.max(jnp.abs(out_bf16 - ref)))
    assert err_bf16 < 6e-2, f"bf16 kernel max abs err vs reference: {err_bf16}"

    print("KERNEL_OK")
</pallas_src>

<mosaic_0001>
module attributes {stable_mosaic.version = 11 : i64} {
  func.func @_decoder_kernel(%arg0: i32, %arg1: memref<128x64xf32, #tpu.memory_space<vmem>>, %arg2: memref<64x64xf32, #tpu.memory_space<vmem>>, %arg3: memref<64x64xf32, #tpu.memory_space<vmem>>, %arg4: memref<64x128xf32, #tpu.memory_space<vmem>>, %arg5: memref<128x128xf32, #tpu.memory_space<vmem>>, %arg6: memref<128x128xf32, #tpu.memory_space<vmem>>, %arg7: memref<128x256xf32, #tpu.memory_space<vmem>>, %arg8: memref<256x256xf32, #tpu.memory_space<vmem>>, %arg9: memref<256x256xf32, #tpu.memory_space<vmem>>, %arg10: memref<256x512xf32, #tpu.memory_space<vmem>>, %arg11: memref<512x64xf32, #tpu.memory_space<vmem>>, %arg12: memref<1xf32, #tpu.memory_space<smem>>, %arg13: memref<128x64xf32, #tpu.memory_space<vmem>>) attributes {dimension_semantics = [#tpu.dimension_semantics<parallel>], iteration_bounds = array<i64: 2>, scalar_prefetch = 0 : i64, scratch_operands = 0 : i64, tpu.core_type = #tpu.core_type<tc>, window_params = [{transform_indices = @transform_0, window_bounds = array<i64: 128, 64>}, {pipeline_mode = #tpu.pipeline_mode<synchronous>, transform_indices = @transform_1, window_bounds = array<i64: 64, 64>}, {pipeline_mode = #tpu.pipeline_mode<synchronous>, transform_indices = @transform_2, window_bounds = array<i64: 64, 64>}, {pipeline_mode = #tpu.pipeline_mode<synchronous>, transform_indices = @transform_3, window_bounds = array<i64: 64, 128>}, {pipeline_mode = #tpu.pipeline_mode<synchronous>, transform_indices = @transform_4, window_bounds = array<i64: 128, 128>}, {pipeline_mode = #tpu.pipeline_mode<synchronous>, transform_indices = @transform_5, window_bounds = array<i64: 128, 128>}, {pipeline_mode = #tpu.pipeline_mode<synchronous>, transform_indices = @transform_6, window_bounds = array<i64: 128, 256>}, {pipeline_mode = #tpu.pipeline_mode<synchronous>, transform_indices = @transform_7, window_bounds = array<i64: 256, 256>}, {pipeline_mode = #tpu.pipeline_mode<synchronous>, transform_indices = @transform_8, window_bounds = array<i64: 256, 256>}, {pipeline_mode = #tpu.pipeline_mode<synchronous>, transform_indices = @transform_9, window_bounds = array<i64: 256, 512>}, {pipeline_mode = #tpu.pipeline_mode<synchronous>, transform_indices = @transform_10, window_bounds = array<i64: 512, 64>}, {transform_indices = @transform_11, window_bounds = array<i64: 1>}, {transform_indices = @transform_12, window_bounds = array<i64: 128, 64>}]} {
    %c0 = arith.constant 0 : index
    %c0_0 = arith.constant 0 : index
    %0 = vector.load %arg1[%c0, %c0_0] : memref<128x64xf32, #tpu.memory_space<vmem>>, vector<128x64xf32>
    %c0_1 = arith.constant 0 : index
    %c0_2 = arith.constant 0 : index
    %1 = vector.load %arg2[%c0_1, %c0_2] : memref<64x64xf32, #tpu.memory_space<vmem>>, vector<64x64xf32>
    %cst = arith.constant dense<0.000000e+00> : vector<128x64xf32>
    %2 = tpu.matmul %0, %1, %cst {dimension_numbers = #tpu.dot_dimension_numbers<[1], [0], [0], [1], [0, 0, 1, 1], [], []>} : vector<128x64xf32>, vector<64x64xf32>, vector<128x64xf32> -> vector<128x64xf32>
    %cst_3 = arith.constant 0.000000e+00 : f32
    %3 = vector.broadcast %cst_3 : f32 to vector<128x64xf32>
    %4 = arith.cmpf ogt, %2, %3 : vector<128x64xf32>
    %cst_4 = arith.constant 2.000000e-01 : f32
    %5 = vector.broadcast %cst_4 : f32 to vector<128x64xf32>
    %6 = arith.mulf %5, %2 : vector<128x64xf32>
    %7 = arith.select %4, %2, %6 : vector<128x64xi1>, vector<128x64xf32>
    %c0_5 = arith.constant 0 : index
    %c0_6 = arith.constant 0 : index
    %8 = vector.load %arg3[%c0_5, %c0_6] : memref<64x64xf32, #tpu.memory_space<vmem>>, vector<64x64xf32>
    %cst_7 = arith.constant dense<0.000000e+00> : vector<128x64xf32>
    %9 = tpu.matmul %7, %8, %cst_7 {dimension_numbers = #tpu.dot_dimension_numbers<[1], [0], [0], [1], [0, 0, 1, 1], [], []>} : vector<128x64xf32>, vector<64x64xf32>, vector<128x64xf32> -> vector<128x64xf32>
    %10 = arith.addf %0, %9 : vector<128x64xf32>
    %c0_8 = arith.constant 0 : index
    %c0_9 = arith.constant 0 : index
    %11 = vector.load %arg4[%c0_8, %c0_9] : memref<64x128xf32, #tpu.memory_space<vmem>>, vector<64x128xf32>
    %cst_10 = arith.constant dense<0.000000e+00> : vector<128x128xf32>
    %12 = tpu.matmul %10, %11, %cst_10 {dimension_numbers = #tpu.dot_dimension_numbers<[1], [0], [0], [1], [0, 0, 1, 1], [], []>} : vector<128x64xf32>, vector<64x128xf32>, vector<128x128xf32> -> vector<128x128xf32>
    %cst_11 = arith.constant 0.000000e+00 : f32
    %13 = vector.broadcast %cst_11 : f32 to vector<128x128xf32>
    %14 = arith.cmpf ogt, %12, %13 : vector<128x128xf32>
    %cst_12 = arith.constant 2.000000e-01 : f32
    %15 = vector.broadcast %cst_12 : f32 to vector<128x128xf32>
    %16 = arith.mulf %15, %12 : vector<128x128xf32>
    %17 = arith.select %14, %12, %16 : vector<128x128xi1>, vector<128x128xf32>
    %c0_13 = arith.constant 0 : index
    %c0_14 = arith.constant 0 : index
    %18 = vector.load %arg5[%c0_13, %c0_14] : memref<128x128xf32, #tpu.memory_space<vmem>>, vector<128x128xf32>
    %cst_15 = arith.constant dense<0.000000e+00> : vector<128x128xf32>
    %19 = tpu.matmul %17, %18, %cst_15 {dimension_numbers = #tpu.dot_dimension_numbers<[1], [0], [0], [1], [0, 0, 1, 1], [], []>} : vector<128x128xf32>, vector<128x128xf32>, vector<128x128xf32> -> vector<128x128xf32>
    %cst_16 = arith.constant 0.000000e+00 : f32
    %20 = vector.broadcast %cst_16 : f32 to vector<128x128xf32>
    %21 = arith.cmpf ogt, %19, %20 : vector<128x128xf32>
    %cst_17 = arith.constant 2.000000e-01 : f32
    %22 = vector.broadcast %cst_17 : f32 to vector<128x128xf32>
    %23 = arith.mulf %22, %19 : vector<128x128xf32>
    %24 = arith.select %21, %19, %23 : vector<128x128xi1>, vector<128x128xf32>
    %c0_18 = arith.constant 0 : index
    %c0_19 = arith.constant 0 : index
    %25 = vector.load %arg6[%c0_18, %c0_19] : memref<128x128xf32, #tpu.memory_space<vmem>>, vector<128x128xf32>
    %cst_20 = arith.constant dense<0.000000e+00> : vector<128x128xf32>
    %26 = tpu.matmul %24, %25, %cst_20 {dimension_numbers = #tpu.dot_dimension_numbers<[1], [0], [0], [1], [0, 0, 1, 1], [], []>} : vector<128x128xf32>, vector<128x128xf32>, vector<128x128xf32> -> vector<128x128xf32>
    %27 = arith.addf %17, %26 : vector<128x128xf32>
    %c0_21 = arith.constant 0 : index
    %c0_22 = arith.constant 0 : index
    %28 = vector.load %arg7[%c0_21, %c0_22] : memref<128x256xf32, #tpu.memory_space<vmem>>, vector<128x256xf32>
    %cst_23 = arith.constant dense<0.000000e+00> : vector<128x256xf32>
    %29 = tpu.matmul %27, %28, %cst_23 {dimension_numbers = #tpu.dot_dimension_numbers<[1], [0], [0], [1], [0, 0, 1, 1], [], []>} : vector<128x128xf32>, vector<128x256xf32>, vector<128x256xf32> -> vector<128x256xf32>
    %cst_24 = arith.constant 0.000000e+00 : f32
    %30 = vector.broadcast %cst_24 : f32 to vector<128x256xf32>
    %31 = arith.cmpf ogt, %29, %30 : vector<128x256xf32>
    %cst_25 = arith.constant 2.000000e-01 : f32
    %32 = vector.broadcast %cst_25 : f32 to vector<128x256xf32>
    %33 = arith.mulf %32, %29 : vector<128x256xf32>
    %34 = arith.select %31, %29, %33 : vector<128x256xi1>, vector<128x256xf32>
    %c0_26 = arith.constant 0 : index
    %c0_27 = arith.constant 0 : index
    %35 = vector.load %arg8[%c0_26, %c0_27] : memref<256x256xf32, #tpu.memory_space<vmem>>, vector<256x256xf32>
    %cst_28 = arith.constant dense<0.000000e+00> : vector<128x256xf32>
    %36 = tpu.matmul %34, %35, %cst_28 {dimension_numbers = #tpu.dot_dimension_numbers<[1], [0], [0], [1], [0, 0, 1, 1], [], []>} : vector<128x256xf32>, vector<256x256xf32>, vector<128x256xf32> -> vector<128x256xf32>
    %cst_29 = arith.constant 0.000000e+00 : f32
    %37 = vector.broadcast %cst_29 : f32 to vector<128x256xf32>
    %38 = arith.cmpf ogt, %36, %37 : vector<128x256xf32>
    %cst_30 = arith.constant 2.000000e-01 : f32
    %39 = vector.broadcast %cst_30 : f32 to vector<128x256xf32>
    %40 = arith.mulf %39, %36 : vector<128x256xf32>
    %41 = arith.select %38, %36, %40 : vector<128x256xi1>, vector<128x256xf32>
    %c0_31 = arith.constant 0 : index
    %c0_32 = arith.constant 0 : index
    %42 = vector.load %arg9[%c0_31, %c0_32] : memref<256x256xf32, #tpu.memory_space<vmem>>, vector<256x256xf32>
    %cst_33 = arith.constant dense<0.000000e+00> : vector<128x256xf32>
    %43 = tpu.matmul %41, %42, %cst_33 {dimension_numbers = #tpu.dot_dimension_numbers<[1], [0], [0], [1], [0, 0, 1, 1], [], []>} : vector<128x256xf32>, vector<256x256xf32>, vector<128x256xf32> -> vector<128x256xf32>
    %44 = arith.addf %34, %43 : vector<128x256xf32>
    %c0_34 = arith.constant 0 : index
    %c0_35 = arith.constant 0 : index
    %45 = vector.load %arg10[%c0_34, %c0_35] : memref<256x512xf32, #tpu.memory_space<vmem>>, vector<256x512xf32>
    %cst_36 = arith.constant dense<0.000000e+00> : vector<128x512xf32>
    %46 = tpu.matmul %44, %45, %cst_36 {dimension_numbers = #tpu.dot_dimension_numbers<[1], [0], [0], [1], [0, 0, 1, 1], [], []>} : vector<128x256xf32>, vector<256x512xf32>, vector<128x512xf32> -> vector<128x512xf32>
    %cst_37 = arith.constant 0.000000e+00 : f32
    %47 = vector.broadcast %cst_37 : f32 to vector<128x512xf32>
    %48 = arith.cmpf ogt, %46, %47 : vector<128x512xf32>
    %cst_38 = arith.constant 2.000000e-01 : f32
    %49 = vector.broadcast %cst_38 : f32 to vector<128x512xf32>
    %50 = arith.mulf %49, %46 : vector<128x512xf32>
    %51 = arith.select %48, %46, %50 : vector<128x512xi1>, vector<128x512xf32>
    %c0_39 = arith.constant 0 : index
    %c0_40 = arith.constant 0 : index
    %52 = vector.load %arg11[%c0_39, %c0_40] : memref<512x64xf32, #tpu.memory_space<vmem>>, vector<512x64xf32>
    %cst_41 = arith.constant dense<0.000000e+00> : vector<128x64xf32>
    %53 = tpu.matmul %51, %52, %cst_41 {dimension_numbers = #tpu.dot_dimension_numbers<[1], [0], [0], [1], [0, 0, 1, 1], [], []>} : vector<128x512xf32>, vector<512x64xf32>, vector<128x64xf32> -> vector<128x64xf32>
    %c0_42 = arith.constant 0 : index
    %54 = memref.load %arg12[%c0_42] : memref<1xf32, #tpu.memory_space<smem>>
    %55 = vector.broadcast %54 : f32 to vector<128x64xf32>
    %56 = arith.addf %53, %55 : vector<128x64xf32>
    %57 = math.tanh %56 : vector<128x64xf32>
    %c0_43 = arith.constant 0 : index
    %c0_44 = arith.constant 0 : index
    %58 = vector.load %arg13[%c0_43, %c0_44] : memref<128x64xf32, #tpu.memory_space<vmem>>, vector<128x64xf32>
    tpu.vector_store %arg13[%c0_43, %c0_44], %57 {strides = array<i32>} : memref<128x64xf32, #tpu.memory_space<vmem>>, vector<128x64xf32>,
    return
  }
  func.func @transform_0(%arg0: i32) -> (i32, i32) {
    %c0_i32 = arith.constant 0 : i32
    %c0_i32_0 = arith.constant 0 : i32
    return %arg0, %c0_i32 : i32, i32
  }
  func.func @transform_1(%arg0: i32) -> (i32, i32) {
    %c0_i32 = arith.constant 0 : i32
    %c0_i32_0 = arith.constant 0 : i32
    %c0_i32_1 = arith.constant 0 : i32
    return %c0_i32, %c0_i32_0 : i32, i32
  }
  func.func @transform_2(%arg0: i32) -> (i32, i32) {
    %c0_i32 = arith.constant 0 : i32
    %c0_i32_0 = arith.constant 0 : i32
    %c0_i32_1 = arith.constant 0 : i32
    return %c0_i32, %c0_i32_0 : i32, i32
  }
  func.func @transform_3(%arg0: i32) -> (i32, i32) {
    %c0_i32 = arith.constant 0 : i32
    %c0_i32_0 = arith.constant 0 : i32
    %c0_i32_1 = arith.constant 0 : i32
    return %c0_i32, %c0_i32_0 : i32, i32
  }
  func.func @transform_4(%arg0: i32) -> (i32, i32) {
    %c0_i32 = arith.constant 0 : i32
    %c0_i32_0 = arith.constant 0 : i32
    %c0_i32_1 = arith.constant 0 : i32
    return %c0_i32, %c0_i32_0 : i32, i32
  }
  func.func @transform_5(%arg0: i32) -> (i32, i32) {
    %c0_i32 = arith.constant 0 : i32
    %c0_i32_0 = arith.constant 0 : i32
    %c0_i32_1 = arith.constant 0 : i32
    return %c0_i32, %c0_i32_0 : i32, i32
  }
  func.func @transform_6(%arg0: i32) -> (i32, i32) {
    %c0_i32 = arith.constant 0 : i32
    %c0_i32_0 = arith.constant 0 : i32
    %c0_i32_1 = arith.constant 0 : i32
    return %c0_i32, %c0_i32_0 : i32, i32
  }
  func.func @transform_7(%arg0: i32) -> (i32, i32) {
    %c0_i32 = arith.constant 0 : i32
    %c0_i32_0 = arith.constant 0 : i32
    %c0_i32_1 = arith.constant 0 : i32
    return %c0_i32, %c0_i32_0 : i32, i32
  }
  func.func @transform_8(%arg0: i32) -> (i32, i32) {
    %c0_i32 = arith.constant 0 : i32
    %c0_i32_0 = arith.constant 0 : i32
    %c0_i32_1 = arith.constant 0 : i32
    return %c0_i32, %c0_i32_0 : i32, i32
  }
  func.func @transform_9(%arg0: i32) -> (i32, i32) {
    %c0_i32 = arith.constant 0 : i32
    %c0_i32_0 = arith.constant 0 : i32
    %c0_i32_1 = arith.constant 0 : i32
    return %c0_i32, %c0_i32_0 : i32, i32
  }
  func.func @transform_10(%arg0: i32) -> (i32, i32) {
    %c0_i32 = arith.constant 0 : i32
    %c0_i32_0 = arith.constant 0 : i32
    %c0_i32_1 = arith.constant 0 : i32
    return %c0_i32, %c0_i32_0 : i32, i32
  }
  func.func @transform_11(%arg0: i32) -> i32 {
    %c0_i32 = arith.constant 0 : i32
    %c0_i32_0 = arith.constant 0 : i32
    return %c0_i32 : i32
  }
  func.func @transform_12(%arg0: i32) -> (i32, i32) {
    %c0_i32 = arith.constant 0 : i32
    %c0_i32_0 = arith.constant 0 : i32
    return %arg0, %c0_i32 : i32, i32
  }
}

</mosaic_0001>

<bundles_post_ra>
// kernel: decoder_forward.1
= control target key start
LH: loop header
LB: loop body
LE: loop exit
PB: predicated region body
PF: predicated region fallthrough
CT: control target
= control target key end

     0   :  { %s6442_s0 = inlined_call_operand.vmem [shape: f32[256,64], index: 0, kind: input, shape index: {}]   ;;  %s6443_s1 = inlined_call_operand.hbm [shape: f32[64,64], index: 1, kind: input, shape index: {}]   ;;  %s6444_s2 = inlined_call_operand.hbm [shape: f32[64,64], index: 2, kind: input, shape index: {}]   ;;  %s6445_s3 = inlined_call_operand.hbm [shape: f32[64,128], index: 3, kind: input, shape index: {}]   ;;  %s6446_s4 = inlined_call_operand.vmem [shape: f32[128,128], index: 4, kind: input, shape index: {}]   ;;  %s6447_s5 = inlined_call_operand.hbm [shape: f32[128,128], index: 5, kind: input, shape index: {}]   ;;  %s6448_s6 = inlined_call_operand.hbm [shape: f32[128,256], index: 6, kind: input, shape index: {}]   ;;  %s6449_s7 = inlined_call_operand.hbm [shape: f32[256,256], index: 7, kind: input, shape index: {}]   ;;  %s6450_s8 = inlined_call_operand.hbm [shape: f32[256,256], index: 8, kind: input, shape index: {}]   ;;  %s6451_s9 = inlined_call_operand.vmem [shape: f32[256,512], index: 9, kind: input, shape index: {}]   ;;  %s6452_s10 = inlined_call_operand.vmem [shape: f32[512,64], index: 10, kind: input, shape index: {}]   ;;  %s6453_s11 = inlined_call_operand.<no memory space> [shape: f32[1], index: 11, kind: input, shape index: {}]   ;;  %s6454_s12 = inlined_call_operand.vmem [shape: f32[256,64], index: 12, kind: output, shape index: {}]  }
   0x1   :  { %6463 = sst [smem:[#allocation18_spill]] %s6444_s2 }
   0x2   :  { %17 = sst [smem:[#allocation2]] %s6453_s11 }
   0x3   :  { %18 = vsyncpa [#allocation4], 0 }
   0x4   :  { %19 = vsyncpa [#allocation6], 0 }
   0x5   :  { %20 = vsyncpa [#allocation9], 0 }
   0x6   :  { %21 = vsyncpa [#allocation12], 0  ;;  %s5141_s23 = smov 0  }
   0x7 LB: > { %s6455_s24 = sadd.s32 4294967295, %s5059_s23   ;;  %p3662_p0 = scmp.ge.s32.totalorder %s5059_s23, 1  ;;  %s5059_s23 = sphi %s5141_s23, %s27_s23  }
   0x8   : > { %p315_p1 = scmp.lt.s32.totalorder %s5059_s23, 3  ;;  %p5151_p2 = scmp.eq.s32.totalorder %s6455_s24, 0 }
   0x9   : > { %s5061_s26 = smov [#allocation5]   ;;  %s5062_s28 = smov [#allocation8]  }
   0xa   : > { %s6464_s11 = scalar_select %p5151_p2, 1, 0 }
   0xb   : > { %p5155_p3 = pnand %p3662_p0, %p315_p1  ;;  %s340_s27 = sshll.u32 %s5061_s26, 4  ;;  %s5159_s27 = int_to_ptr.vmem [resolvable:$true] %s340_s27 }
   0xc   : > { %s369_s29 = sshll.u32 %s5062_s28, 4  ;;  %s5063_s13 = smov [#allocation11]   ;;  %s5163_s29 = int_to_ptr.vmem [resolvable:$true] %s369_s29 }
   0xd   : > { %s6465_s25 = scalar_select %p5155_p3, 1, 0 }
   0xe   : > { %p4753_p4 = pneg %p5155_p3  ;;  %s5171_s14 = sshll.u32 %s5063_s13, 4  ;;  %s396_s14 = int_to_ptr.vmem [resolvable:$true] %s5171_s14 }
   0xf   : > { %s6467_s2 = sld [smem:[#allocation18_spill]] }
  0x10   : > { %p5167_p5 = pnand %p5151_p2, %p4753_p4 }
  0x12   : > { %p5181_p7 = pneg %p5167_p5 }
  0x15   : > { %s4841_s17 = scalar_lea.hbm %s6467_s2, 1024 }
  0x16   : > { %p4842_p6 = scmp.ne.s32.totalorder %s6467_s2, %s4841_s17  ;;  %p4848_p10 = scmp.lt.u32.totalorder %s4841_s17, %s6467_s2 }
  0x18   : > { %p4844_p8 = pnand %p5181_p7, %p4842_p6 }
  0x1a   : > { %p4845_p9 = pneg %p4844_p8 }
  0x1c   : > { %p4850_p11 = pnand %p4848_p10, %p4845_p9 }
  0x1e   : > { %4853 = shalt.err (!%p4850_p11)
}
  0x1f   : > { %s4854_s26 = scalar_lea.vmem %s5159_s27, 1024  ;;  %p4862_p1 = scmp.lt.s32.totalorder %s5159_s27, %s5159_s27 }
  0x20   : > { %p4855_p12 = scmp.ne.s32.totalorder %s5159_s27, %s4854_s26  ;;  %p4863_p4 = scmp.lt.s32.totalorder %s4854_s26, %s4854_s26 }
  0x22   : > { %p4857_p13 = pnand %p4855_p12, %p5181_p7  ;;  %p4864_p6 = por %p4863_p4, %p4862_p1 }
  0x24   : > { %p4858_p0 = pneg %p4857_p13 }
  0x26   : > { %p4865_p8 = pnand %p4864_p6, %p4858_p0 }
  0x28   : > { %4868 = shalt.err (!%p4865_p8)
}
  0x29   : > { %s5064_s28 = smov 128   ;;  %s5065_s13 = smov 8  }
  0x2a   : > { %4759 = dma.hbm_to_vmem [thread:$0]  (!%p5167_p5), %s6467_s2, 1024, %s5159_s27, [#allocation6], %s5064_s28, %s5064_s28, %s5065_s13  }
  0x2b   : > { %s4869_s19 = scalar_lea.hbm %s6447_s5, 2048 }
  0x2c   : > { %p4870_p9 = scmp.ne.s32.totalorder %s6447_s5, %s4869_s19  ;;  %p4876_p12 = scmp.lt.u32.totalorder %s4869_s19, %s6447_s5 }
  0x2e   : > { %p4872_p10 = pnand %p4870_p9, %p5181_p7 }
  0x30   : > { %p4873_p11 = pneg %p4872_p10 }
  0x32   : > { %p4878_p13 = pnand %p4876_p12, %p4873_p11 }
  0x34   : > { %4881 = shalt.err (!%p4878_p13)
}
  0x35   : > { %s4882_s27 = scalar_lea.vmem %s5163_s29, 2048  ;;  %p4890_p6 = scmp.lt.s32.totalorder %s5163_s29, %s5163_s29 }
  0x36   : > { %p4883_p0 = scmp.ne.s32.totalorder %s5163_s29, %s4882_s27  ;;  %p4891_p8 = scmp.lt.s32.totalorder %s4882_s27, %s4882_s27 }
  0x38   : > { %p4885_p1 = pnand %p4883_p0, %p5181_p7  ;;  %p4892_p9 = por %p4891_p8, %p4890_p6 }
  0x3a   : > { %p4886_p4 = pneg %p4885_p1 }
  0x3c   : > { %p4893_p10 = pnand %p4892_p9, %p4886_p4 }
  0x3e   : > { %4896 = shalt.err (!%p4893_p10)
}
  0x3f   : > { %4765 = dma.hbm_to_vmem [thread:$0]  (!%p5167_p5), %s6447_s5, 2048, %s5163_s29, [#allocation9], %s5064_s28, %s5064_s28, %s5065_s13  }
  0x40   : > { %s5066_s16 = smov [#allocation3]   ;;  %s4897_s21 = scalar_lea.hbm %s6449_s7, 8192 }
  0x41   : > { %s327_s17 = sshll.u32 %s5066_s16, 4  ;;  %p4898_p11 = scmp.ne.s32.totalorder %s6449_s7, %s4897_s21  ;;  %s328_s17 = int_to_ptr.vmem [resolvable:$true] %s327_s17 }
  0x42   : > { %p4904_p0 = scmp.lt.u32.totalorder %s4897_s21, %s6449_s7 }
  0x43   : > { %p4900_p12 = pnand %p4898_p11, %p5181_p7 }
  0x45   : > { %p4901_p13 = pneg %p4900_p12 }
  0x47   : > { %p4906_p1 = pnand %p4904_p0, %p4901_p13 }
  0x49   : > { %4909 = shalt.err (!%p4906_p1)
}
  0x4a   : > { %s4910_s29 = scalar_lea.vmem %s396_s14, 8192  ;;  %p4918_p9 = scmp.lt.s32.totalorder %s396_s14, %s396_s14 }
  0x4b   : > { %p4911_p4 = scmp.ne.s32.totalorder %s396_s14, %s4910_s29  ;;  %p4919_p10 = scmp.lt.s32.totalorder %s4910_s29, %s4910_s29 }
  0x4d   : > { %p4913_p6 = pnand %p4911_p4, %p5181_p7  ;;  %p4920_p2 = por %p4919_p10, %p4918_p9 }
  0x4f   : > { %p4914_p8 = pneg %p4913_p6 }
  0x51   : > { %p4921_p3 = pnand %p4920_p2, %p4914_p8 }
  0x53   : > { %4924 = shalt.err (!%p4921_p3)
}
  0x54   : > { %s6459_s24 = smov 256   ;;  %s6461_s15 = smov 16  }
  0x55   : > { %4771 = dma.hbm_to_vmem [thread:$0]  (!%p5167_p5), %s6449_s7, 8192, %s396_s14, [#allocation12], %s6459_s24, %s6459_s24, %s6461_s15  }
  0x56   : > { %s4925_s21 = scalar_lea.hbm %s6443_s1, 1024 }
  0x57   : > { %p4926_p2 = scmp.ne.s32.totalorder %s6443_s1, %s4925_s21  ;;  %p4932_p12 = scmp.lt.u32.totalorder %s4925_s21, %s6443_s1 }
  0x59   : > { %p4928_p3 = pnand %p4926_p2, %p5181_p7 }
  0x5b   : > { %p4929_p11 = pneg %p4928_p3 }
  0x5d   : > { %p4934_p13 = pnand %p4932_p12, %p4929_p11 }
  0x5f   : > { %4937 = shalt.err (!%p4934_p13)
}
  0x60   : > { %s4938_s2 = scalar_lea.vmem %s328_s17, 1024  ;;  %p4946_p6 = scmp.lt.s32.totalorder %s328_s17, %s328_s17 }
  0x61   : > { %p4939_p0 = scmp.ne.s32.totalorder %s328_s17, %s4938_s2  ;;  %p4947_p8 = scmp.lt.s32.totalorder %s4938_s2, %s4938_s2 }
  0x63   : > { %p4941_p1 = pnand %p4939_p0, %p5181_p7  ;;  %p4948_p9 = por %p4947_p8, %p4946_p6 }
  0x65   : > { %p4942_p4 = pneg %p4941_p1 }
  0x67   : > { %p4949_p10 = pnand %p4948_p9, %p4942_p4 }
  0x69   : > { %4952 = shalt.err (!%p4949_p10)
}
  0x6a   : > { %4756 = dma.hbm_to_vmem [thread:$0]  (!%p5167_p5), %s6443_s1, 1024, %s328_s17, [#allocation4], %s5064_s28, %s5064_s28, %s5065_s13  }
  0x6b   : > { %s5069_s18 = smov [#allocation7]   ;;  %s5070_s21 = smov [#allocation10]  }
  0x6c   : > { %s353_s19 = sshll.u32 %s5069_s18, 4  ;;  %s382_s22 = sshll.u32 %s5070_s21, 4  ;;  %s354_s19 = int_to_ptr.vmem [resolvable:$true] %s353_s19  ;;  %s383_s22 = int_to_ptr.vmem [resolvable:$true] %s382_s22 }
  0x6d   : > { %s4953_s29 = scalar_lea.hbm %s6445_s3, 1024 }
  0x6e   : > { %p4954_p2 = scmp.ne.s32.totalorder %s6445_s3, %s4953_s29  ;;  %p4960_p12 = scmp.lt.u32.totalorder %s4953_s29, %s6445_s3 }
  0x70   : > { %p4956_p3 = pnand %p4954_p2, %p5181_p7 }
  0x72   : > { %p4957_p11 = pneg %p4956_p3 }
  0x74   : > { %p4962_p13 = pnand %p4960_p12, %p4957_p11 }
  0x76   : > { %4965 = shalt.err (!%p4962_p13)
}
  0x77   : > { %s4966_s17 = scalar_lea.vmem %s354_s19, 1024  ;;  %p4974_p6 = scmp.lt.s32.totalorder %s354_s19, %s354_s19 }
  0x78   : > { %p4967_p0 = scmp.ne.s32.totalorder %s354_s19, %s4966_s17  ;;  %p4975_p8 = scmp.lt.s32.totalorder %s4966_s17, %s4966_s17 }
  0x7a   : > { %p4969_p1 = pnand %p4967_p0, %p5181_p7  ;;  %p4976_p9 = por %p4975_p8, %p4974_p6 }
  0x7c   : > { %p4970_p4 = pneg %p4969_p1 }
  0x7e   : > { %p4977_p10 = pnand %p4976_p9, %p4970_p4 }
  0x80   : > { %4980 = shalt.err (!%p4977_p10)
}
  0x81   : > { %4762 = dma.hbm_to_vmem [thread:$0]  (!%p5167_p5), %s6445_s3, 1024, %s354_s19, [#allocation6], %s5064_s28, %s5064_s28, %s5065_s13  }
  0x82   : > { %s4981_s21 = scalar_lea.hbm %s6448_s6, 4096 }
  0x83   : > { %p4982_p2 = scmp.ne.s32.totalorder %s6448_s6, %s4981_s21  ;;  %p4988_p12 = scmp.lt.u32.totalorder %s4981_s21, %s6448_s6 }
  0x85   : > { %p4984_p3 = pnand %p4982_p2, %p5181_p7 }
  0x87   : > { %p4985_p11 = pneg %p4984_p3 }
  0x89   : > { %p4990_p13 = pnand %p4988_p12, %p4985_p11 }
  0x8b   : > { %4993 = shalt.err (!%p4990_p13)
}
  0x8c   : > { %s4994_s14 = scalar_lea.vmem %s383_s22, 4096  ;;  %p5002_p6 = scmp.lt.s32.totalorder %s383_s22, %s383_s22 }
  0x8d   : > { %p4995_p0 = scmp.ne.s32.totalorder %s383_s22, %s4994_s14  ;;  %p5003_p8 = scmp.lt.s32.totalorder %s4994_s14, %s4994_s14 }
  0x8f   : > { %p4997_p1 = pnand %p4995_p0, %p5181_p7  ;;  %p5004_p9 = por %p5003_p8, %p5002_p6 }
  0x91   : > { %p4998_p4 = pneg %p4997_p1 }
  0x93   : > { %p5005_p10 = pnand %p5004_p9, %p4998_p4 }
  0x95   : > { %5008 = shalt.err (!%p5005_p10)
}
  0x96   : > { %s6469_s28 = smov 16   ;;  %s6470_s13 = smov 256  }
  0x97   : > { %4768 = dma.hbm_to_vmem [thread:$0]  (!%p5167_p5), %s6448_s6, 4096, %s383_s22, [#allocation9], %s6470_s13, %s6470_s13, %s6469_s28  }
  0x98   : > { %s5071_s24 = smov [#allocation13]   ;;  %s5009_s21 = scalar_lea.hbm %s6450_s8, 8192 }
  0x99   : > { %s408_s15 = sshll.u32 %s5071_s24, 4  ;;  %p5010_p2 = scmp.ne.s32.totalorder %s6450_s8, %s5009_s21  ;;  %s409_s15 = int_to_ptr.vmem [resolvable:$true] %s408_s15 }
  0x9a   : > { %p5016_p12 = scmp.lt.u32.totalorder %s5009_s21, %s6450_s8 }
  0x9b   : > { %p5012_p3 = pnand %p5010_p2, %p5181_p7 }
  0x9d   : > { %p5013_p11 = pneg %p5012_p3 }
  0x9f   : > { %p5018_p13 = pnand %p5016_p12, %p5013_p11 }
  0xa1   : > { %5021 = shalt.err (!%p5018_p13)
}
  0xa2   : > { %s5022_s22 = scalar_lea.vmem %s409_s15, 8192  ;;  %p5030_p6 = scmp.lt.s32.totalorder %s409_s15, %s409_s15 }
  0xa3   : > { %p5023_p0 = scmp.ne.s32.totalorder %s409_s15, %s5022_s22  ;;  %p5031_p8 = scmp.lt.s32.totalorder %s5022_s22, %s5022_s22 }
  0xa5   : > { %p5025_p1 = pnand %p5023_p0, %p5181_p7  ;;  %p5032_p9 = por %p5031_p8, %p5030_p6 }
  0xa7   : > { %p5026_p4 = pneg %p5025_p1 }
  0xa9   : > { %p5033_p10 = pnand %p5032_p9, %p5026_p4 }
  0xab   : > { %5036 = shalt.err (!%p5033_p10)
}
  0xac   : > { %4774 = dma.hbm_to_vmem [thread:$0]  (!%p5167_p5), %s6450_s8, 8192, %s409_s15, [#allocation12], %s6470_s13, %s6470_s13, %s6469_s28  }
  0xad   : > { %p6471_p2 = scmp.ne.s32.totalorder %s6465_s25, 0 }
  0xae   : > { %p6472_p7 = scmp.ne.s32.totalorder (!%p6471_p2), %s6464_s11, 0 }
  0xaf   : > { %442 = sbr.rel (%p6471_p2) target bundleno = 2450 (0x992), region = 68 }
  0xb6   : > { %5042 = dma.done.wait (%p6472_p7), [#allocation4], 1024  }
  0xb7   : > { %5044 = vsyncadd (%p6472_p7), [#allocation4], 4294966272 }
  0xb8   : > { %5046 = dma.done.wait (%p6472_p7), [#allocation6], 2048  }
  0xb9   : > { %5048 = vsyncadd (%p6472_p7), [#allocation6], 4294965248 }
  0xba   : > { %5050 = dma.done.wait (%p6472_p7), [#allocation9], 6144  }
  0xbb   : > { %5052 = vsyncadd (%p6472_p7), [#allocation9], 4294961152 }
  0xbc   : > { %5054 = dma.done.wait (%p6472_p7), [#allocation12], 16384  }
  0xbd   : > { %5056 = vsyncadd (%p6472_p7), [#allocation12], 4294950912  ;;  %s6473_s25 = sadd.s32 4294967295, %s5059_s23   ;;  %v536_v0 = vld [vmem:[#allocation3] sm:$0xff]  ;;  %v537_v1 = vld [vmem:[#allocation3 + $0x8] sm:$0xff]  ;;  %vm544_vm0 = vcmask 523264  }
  0xbe   : > { %s3679_s30 = sshll.u32 %s6473_s25, 4  ;;  %v538_v2 = vld [vmem:[#allocation3 + $0x10] sm:$0xff]  ;;  %v4261_v3 = vpack.c.bf16 %v537_v1, %v536_v0  ;;  %v539_v4 = vld [vmem:[#allocation3 + $0x18] sm:$0xff]  ;;  %v540_v6 = vld [vmem:[#allocation3 + $0x20] sm:$0xff]  ;;  %s3211_s29 = sld [smem:[#allocation2]] }
  0xbf   : > { %p509_p5 = scmp.lt.s32.totalorder %s3679_s30, 31  ;;  %v4265_v5 = vpack.c.bf16 %v539_v4, %v538_v2  ;;  %v541_v7 = vld [vmem:[#allocation3 + $0x28] sm:$0xff]  ;;  %v542_v10 = vld [vmem:[#allocation3 + $0x30] sm:$0xff]  ;;  %v543_v11 = vld [vmem:[#allocation3 + $0x38] sm:$0xff] }
  0xc0   : > { %4262 = vmatprep.subr.bf16.mxu0 %v4261_v3  ;;  %v4269_v9 = vpack.c.bf16 %v541_v7, %v540_v6  ;;  %v786_v12 = vld [vmem:[#allocation5] sm:$0xff]  ;;  %v787_v13 = vld [vmem:[#allocation5 + $0x8] sm:$0xff]  ;;  %v788_v14 = vld [vmem:[#allocation5 + $0x10] sm:$0xff]  ;;  %v4273_v15 = vpack.c.bf16 %v543_v11, %v542_v10 }
  0xc1   : > { %s6475_s30 = smov (!%p509_p5, %s3679_s30), 31  ;;  %4264 = vmatpush3.bf16.msra.mxu0 %v4261_v3  ;;  %v4277_v16 = vpack.c.bf16 %v787_v13, %v786_v12  ;;  %v789_v17 = vld [vmem:[#allocation5 + $0x18] sm:$0xff]  ;;  %v790_v19 = vld [vmem:[#allocation5 + $0x20] sm:$0xff]  ;;  %v791_v20 = vld [vmem:[#allocation5 + $0x28] sm:$0xff] }
  0xc2   : > { %s3680_s20 = sshll.u32 %s6475_s30, 3  ;;  %4266 = vmatprep.subr.bf16.mxu0 %v4265_v5  ;;  %v4281_v18 = vpack.c.bf16 %v789_v17, %v788_v14  ;;  %v4285_v21 = vpack.c.bf16 %v791_v20, %v790_v19  ;;  %v792_v37 = vld [vmem:[#allocation5 + $0x30] sm:$0xff]  ;;  %v793_v38 = vld [vmem:[#allocation5 + $0x38] sm:$0xff]  ;;  %v1003_v40 = vld [vmem:[#allocation7] sm:$0xff] }
  0xc3   : > { %s5365_s17 = scalar_lea.vmem %s6442_s0, %s3680_s20  ;;  %4278 = vmatprep.subr.bf16.mxu1 %v4277_v16  ;;  %v4289_v39 = vpack.c.bf16 %v793_v38, %v792_v37  ;;  %v1004_v41 = vld [vmem:[#allocation7 + $0x8] sm:$0xff]  ;;  %v1005_v42 = vld [vmem:[#allocation7 + $0x10] sm:$0xff]  ;;  %v1006_v44 = vld [vmem:[#allocation7 + $0x18] sm:$0xff]  ;;  %s6392_s14 = scalar_lea.vmem %s6454_s12, %s3680_s20 }
  0xc4   : > { %v5368_v8 = vld [vmem:[%s5365_s17] sm:$0xff]  ;;  %4280 = vmatpush3.bf16.msra.mxu1 %v4277_v16  ;;  %v5373_v22 = vld [vmem:[%s5365_s17 + $0x8] sm:$0xff]  ;;  %v5376_v23 = vld [vmem:[%s5365_s17 + $0x10] sm:$0xff]  ;;  %v4293_v43 = vpack.c.bf16 %v1004_v41, %v1003_v40  ;;  %v4297_v45 = vpack.c.bf16 %v1006_v44, %v1005_v42 }
  0xc5   : > { %4045 = vmatprep.mubr.msk.f32.mxu0 %vm544_vm0, %v5368_v8  ;;  %4268 = vmatpush3.bf16.msra.mxu0 %v4265_v5  ;;  %v5383_v24 = vld [vmem:[%s5365_s17 + $0x18] sm:$0xff]  ;;  %v5386_v25 = vld [vmem:[%s5365_s17 + $0x20] sm:$0xff]  ;;  %v5393_v26 = vld [vmem:[%s5365_s17 + $0x28] sm:$0xff] }
  0xc6   : > { %4270 = vmatprep.subr.bf16.mxu0 %v4269_v9  ;;  %4282 = vmatprep.subr.bf16.mxu1 %v4281_v18  ;;  %v5396_v27 = vld [vmem:[%s5365_s17 + $0x30] sm:$0xff]  ;;  %v5403_v28 = vld [vmem:[%s5365_s17 + $0x38] sm:$0xff]  ;;  %v5406_v29 = vld [vmem:[%s5365_s17 + $0x40] sm:$0xff] }
  0xc7   : > { %v5413_v30 = vld [vmem:[%s5365_s17 + $0x48] sm:$0xff]  ;;  %v5416_v31 = vld [vmem:[%s5365_s17 + $0x50] sm:$0xff]  ;;  %v5423_v32 = vld [vmem:[%s5365_s17 + $0x58] sm:$0xff] }
  0xc8   : > { %4284 = vmatpush3.bf16.msra.mxu1 %v4281_v18  ;;  %v5426_v33 = vld [vmem:[%s5365_s17 + $0x60] sm:$0xff]  ;;  %v5433_v34 = vld [vmem:[%s5365_s17 + $0x68] sm:$0xff]  ;;  %v5436_v35 = vld [vmem:[%s5365_s17 + $0x70] sm:$0xff] }
  0xc9   : > { %4272 = vmatpush3.bf16.msra.mxu0 %v4269_v9  ;;  %4286 = vmatprep.subr.bf16.mxu1 %v4285_v21  ;;  %v5443_v36 = vld [vmem:[%s5365_s17 + $0x78] sm:$0xff]  ;;  %v1007_v46 = vld [vmem:[#allocation7 + $0x20] sm:$0xff]  ;;  %v1008_v47 = vld [vmem:[#allocation7 + $0x28] sm:$0xff] }
  0xca   : > { %4274 = vmatprep.subr.bf16.mxu0 %v4273_v15  ;;  %v4301_v48 = vpack.c.bf16 %v1008_v47, %v1007_v46  ;;  %v1009_v49 = vld [vmem:[#allocation7 + $0x30] sm:$0xff]  ;;  %v1010_v50 = vld [vmem:[#allocation7 + $0x38] sm:$0xff] }
  0xcb   : > { %v4305_v51 = vpack.c.bf16 %v1010_v50, %v1009_v49 }
  0xcc   : > { %4288 = vmatpush3.bf16.msra.mxu1 %v4285_v21 }
  0xcd   : > { %4276 = vmatpush3.bf16.msra.mxu0 %v4273_v15  ;;  %4290 = vmatprep.subr.bf16.mxu1 %v4289_v39 }
  0xce   : > { %4294 = vmatprep.subr.bf16.mxu0 %v4293_v43 }
  0xd0   : > { %4046 = vmatmul.mubr.msk.f32.vlgmr.msra.gmra.mrb[0].mxu0 %vm544_vm0, %v5373_v22  ;;  %4292 = vmatpush3.bf16.msra.mxu1 %v4289_v39 }
  0xd1   : > { %4048 = vmatprep.mubr.msk.f32.mxu0 %vm544_vm0, %v5376_v23  ;;  %4296 = vmatpush3.bf16.msra.mxu0 %v4293_v43 }
  0xd2   : > { %4298 = vmatprep.subr.bf16.mxu0 %v4297_v45 }
  0xd4   : > { %4049 = vmatmul.mubr.msk.f32.gmra.mrb[2].mxu0 %vm544_vm0, %v5383_v24 }
  0xd5   : > { %4051 = vmatprep.mubr.msk.f32.mxu0 %vm544_vm0, %v5386_v25  ;;  %4300 = vmatpush3.bf16.msra.mxu0 %v4297_v45 }
  0xd6   : > { %4302 = vmatprep.subr.bf16.mxu0 %v4301_v48 }
  0xd8   : > { %4052 = vmatmul.mubr.msk.f32.gmra.mrb[4].mxu0 %vm544_vm0, %v5393_v26 }
  0xd9   : > { %4054 = vmatprep.mubr.msk.f32.mxu0 %vm544_vm0, %v5396_v27  ;;  %4304 = vmatpush3.bf16.msra.mxu0 %v4301_v48 }
  0xda   : > { %4306 = vmatprep.subr.bf16.mxu0 %v4305_v51 }
  0xdc   : > { %4055 = vmatmul.mubr.msk.f32.gmra.mrb[6].mxu0 %vm544_vm0, %v5403_v28 }
  0xdd   : > { %4057 = vmatprep.mubr.msk.f32.mxu0 %vm544_vm0, %v5406_v29  ;;  %4308 = vmatpush3.bf16.msra.mxu0 %v4305_v51 }
  0xe0   : > { %4058 = vmatmul.mubr.msk.f32.gmra.mrb[8].mxu0 %vm544_vm0, %v5413_v30 }
  0xe1   : > { %4060 = vmatprep.mubr.msk.f32.mxu0 %vm544_vm0, %v5416_v31 }
  0xe4   : > { %4061 = vmatmul.mubr.msk.f32.gmra.mrb[10].mxu0 %vm544_vm0, %v5423_v32 }
  0xe5   : > { %4063 = vmatprep.mubr.msk.f32.mxu0 %vm544_vm0, %v5426_v33 }
  0xe8   : > { %4064 = vmatmul.mubr.msk.f32.gmra.mrb[12].mxu0 %vm544_vm0, %v5433_v34 }
  0xe9   : > { %4066 = vmatprep.mubr.msk.f32.mxu0 %vm544_vm0, %v5436_v35 }
  0xec   : > { %4067 = vmatmul.mubr.msk.f32.gmra.mrb[14].mxu0 %vm544_vm0, %v5443_v36 }
 0x1a3   : > { %v4047_v52 = vpop.f32.mrb[0].mxu0 }
 0x1a4   : > { %v755_v53 = vmul.f32 0.2, %v4047_v52  ;;  %v659_v54 = vpop.f32.mrb[1].mxu0  ;;  %vm739_vm1 = vcmp.gt.f32.partialorder %v4047_v52, 0.0 }
 0x1a5   : > { %v754_v55 = vmul.f32 0.2, %v659_v54  ;;  %vm738_vm2 = vcmp.gt.f32.partialorder %v659_v54, 0.0 }
 0x1a6   : > { %v771_v60 = vsel %vm739_vm1, %v4047_v52, %v755_v53  ;;  %v1252_v52 = vld [vmem:[%s6446_s4] sm:$0xff]  ;;  %v1253_v53 = vld [vmem:[%s6446_s4 + $0x8] sm:$0xff] }
 0x1a7   : > { %v4050_v56 = vpop.f32.mrb[2].mxu0  ;;  %v770_v57 = vsel %vm738_vm2, %v659_v54, %v754_v55  ;;  %v1254_v54 = vld [vmem:[%s6446_s4 + $0x10] sm:$0xff]  ;;  %v4309_v55 = vpack.c.bf16 %v1253_v53, %v1252_v52 }
 0x1a8   : > { %vm741_vm3 = vcmp.gt.f32.partialorder %v4050_v56, 0.0  ;;  %v757_v58 = vmul.f32 0.2, %v4050_v56  ;;  %v669_v59 = vpop.f32.mrb[3].mxu0  ;;  %4085 = vmatprep.mubr.msk.f32.mxu1 %vm544_vm0, %v770_v57  ;;  %v1467_v53 = vld [vmem:[#allocation8 + $0x30] sm:$0xff] }
 0x1a9   : > { %vm740_vm4 = vcmp.gt.f32.partialorder %v669_v59, 0.0  ;;  %v756_v61 = vmul.f32 0.2, %v669_v59  ;;  %4086 = vmatmul.mubr.msk.f32.vlgmr.msra.gmra.mrb[0].mxu1 %vm544_vm0, %v771_v60  ;;  %4310 = vmatprep.subr.bf16.mxu1 %v4309_v55 }
 0x1aa   : > { %v773_v62 = vsel %vm741_vm3, %v4050_v56, %v757_v58  ;;  %v1255_v56 = vld [vmem:[%s6446_s4 + $0x18] sm:$0xff]  ;;  %v1256_v58 = vld [vmem:[%s6446_s4 + $0x20] sm:$0xff]  ;;  %4312 = vmatpush3.bf16.msra.mxu1 %v4309_v55 }
 0x1ab   : > { %v4053_v63 = vpop.f32.mrb[4].mxu0  ;;  %v772_v0 = vsel %vm740_vm4, %v669_v59, %v756_v61  ;;  %v4313_v57 = vpack.c.bf16 %v1255_v56, %v1254_v54  ;;  %v1257_v59 = vld [vmem:[%s6446_s4 + $0x28] sm:$0xff]  ;;  %v1258_v61 = vld [vmem:[%s6446_s4 + $0x30] sm:$0xff]  ;;  %v1468_v54 = vld [vmem:[#allocation8 + $0x38] sm:$0xff] }
 0x1ac   : > { %vm743_vm5 = vcmp.gt.f32.partialorder %v4053_v63, 0.0  ;;  %v759_v1 = vmul.f32 0.2, %v4053_v63  ;;  %v679_v2 = vpop.f32.mrb[5].mxu0  ;;  %4088 = vmatprep.mubr.msk.f32.mxu1 %vm544_vm0, %v772_v0  ;;  %v4317_v60 = vpack.c.bf16 %v1257_v59, %v1256_v58  ;;  %v1260_v0 = vld [vmem:[%s6446_s4 + $0x40] sm:$0xff]  ;;  %v4353_v55 = vpack.c.bf16 %v1468_v54, %v1467_v53  ;;  %v1471_v59 = vld [vmem:[#allocation8 + $0x50] sm:$0xff] }
 0x1ad   : > { %vm742_vm6 = vcmp.gt.f32.partialorder %v679_v2, 0.0  ;;  %v758_v3 = vmul.f32 0.2, %v679_v2  ;;  %4089 = vmatmul.mubr.msk.f32.gmra.mrb[2].mxu1 %vm544_vm0, %v773_v62  ;;  %4314 = vmatprep.subr.bf16.mxu1 %v4313_v57  ;;  %v1259_v62 = vld [vmem:[%s6446_s4 + $0x38] sm:$0xff]  ;;  %v1469_v56 = vld [vmem:[#allocation8 + $0x40] sm:$0xff] }
 0x1ae   : > { %v775_v4 = vsel %vm743_vm5, %v4053_v63, %v759_v1  ;;  %4316 = vmatpush3.bf16.msra.mxu1 %v4313_v57  ;;  %v4321_v63 = vpack.c.bf16 %v1259_v62, %v1258_v61  ;;  %v1261_v1 = vld [vmem:[%s6446_s4 + $0x48] sm:$0xff]  ;;  %v1473_v62 = vld [vmem:[#allocation8 + $0x60] sm:$0xff]  ;;  %v1641_v53 = vld [vmem:[#allocation10 + $0x18] sm:$0xff] }
 0x1af   : > { %v4056_v5 = vpop.f32.mrb[6].mxu0  ;;  %v774_v6 = vsel %vm742_vm6, %v679_v2, %v758_v3  ;;  %4318 = vmatprep.subr.bf16.mxu1 %v4317_v60  ;;  %v4325_v2 = vpack.c.bf16 %v1261_v1, %v1260_v0  ;;  %v1262_v3 = vld [vmem:[%s6446_s4 + $0x50] sm:$0xff]  ;;  %v1470_v57 = vld [vmem:[#allocation8 + $0x48] sm:$0xff]  ;;  %v1638_v54 = vld [vmem:[#allocation10] sm:$0xff] }
 0x1b0   : > { %vm745_vm7 = vcmp.gt.f32.partialorder %v4056_v5, 0.0  ;;  %v761_v7 = vmul.f32 0.2, %v4056_v5  ;;  %v689_v9 = vpop.f32.mrb[7].mxu0  ;;  %4091 = vmatprep.mubr.msk.f32.mxu1 %vm544_vm0, %v774_v6  ;;  %v1264_v6 = vld [vmem:[%s6446_s4 + $0x60] sm:$0xff]  ;;  %v4357_v58 = vpack.c.bf16 %v1470_v57, %v1469_v56  ;;  %v1640_v56 = vld [vmem:[#allocation10 + $0x10] sm:$0xff] }
 0x1b1   : > { %vm744_vm8 = vcmp.gt.f32.partialorder %v689_v9, 0.0  ;;  %v760_v10 = vmul.f32 0.2, %v689_v9  ;;  %4092 = vmatmul.mubr.msk.f32.gmra.mrb[4].mxu1 %vm544_vm0, %v775_v4  ;;  %v1263_v4 = vld [vmem:[%s6446_s4 + $0x58] sm:$0xff]  ;;  %v1643_v57 = vld [vmem:[#allocation10 + $0x28] sm:$0xff] }
 0x1b2   : > { %v777_v11 = vsel %vm745_vm7, %v4056_v5, %v761_v7  ;;  %4320 = vmatpush3.bf16.msra.mxu1 %v4317_v60  ;;  %v4329_v5 = vpack.c.bf16 %v1263_v4, %v1262_v3  ;;  %v1265_v7 = vld [vmem:[%s6446_s4 + $0x68] sm:$0xff]  ;;  %v1472_v60 = vld [vmem:[#allocation8 + $0x58] sm:$0xff] }
 0x1b3   : > { %v4059_v12 = vpop.f32.mrb[8].mxu0  ;;  %v776_v13 = vsel %vm744_vm8, %v689_v9, %v760_v10  ;;  %4322 = vmatprep.subr.bf16.mxu1 %v4321_v63  ;;  %v4333_v9 = vpack.c.bf16 %v1265_v7, %v1264_v6  ;;  %v4361_v61 = vpack.c.bf16 %v1472_v60, %v1471_v59  ;;  %v4375_v59 = vpack.c.bf16 %v1640_v56, %v1638_v54 }
 0x1b4   : > { %vm747_vm9 = vcmp.gt.f32.partialorder %v4059_v12, 0.0  ;;  %v763_v14 = vmul.f32 0.2, %v4059_v12  ;;  %v699_v15 = vpop.f32.mrb[9].mxu0  ;;  %4094 = vmatprep.mubr.msk.f32.mxu1 %vm544_vm0, %v776_v13 }
 0x1b5   : > { %vm746_vm10 = vcmp.gt.f32.partialorder %v699_v15, 0.0  ;;  %v762_v16 = vmul.f32 0.2, %v699_v15  ;;  %4095 = vmatmul.mubr.msk.f32.gmra.mrb[6].mxu1 %vm544_vm0, %v777_v11 }
 0x1b6   : > { %v779_v17 = vsel %vm747_vm9, %v4059_v12, %v763_v14  ;;  %4324 = vmatpush3.bf16.msra.mxu1 %v4321_v63  ;;  %v1474_v63 = vld [vmem:[#allocation8 + $0x68] sm:$0xff] }
 0x1b7   : > { %v4062_v18 = vpop.f32.mrb[10].mxu0  ;;  %v778_v19 = vsel %vm746_vm10, %v699_v15, %v762_v16  ;;  %4326 = vmatprep.subr.bf16.mxu1 %v4325_v2  ;;  %v4365_v0 = vpack.c.bf16 %v1474_v63, %v1473_v62  ;;  %v1644_v62 = vld [vmem:[#allocation10 + $0x30] sm:$0xff]  ;;  %v1647_v63 = vld [vmem:[#allocation10 + $0x48] sm:$0xff] }
 0x1b8   : > { %vm749_vm11 = vcmp.gt.f32.partialorder %v4062_v18, 0.0  ;;  %v765_v20 = vmul.f32 0.2, %v4062_v18  ;;  %v709_v21 = vpop.f32.mrb[11].mxu0  ;;  %4097 = vmatprep.mubr.msk.f32.mxu1 %vm544_vm0, %v778_v19 }
 0x1b9   : > { %vm748_vm12 = vcmp.gt.f32.partialorder %v709_v21, 0.0  ;;  %v764_v37 = vmul.f32 0.2, %v709_v21  ;;  %4098 = vmatmul.mubr.msk.f32.gmra.mrb[8].mxu1 %vm544_vm0, %v779_v17 }
 0x1ba   : > { %v781_v38 = vsel %vm749_vm11, %v4062_v18, %v765_v20  ;;  %4328 = vmatpush3.bf16.msra.mxu1 %v4325_v2 }
 0x1bb   : > { %v4065_v39 = vpop.f32.mrb[12].mxu0  ;;  %v780_v40 = vsel %vm748_vm12, %v709_v21, %v764_v37  ;;  %4330 = vmatprep.subr.bf16.mxu1 %v4329_v5 }
 0x1bc   : > { %vm751_vm13 = vcmp.gt.f32.partialorder %v4065_v39, 0.0  ;;  %v767_v41 = vmul.f32 0.2, %v4065_v39  ;;  %v719_v42 = vpop.f32.mrb[13].mxu0  ;;  %4100 = vmatprep.mubr.msk.f32.mxu1 %vm544_vm0, %v780_v40 }
 0x1bd   : > { %vm750_vm14 = vcmp.gt.f32.partialorder %v719_v42, 0.0  ;;  %v766_v43 = vmul.f32 0.2, %v719_v42  ;;  %4101 = vmatmul.mubr.msk.f32.gmra.mrb[10].mxu1 %vm544_vm0, %v781_v38 }
 0x1be   : > { %v783_v44 = vsel %vm751_vm13, %v4065_v39, %v767_v41  ;;  %4332 = vmatpush3.bf16.msra.mxu1 %v4329_v5 }
 0x1bf   : > { %v4068_v45 = vpop.f32.mrb[14].mxu0  ;;  %v782_v46 = vsel %vm750_vm14, %v719_v42, %v766_v43  ;;  %4334 = vmatprep.subr.bf16.mxu1 %v4333_v9 }
 0x1c0   : > { %vm753_vm15 = vcmp.gt.f32.partialorder %v4068_v45, 0.0  ;;  %v769_v47 = vmul.f32 0.2, %v4068_v45  ;;  %v729_v48 = vpop.f32.mrb[15].mxu0  ;;  %4103 = vmatprep.mubr.msk.f32.mxu1 %vm544_vm0, %v782_v46  ;;  %v1462_v46 = vld [vmem:[#allocation8 + $0x8] sm:$0xff] }
 0x1c1   : > { %vm752_vm1 = vcmp.gt.f32.partialorder %v729_v48, 0.0  ;;  %v768_v49 = vmul.f32 0.2, %v729_v48  ;;  %4104 = vmatmul.mubr.msk.f32.gmra.mrb[12].mxu1 %vm544_vm0, %v783_v44 }
 0x1c2   : > { %v785_v50 = vsel %vm753_vm15, %v4068_v45, %v769_v47  ;;  %4336 = vmatpush3.bf16.msra.mxu1 %v4333_v9  ;;  %v1463_v47 = vld [vmem:[#allocation8 + $0x10] sm:$0xff] }
 0x1c3   : > { %v784_v51 = vsel %vm752_vm1, %v729_v48, %v768_v49 }
 0x1c4   : > { %4106 = vmatprep.mubr.msk.f32.mxu1 %vm544_vm0, %v784_v51  ;;  %v1466_v51 = vld [vmem:[#allocation8 + $0x28] sm:$0xff] }
 0x1c5   : > { %4107 = vmatmul.mubr.msk.f32.gmra.mrb[14].mxu1 %vm544_vm0, %v785_v50  ;;  %v1465_v50 = vld [vmem:[#allocation8 + $0x20] sm:$0xff] }
 0x1c6   : > { %v4349_v52 = vpack.c.bf16 %v1466_v51, %v1465_v50  ;;  %v1476_v50 = vld [vmem:[#allocation8 + $0x78] sm:$0xff] }
 0x27c   : > { %v4087_v10 = vpop.f32.mrb[0].mxu1 }
 0x27d   : > { %v908_v11 = vpop.f32.mrb[1].mxu1  ;;  %v988_v13 = vadd.f32 %v4087_v10, %v5373_v22 }
 0x27e   : > { %v987_v12 = vadd.f32 %v908_v11, %v5368_v8 }
 0x280   : > { %v4090_v14 = vpop.f32.mrb[2].mxu1  ;;  %4125 = vmatprep.mubr.msk.f32.mxu0 %vm544_vm0, %v987_v12 }
 0x281   : > { %v918_v15 = vpop.f32.mrb[3].mxu1  ;;  %4126 = vmatmul.mubr.msk.f32.vlgmr.msra.gmra.mrb[16].mxu0 %vm544_vm0, %v988_v13  ;;  %v990_v17 = vadd.f32 %v4090_v14, %v5383_v24 }
 0x282   : > { %v989_v16 = vadd.f32 %v918_v15, %v5376_v23 }
 0x284   : > { %v4093_v18 = vpop.f32.mrb[4].mxu1  ;;  %4128 = vmatprep.mubr.msk.f32.mxu0 %vm544_vm0, %v989_v16 }
 0x285   : > { %v992_v19 = vadd.f32 %v4093_v18, %v5393_v26  ;;  %v928_v20 = vpop.f32.mrb[5].mxu1  ;;  %4129 = vmatmul.mubr.msk.f32.gmra.mrb[18].mxu0 %vm544_vm0, %v990_v17 }
 0x286   : > { %v991_v8 = vadd.f32 %v928_v20, %v5386_v25 }
 0x288   : > { %v4096_v22 = vpop.f32.mrb[6].mxu1  ;;  %4131 = vmatprep.mubr.msk.f32.mxu0 %vm544_vm0, %v991_v8 }
 0x289   : > { %v994_v21 = vadd.f32 %v4096_v22, %v5403_v28  ;;  %v938_v37 = vpop.f32.mrb[7].mxu1  ;;  %4132 = vmatmul.mubr.msk.f32.gmra.mrb[20].mxu0 %vm544_vm0, %v992_v19 }
 0x28a   : > { %v993_v23 = vadd.f32 %v938_v37, %v5396_v27 }
 0x28c   : > { %v4099_v24 = vpop.f32.mrb[8].mxu1  ;;  %4134 = vmatprep.mubr.msk.f32.mxu0 %vm544_vm0, %v993_v23 }
 0x28d   : > { %v996_v26 = vadd.f32 %v4099_v24, %v5413_v30  ;;  %v948_v38 = vpop.f32.mrb[9].mxu1  ;;  %4135 = vmatmul.mubr.msk.f32.gmra.mrb[22].mxu0 %vm544_vm0, %v994_v21 }
 0x28e   : > { %v995_v25 = vadd.f32 %v948_v38, %v5406_v29 }
 0x290   : > { %v4102_v39 = vpop.f32.mrb[10].mxu1  ;;  %4137 = vmatprep.mubr.msk.f32.mxu0 %vm544_vm0, %v995_v25 }
 0x291   : > { %v998_v28 = vadd.f32 %v4102_v39, %v5423_v32  ;;  %v958_v40 = vpop.f32.mrb[11].mxu1  ;;  %4138 = vmatmul.mubr.msk.f32.gmra.mrb[24].mxu0 %vm544_vm0, %v996_v26 }
 0x292   : > { %v997_v27 = vadd.f32 %v958_v40, %v5416_v31 }
 0x294   : > { %v4105_v41 = vpop.f32.mrb[12].mxu1  ;;  %4140 = vmatprep.mubr.msk.f32.mxu0 %vm544_vm0, %v997_v27 }
 0x295   : > { %v1000_v30 = vadd.f32 %v4105_v41, %v5433_v34  ;;  %v968_v42 = vpop.f32.mrb[13].mxu1  ;;  %4141 = vmatmul.mubr.msk.f32.gmra.mrb[26].mxu0 %vm544_vm0, %v998_v28  ;;  %v1266_v34 = vld [vmem:[%s6446_s4 + $0x70] sm:$0xff] }
 0x296   : > { %v999_v29 = vadd.f32 %v968_v42, %v5426_v33  ;;  %v1267_v33 = vld [vmem:[%s6446_s4 + $0x78] sm:$0xff] }
 0x297   : > { %v4337_v45 = vpack.c.bf16 %v1267_v33, %v1266_v34 }
 0x298   : > { %v4108_v43 = vpop.f32.mrb[14].mxu1  ;;  %4143 = vmatprep.mubr.msk.f32.mxu0 %vm544_vm0, %v999_v29 }
 0x299   : > { %v1002_v32 = vadd.f32 %v4108_v43, %v5443_v36  ;;  %v978_v44 = vpop.f32.mrb[15].mxu1  ;;  %4144 = vmatmul.mubr.msk.f32.gmra.mrb[28].mxu0 %vm544_vm0, %v1000_v30  ;;  %4338 = vmatprep.subr.bf16.mxu1 %v4337_v45  ;;  %v1461_v36 = vld [vmem:[#allocation8] sm:$0xff] }
 0x29a   : > { %v1001_v31 = vadd.f32 %v978_v44, %v5436_v35  ;;  %4340 = vmatpush3.bf16.msra.mxu1 %v4337_v45  ;;  %v4341_v48 = vpack.c.bf16 %v1462_v46, %v1461_v36  ;;  %v1464_v35 = vld [vmem:[#allocation8 + $0x18] sm:$0xff] }
 0x29b   : > { %v4345_v49 = vpack.c.bf16 %v1464_v35, %v1463_v47 }
 0x29c   : > { %4146 = vmatprep.mubr.msk.f32.mxu0 %vm544_vm0, %v1001_v31  ;;  %4342 = vmatprep.subr.bf16.mxu0 %v4341_v48 }
 0x29d   : > { %4147 = vmatmul.mubr.msk.f32.gmra.mrb[30].mxu0 %vm544_vm0, %v1002_v32 }
 0x29e   : > { %4344 = vmatpush3.bf16.msra.mxu0 %v4341_v48 }
 0x29f   : > { %4346 = vmatprep.subr.bf16.mxu0 %v4345_v49 }
 0x2a2   : > { %4348 = vmatpush3.bf16.msra.mxu0 %v4345_v49  ;;  %v1475_v49 = vld [vmem:[#allocation8 + $0x70] sm:$0xff] }
 0x2a3   : > { %4350 = vmatprep.subr.bf16.mxu0 %v4349_v52  ;;  %v4369_v51 = vpack.c.bf16 %v1476_v50, %v1475_v49 }
 0x2a6   : > { %4352 = vmatpush3.bf16.msra.mxu0 %v4349_v52  ;;  %v1639_v52 = vld [vmem:[#allocation10 + $0x8] sm:$0xff] }
 0x2a7   : > { %4354 = vmatprep.subr.bf16.mxu0 %v4353_v55 }
 0x2aa   : > { %4356 = vmatpush3.bf16.msra.mxu0 %v4353_v55  ;;  %v4373_v55 = vpack.c.bf16 %v1641_v53, %v1639_v52 }
 0x2ab   : > { %4358 = vmatprep.subr.bf16.mxu0 %v4357_v58 }
 0x2ac   : > { %4374 = vmatprep.subr.bf16.mxu1 %v4373_v55 }
 0x2ae   : > { %4360 = vmatpush3.bf16.msra.mxu0 %v4357_v58  ;;  %v1645_v58 = vld [vmem:[#allocation10 + $0x38] sm:$0xff] }
 0x2af   : > { %4362 = vmatprep.subr.bf16.mxu0 %v4361_v61  ;;  %v4377_v60 = vpack.c.bf16 %v1645_v58, %v1643_v57 }
 0x2b2   : > { %4364 = vmatpush3.bf16.msra.mxu0 %v4361_v61  ;;  %v1642_v61 = vld [vmem:[#allocation10 + $0x20] sm:$0xff] }
 0x2b3   : > { %4366 = vmatprep.subr.bf16.mxu0 %v4365_v0 }
 0x2b6   : > { %4368 = vmatpush3.bf16.msra.mxu0 %v4365_v0  ;;  %v1649_v0 = vld [vmem:[#allocation10 + $0x58] sm:$0xff] }
 0x2b7   : > { %4370 = vmatprep.subr.bf16.mxu0 %v4369_v51 }
 0x2ba   : > { %4372 = vmatpush3.bf16.msra.mxu0 %v4369_v51 }
 0x354   : > { %v4127_v1 = vpop.f32.mrb[16].mxu0 }
 0x355   : > { %v1221_v2 = vmul.f32 0.2, %v4127_v1  ;;  %v1125_v3 = vpop.f32.mrb[17].mxu0  ;;  %vm1205_vm2 = vcmp.gt.f32.partialorder %v4127_v1, 0.0 }
 0x356   : > { %vm1204_vm3 = vcmp.gt.f32.partialorder %v1125_v3, 0.0  ;;  %v1220_v4 = vmul.f32 0.2, %v1125_v3 }
 0x357   : > { %v5545_v7 = vsel %vm1205_vm2, %v4127_v1, %v1221_v2  ;;  %v4379_v1 = vpack.c.bf16 %v1644_v62, %v1642_v61  ;;  %v4381_v2 = vpack.c.bf16 %v1649_v0, %v1647_v63 }
 0x358   : > { %v4130_v5 = vpop.f32.mrb[18].mxu0  ;;  %v5543_v6 = vsel %vm1204_vm3, %v1125_v3, %v1220_v4  ;;  %v1646_v3 = vld [vmem:[#allocation10 + $0x40] sm:$0xff]  ;;  %v1648_v4 = vld [vmem:[#allocation10 + $0x50] sm:$0xff] }
 0x359   : > { %v1223_v9 = vmul.f32 0.2, %v4130_v5  ;;  %v1135_v10 = vpop.f32.mrb[19].mxu0  ;;  %4181 = vmatprep.mubr.f32.mxu1 %v5543_v6  ;;  %vm1207_vm4 = vcmp.gt.f32.partialorder %v4130_v5, 0.0 }
 0x35a   : > { %vm1206_vm5 = vcmp.gt.f32.partialorder %v1135_v10, 0.0  ;;  %v1222_v11 = vmul.f32 0.2, %v1135_v10  ;;  %4182 = vmatmul.mubr.f32.vlgmr.msra.gmra.mrb[16].mxu1 %v5545_v7 }
 0x35b   : > { %v5552_v16 = vsel %vm1207_vm4, %v4130_v5, %v1223_v9  ;;  %4376 = vmatpush1.bf16.msra.mxu1 %v4375_v59  ;;  %v1651_v5 = vld [vmem:[#allocation10 + $0x68] sm:$0xff]  ;;  %v1653_v9 = vld [vmem:[#allocation10 + $0x78] sm:$0xff] }
 0x35c   : > { %v4133_v12 = vpop.f32.mrb[20].mxu0  ;;  %v5549_v13 = vsel %vm1206_vm5, %v1135_v10, %v1222_v11  ;;  %4378 = vmatprep.subr.bf16.mxu1 %v4377_v60  ;;  %v4383_v10 = vpack.c.bf16 %v1648_v4, %v1646_v3  ;;  %v4385_v11 = vpack.c.bf16 %v1653_v9, %v1651_v5 }
 0x35d   : > { %v1225_v14 = vmul.f32 0.2, %v4133_v12  ;;  %v1145_v15 = vpop.f32.mrb[21].mxu0  ;;  %4184 = vmatprep.mubr.f32.mxu1 %v5549_v13  ;;  %vm1209_vm6 = vcmp.gt.f32.partialorder %v4133_v12, 0.0 }
 0x35e   : > { %vm1208_vm7 = vcmp.gt.f32.partialorder %v1145_v15, 0.0  ;;  %v1224_v17 = vmul.f32 0.2, %v1145_v15  ;;  %4185 = vmatmul.mubr.f32.gmra.mrb[18].mxu1 %v5552_v16 }
 0x35f   : > { %v5558_v22 = vsel %vm1209_vm6, %v4133_v12, %v1225_v14  ;;  %4380 = vmatpush1.bf16.msra.mxu1 %v4379_v1  ;;  %v1650_v12 = vld [vmem:[#allocation10 + $0x60] sm:$0xff]  ;;  %v1652_v14 = vld [vmem:[#allocation10 + $0x70] sm:$0xff] }
 0x360   : > { %v4136_v18 = vpop.f32.mrb[22].mxu0  ;;  %v5555_v19 = vsel %vm1208_vm7, %v1145_v15, %v1224_v17  ;;  %4382 = vmatprep.subr.bf16.mxu1 %v4381_v2  ;;  %v1655_v15 = vld [vmem:[#allocation10 + $0x88] sm:$0xff]  ;;  %v1657_v17 = vld [vmem:[#allocation10 + $0x98] sm:$0xff] }
 0x361   : > { %vm1211_vm8 = vcmp.gt.f32.partialorder %v4136_v18, 0.0  ;;  %v1227_v20 = vmul.f32 0.2, %v4136_v18  ;;  %v1155_v8 = vpop.f32.mrb[23].mxu0  ;;  %4187 = vmatprep.mubr.f32.mxu1 %v5555_v19 }
 0x362   : > { %vm1210_vm9 = vcmp.gt.f32.partialorder %v1155_v8, 0.0  ;;  %v1226_v21 = vmul.f32 0.2, %v1155_v8  ;;  %4188 = vmatmul.mubr.f32.gmra.mrb[20].mxu1 %v5558_v22 }
 0x363   : > { %v5561_v37 = vsel %vm1211_vm8, %v4136_v18, %v1227_v20  ;;  %4384 = vmatpush1.bf16.msra.mxu1 %v4383_v10  ;;  %v4387_v18 = vpack.c.bf16 %v1652_v14, %v1650_v12  ;;  %v4389_v20 = vpack.c.bf16 %v1657_v17, %v1655_v15 }
 0x364   : > { %v4139_v23 = vpop.f32.mrb[24].mxu0  ;;  %v5563_v24 = vsel %vm1210_vm9, %v1155_v8, %v1226_v21  ;;  %4386 = vmatprep.subr.bf16.mxu1 %v4385_v11  ;;  %v1654_v8 = vld [vmem:[#allocation10 + $0x80] sm:$0xff]  ;;  %v1656_v21 = vld [vmem:[#allocation10 + $0x90] sm:$0xff] }
 0x365   : > { %vm1213_vm10 = vcmp.gt.f32.partialorder %v4139_v23, 0.0  ;;  %v1229_v26 = vmul.f32 0.2, %v4139_v23  ;;  %v1165_v38 = vpop.f32.mrb[25].mxu0  ;;  %4190 = vmatprep.mubr.f32.mxu1 %v5563_v24 }
 0x366   : > { %vm1212_vm11 = vcmp.gt.f32.partialorder %v1165_v38, 0.0  ;;  %v1228_v25 = vmul.f32 0.2, %v1165_v38  ;;  %4191 = vmatmul.mubr.f32.gmra.mrb[22].mxu1 %v5561_v37 }
 0x367   : > { %v5567_v39 = vsel %vm1213_vm10, %v4139_v23, %v1229_v26  ;;  %v1659_v23 = vld [vmem:[#allocation10 + $0xa8] sm:$0xff]  ;;  %v1661_v26 = vld [vmem:[#allocation10 + $0xb8] sm:$0xff]  ;;  %4388 = vmatpush1.bf16.msra.mxu1 %v4387_v18 }
 0x368   : > { %v4142_v28 = vpop.f32.mrb[26].mxu0  ;;  %v5569_v40 = vsel %vm1212_vm11, %v1165_v38, %v1228_v25  ;;  %v4391_v38 = vpack.c.bf16 %v1656_v21, %v1654_v8  ;;  %4390 = vmatprep.subr.bf16.mxu1 %v4389_v20  ;;  %v4393_v25 = vpack.c.bf16 %v1661_v26, %v1659_v23 }
 0x369   : > { %vm1215_vm12 = vcmp.gt.f32.partialorder %v4142_v28, 0.0  ;;  %v1231_v27 = vmul.f32 0.2, %v4142_v28  ;;  %v1175_v41 = vpop.f32.mrb[27].mxu0  ;;  %4193 = vmatprep.mubr.f32.mxu1 %v5569_v40 }
 0x36a   : > { %vm1214_vm13 = vcmp.gt.f32.partialorder %v1175_v41, 0.0  ;;  %v1230_v30 = vmul.f32 0.2, %v1175_v41  ;;  %4194 = vmatmul.mubr.f32.gmra.mrb[24].mxu1 %v5567_v39 }
 0x36b   : > { %v5573_v42 = vsel %vm1215_vm12, %v4142_v28, %v1231_v27  ;;  %v1658_v28 = vld [vmem:[#allocation10 + $0xa0] sm:$0xff]  ;;  %v1660_v27 = vld [vmem:[#allocation10 + $0xb0] sm:$0xff]  ;;  %4392 = vmatpush1.bf16.msra.mxu1 %v4391_v38 }
 0x36c   : > { %v4145_v29 = vpop.f32.mrb[28].mxu0  ;;  %v5575_v43 = vsel %vm1214_vm13, %v1175_v41, %v1230_v30  ;;  %v1663_v41 = vld [vmem:[#allocation10 + $0xc8] sm:$0xff]  ;;  %v1665_v30 = vld [vmem:[#allocation10 + $0xd8] sm:$0xff]  ;;  %4394 = vmatprep.subr.bf16.mxu1 %v4393_v25 }
 0x36d   : > { %vm1217_vm14 = vcmp.gt.f32.partialorder %v4145_v29, 0.0  ;;  %v1233_v32 = vmul.f32 0.2, %v4145_v29  ;;  %v1185_v44 = vpop.f32.mrb[29].mxu0  ;;  %4196 = vmatprep.mubr.f32.mxu1 %v5575_v43 }
 0x36e   : > { %vm1216_vm15 = vcmp.gt.f32.partialorder %v1185_v44, 0.0  ;;  %v1232_v31 = vmul.f32 0.2, %v1185_v44  ;;  %4197 = vmatmul.mubr.f32.gmra.mrb[26].mxu1 %v5573_v42 }
 0x36f   : > { %v5579_v34 = vsel %vm1217_vm14, %v4145_v29, %v1233_v32  ;;  %v4395_v29 = vpack.c.bf16 %v1660_v27, %v1658_v28  ;;  %v4397_v32 = vpack.c.bf16 %v1665_v30, %v1663_v41 }
 0x370   : > { %v4148_v33 = vpop.f32.mrb[30].mxu0  ;;  %v5581_v45 = vsel %vm1216_vm15, %v1185_v44, %v1232_v31  ;;  %v1662_v44 = vld [vmem:[#allocation10 + $0xc0] sm:$0xff]  ;;  %v1664_v31 = vld [vmem:[#allocation10 + $0xd0] sm:$0xff] }
 0x371   : > { %vm1219_vm1 = vcmp.gt.f32.partialorder %v4148_v33, 0.0  ;;  %v1235_v36 = vmul.f32 0.2, %v4148_v33  ;;  %v1195_v46 = vpop.f32.mrb[31].mxu0  ;;  %4199 = vmatprep.mubr.f32.mxu1 %v5581_v45  ;;  %4396 = vmatpush1.bf16.msra.mxu1 %v4395_v29 }
 0x372   : > { %vm1218_vm2 = vcmp.gt.f32.partialorder %v1195_v46, 0.0  ;;  %v1234_v47 = vmul.f32 0.2, %v1195_v46  ;;  %4200 = vmatmul.mubr.f32.gmra.mrb[28].mxu1 %v5579_v34  ;;  %4398 = vmatprep.subr.bf16.mxu1 %v4397_v32 }
 0x373   : > { %v5585_v48 = vsel %vm1219_vm1, %v4148_v33, %v1235_v36  ;;  %v1667_v33 = vld [vmem:[#allocation10 + $0xe8] sm:$0xff]  ;;  %v1669_v36 = vld [vmem:[#allocation10 + $0xf8] sm:$0xff] }
 0x374   : > { %v5587_v35 = vsel %vm1218_vm2, %v1195_v46, %v1234_v47  ;;  %v4399_v46 = vpack.c.bf16 %v1664_v31, %v1662_v44  ;;  %v4401_v47 = vpack.c.bf16 %v1669_v36, %v1667_v33 }
 0x375   : > { %4202 = vmatprep.mubr.f32.mxu1 %v5587_v35 }
 0x376   : > { %4203 = vmatmul.mubr.f32.gmra.mrb[30].mxu1 %v5585_v48 }
 0x377   : > { %4400 = vmatpush1.bf16.msra.mxu1 %v4399_v46 }
 0x378   : > { %4402 = vmatprep.subr.bf16.mxu1 %v4401_v47 }
 0x42d   : > { %v4183_v49 = vpop.f32.mrb[16].mxu1 }
 0x42e   : > { %v1430_v50 = vmul.f32 0.2, %v4183_v49  ;;  %v1334_v51 = vpop.f32.mrb[17].mxu1  ;;  %vm1414_vm3 = vcmp.gt.f32.partialorder %v4183_v49, 0.0 }
 0x42f   : > { %vm1413_vm4 = vcmp.gt.f32.partialorder %v1334_v51, 0.0  ;;  %v1429_v52 = vmul.f32 0.2, %v1334_v51 }
 0x430   : > { %v1446_v55 = vsel %vm1414_vm3, %v4183_v49, %v1430_v50  ;;  %v1666_v49 = vld [vmem:[#allocation10 + $0xe0] sm:$0xff]  ;;  %v1668_v50 = vld [vmem:[#allocation10 + $0xf0] sm:$0xff] }
 0x431   : > { %v4186_v53 = vpop.f32.mrb[18].mxu1  ;;  %v1445_v54 = vsel %vm1413_vm4, %v1334_v51, %v1429_v52  ;;  %v4403_v51 = vpack.c.bf16 %v1668_v50, %v1666_v49  ;;  %v5072_v52 = vmov 0.0   ;;  %v1955_v50 = vld [vmem:[#allocation11 + $0xe0] sm:$0xff] }
 0x432   : > { %v1432_v56 = vmul.f32 0.2, %v4186_v53  ;;  %v1344_v57 = vpop.f32.mrb[19].mxu1  ;;  %4237 = vmatprep.mubr.f32.mxu0 %v1445_v54  ;;  %vm1416_vm5 = vcmp.gt.f32.partialorder %v4186_v53, 0.0  ;;  %1734 = vmatprep.mubr.f32.mxu1 %v5072_v52  ;;  %v1930_v54 = vld [vmem:[#allocation11 + $0x18] sm:$0xff] }
 0x433   : > { %vm1415_vm6 = vcmp.gt.f32.partialorder %v1344_v57, 0.0  ;;  %v1431_v58 = vmul.f32 0.2, %v1344_v57  ;;  %4238 = vmatmul.mubr.f32.vlgmr.msra.gmra.mrb[32].mxu0 %v1446_v55  ;;  %4404 = vmatpush1.bf16.msra.mxu1 %v4403_v51  ;;  %v1927_v55 = vld [vmem:[#allocation11] sm:$0xff]  ;;  %v1957_v51 = vld [vmem:[#allocation11 + $0xf0] sm:$0xff] }
 0x434   : > { %v1448_v63 = vsel %vm1416_vm5, %v4186_v53, %v1432_v56  ;;  %v1928_v53 = vld [vmem:[#allocation11 + $0x8] sm:$0xff] }
 0x435   : > { %v4189_v59 = vpop.f32.mrb[20].mxu1  ;;  %v1447_v60 = vsel %vm1415_vm6, %v1344_v57, %v1431_v58  ;;  %v4405_v56 = vpack.c.bf16 %v1930_v54, %v1928_v53  ;;  %v1929_v57 = vld [vmem:[#allocation11 + $0x10] sm:$0xff]  ;;  %v1932_v58 = vld [vmem:[#allocation11 + $0x28] sm:$0xff]  ;;  %v1962_v54 = vld [vmem:[#allocation11 + $0x118] sm:$0xff] }
 0x436   : > { %v1434_v61 = vmul.f32 0.2, %v4189_v59  ;;  %v1354_v62 = vpop.f32.mrb[21].mxu1  ;;  %4240 = vmatprep.mubr.f32.mxu0 %v1447_v60  ;;  %vm1418_vm7 = vcmp.gt.f32.partialorder %v4189_v59, 0.0  ;;  %v4407_v60 = vpack.c.bf16 %v1929_v57, %v1927_v55  ;;  %v1960_v53 = vld [vmem:[#allocation11 + $0x108] sm:$0xff]  ;;  %v4435_v55 = vpack.c.bf16 %v1957_v51, %v1955_v50  ;;  %v1959_v57 = vld [vmem:[#allocation11 + $0x100] sm:$0xff] }
 0x437   : > { %vm1417_vm8 = vcmp.gt.f32.partialorder %v1354_v62, 0.0  ;;  %v1433_v0 = vmul.f32 0.2, %v1354_v62  ;;  %4241 = vmatmul.mubr.f32.gmra.mrb[34].mxu0 %v1448_v63  ;;  %v1933_v63 = vld [vmem:[#allocation11 + $0x30] sm:$0xff]  ;;  %4406 = vmatprep.subr.bf16.mxu0 %v4405_v56  ;;  %v4437_v56 = vpack.c.bf16 %v1962_v54, %v1960_v53 }
 0x438   : > { %v1450_v5 = vsel %vm1418_vm7, %v4189_v59, %v1434_v61  ;;  %v1934_v59 = vld [vmem:[#allocation11 + $0x38] sm:$0xff]  ;;  %4408 = vmatpush1.bf16.msra.mxu0 %v4407_v60 }
 0x439   : > { %v4192_v1 = vpop.f32.mrb[22].mxu1  ;;  %v1449_v2 = vsel %vm1417_vm8, %v1354_v62, %v1433_v0  ;;  %v4409_v61 = vpack.c.bf16 %v1934_v59, %v1932_v58  ;;  %v1931_v62 = vld [vmem:[#allocation11 + $0x20] sm:$0xff]  ;;  %v1936_v0 = vld [vmem:[#allocation11 + $0x48] sm:$0xff]  ;;  %v1961_v58 = vld [vmem:[#allocation11 + $0x110] sm:$0xff] }
 0x43a   : > { %v1436_v3 = vmul.f32 0.2, %v4192_v1  ;;  %v1364_v4 = vpop.f32.mrb[23].mxu1  ;;  %4243 = vmatprep.mubr.f32.mxu0 %v1449_v2  ;;  %vm1420_vm9 = vcmp.gt.f32.partialorder %v4192_v1, 0.0  ;;  %v4411_v2 = vpack.c.bf16 %v1933_v63, %v1931_v62  ;;  %v1964_v59 = vld [vmem:[#allocation11 + $0x128] sm:$0xff]  ;;  %v1966_v60 = vld [vmem:[#allocation11 + $0x138] sm:$0xff] }
 0x43b   : > { %vm1419_vm10 = vcmp.gt.f32.partialorder %v1364_v4, 0.0  ;;  %v1435_v9 = vmul.f32 0.2, %v1364_v4  ;;  %4244 = vmatmul.mubr.f32.gmra.mrb[36].mxu0 %v1450_v5  ;;  %4410 = vmatprep.subr.bf16.mxu0 %v4409_v61  ;;  %v1937_v5 = vld [vmem:[#allocation11 + $0x50] sm:$0xff]  ;;  %v4439_v61 = vpack.c.bf16 %v1961_v58, %v1959_v57  ;;  %v4441_v62 = vpack.c.bf16 %v1966_v60, %v1964_v59  ;;  %v1963_v63 = vld [vmem:[#allocation11 + $0x120] sm:$0xff] }
 0x43c   : > { %v1452_v15 = vsel %vm1420_vm9, %v4192_v1, %v1436_v3  ;;  %v1938_v1 = vld [vmem:[#allocation11 + $0x58] sm:$0xff]  ;;  %4412 = vmatpush1.bf16.msra.mxu0 %v4411_v2 }
 0x43d   : > { %v4195_v10 = vpop.f32.mrb[24].mxu1  ;;  %v1451_v11 = vsel %vm1419_vm10, %v1364_v4, %v1435_v9  ;;  %v4413_v3 = vpack.c.bf16 %v1938_v1, %v1936_v0  ;;  %v1935_v4 = vld [vmem:[#allocation11 + $0x40] sm:$0xff]  ;;  %v1940_v9 = vld [vmem:[#allocation11 + $0x68] sm:$0xff]  ;;  %v1965_v0 = vld [vmem:[#allocation11 + $0x130] sm:$0xff] }
 0x43e   : > { %vm1422_vm11 = vcmp.gt.f32.partialorder %v4195_v10, 0.0  ;;  %v1438_v12 = vmul.f32 0.2, %v4195_v10  ;;  %v1374_v14 = vpop.f32.mrb[25].mxu1  ;;  %4246 = vmatprep.mubr.f32.mxu0 %v1451_v11  ;;  %v4415_v11 = vpack.c.bf16 %v1937_v5, %v1935_v4  ;;  %v1968_v1 = vld [vmem:[#allocation11 + $0x148] sm:$0xff]  ;;  %v1970_v2 = vld [vmem:[#allocation11 + $0x158] sm:$0xff] }
 0x43f   : > { %vm1421_vm12 = vcmp.gt.f32.partialorder %v1374_v14, 0.0  ;;  %v1437_v17 = vmul.f32 0.2, %v1374_v14  ;;  %4247 = vmatmul.mubr.f32.gmra.mrb[38].mxu0 %v1452_v15  ;;  %4414 = vmatprep.subr.bf16.mxu0 %v4413_v3  ;;  %v1941_v15 = vld [vmem:[#allocation11 + $0x70] sm:$0xff]  ;;  %v4443_v3 = vpack.c.bf16 %v1965_v0, %v1963_v63  ;;  %v4445_v4 = vpack.c.bf16 %v1970_v2, %v1968_v1  ;;  %v1967_v5 = vld [vmem:[#allocation11 + $0x140] sm:$0xff] }
 0x440   : > { %v1454_v18 = vsel %vm1422_vm11, %v4195_v10, %v1438_v12  ;;  %v1942_v10 = vld [vmem:[#allocation11 + $0x78] sm:$0xff]  ;;  %4416 = vmatpush1.bf16.msra.mxu0 %v4415_v11 }
 0x441   : > { %v4198_v20 = vpop.f32.mrb[26].mxu1  ;;  %v1453_v8 = vsel %vm1421_vm12, %v1374_v14, %v1437_v17  ;;  %v4417_v12 = vpack.c.bf16 %v1942_v10, %v1940_v9  ;;  %v1939_v14 = vld [vmem:[#allocation11 + $0x60] sm:$0xff]  ;;  %v1944_v17 = vld [vmem:[#allocation11 + $0x88] sm:$0xff]  ;;  %v1969_v9 = vld [vmem:[#allocation11 + $0x150] sm:$0xff] }
 0x442   : > { %vm1424_vm13 = vcmp.gt.f32.partialorder %v4198_v20, 0.0  ;;  %v1440_v21 = vmul.f32 0.2, %v4198_v20  ;;  %v1384_v23 = vpop.f32.mrb[27].mxu1  ;;  %4249 = vmatprep.mubr.f32.mxu0 %v1453_v8  ;;  %v1972_v10 = vld [vmem:[#allocation11 + $0x168] sm:$0xff]  ;;  %v1974_v11 = vld [vmem:[#allocation11 + $0x178] sm:$0xff] }
 0x443   : > { %vm1423_vm14 = vcmp.gt.f32.partialorder %v1384_v23, 0.0  ;;  %v1439_v26 = vmul.f32 0.2, %v1384_v23  ;;  %4250 = vmatmul.mubr.f32.gmra.mrb[40].mxu0 %v1454_v18  ;;  %v1946_v18 = vld [vmem:[#allocation11 + $0x98] sm:$0xff]  ;;  %4418 = vmatprep.subr.bf16.mxu0 %v4417_v12  ;;  %v4447_v12 = vpack.c.bf16 %v1969_v9, %v1967_v5  ;;  %v1988_v5 = vld [vmem:[#allocation11 + $0x1e8] sm:$0xff] }
 0x444   : > { %v1456_v38 = vsel %vm1424_vm13, %v4198_v20, %v1440_v21  ;;  %v4419_v20 = vpack.c.bf16 %v1941_v15, %v1939_v14  ;;  %v4421_v8 = vpack.c.bf16 %v1946_v18, %v1944_v17  ;;  %v1943_v21 = vld [vmem:[#allocation11 + $0x80] sm:$0xff]  ;;  %v4449_v14 = vpack.c.bf16 %v1974_v11, %v1972_v10  ;;  %v1973_v17 = vld [vmem:[#allocation11 + $0x170] sm:$0xff]  ;;  %v1976_v18 = vld [vmem:[#allocation11 + $0x188] sm:$0xff] }
 0x445   : > { %v4201_v25 = vpop.f32.mrb[28].mxu1  ;;  %v1455_v28 = vsel %vm1423_vm14, %v1384_v23, %v1439_v26  ;;  %v1945_v23 = vld [vmem:[#allocation11 + $0x90] sm:$0xff]  ;;  %v1948_v26 = vld [vmem:[#allocation11 + $0xa8] sm:$0xff]  ;;  %v1971_v15 = vld [vmem:[#allocation11 + $0x160] sm:$0xff] }
 0x446   : > { %vm1426_vm15 = vcmp.gt.f32.partialorder %v4201_v25, 0.0  ;;  %v1442_v27 = vmul.f32 0.2, %v4201_v25  ;;  %v1394_v41 = vpop.f32.mrb[29].mxu1  ;;  %4252 = vmatprep.mubr.f32.mxu0 %v1455_v28  ;;  %4420 = vmatpush1.bf16.msra.mxu0 %v4419_v20  ;;  %v1978_v20 = vld [vmem:[#allocation11 + $0x198] sm:$0xff]  ;;  %v1989_v11 = vld [vmem:[#allocation11 + $0x1f0] sm:$0xff] }
 0x447   : > { %vm1425_vm1 = vcmp.gt.f32.partialorder %v1394_v41, 0.0  ;;  %v1441_v30 = vmul.f32 0.2, %v1394_v41  ;;  %4253 = vmatmul.mubr.f32.gmra.mrb[42].mxu0 %v1456_v38  ;;  %v1950_v38 = vld [vmem:[#allocation11 + $0xb8] sm:$0xff]  ;;  %4422 = vmatprep.subr.bf16.mxu0 %v4421_v8  ;;  %v4451_v8 = vpack.c.bf16 %v1973_v17, %v1971_v15  ;;  %v2248_v15 = vld [vmem:[#allocation13] sm:$0xff] }
 0x448   : > { %v1458_v29 = vsel %vm1426_vm15, %v4201_v25, %v1442_v27  ;;  %v4423_v25 = vpack.c.bf16 %v1945_v23, %v1943_v21  ;;  %v4425_v28 = vpack.c.bf16 %v1950_v38, %v1948_v26  ;;  %v1947_v27 = vld [vmem:[#allocation11 + $0xa0] sm:$0xff]  ;;  %v4453_v21 = vpack.c.bf16 %v1978_v20, %v1976_v18  ;;  %v1977_v26 = vld [vmem:[#allocation11 + $0x190] sm:$0xff]  ;;  %v1980_v38 = vld [vmem:[#allocation11 + $0x1a8] sm:$0xff] }
 0x449   : > { %v4204_v32 = vpop.f32.mrb[30].mxu1  ;;  %v1457_v44 = vsel %vm1425_vm1, %v1394_v41, %v1441_v30  ;;  %v1949_v41 = vld [vmem:[#allocation11 + $0xb0] sm:$0xff]  ;;  %v1952_v30 = vld [vmem:[#allocation11 + $0xc8] sm:$0xff]  ;;  %v1975_v23 = vld [vmem:[#allocation11 + $0x180] sm:$0xff] }
 0x44a   : > { %vm1428_vm2 = vcmp.gt.f32.partialorder %v4204_v32, 0.0  ;;  %v1444_v31 = vmul.f32 0.2, %v4204_v32  ;;  %v1404_v33 = vpop.f32.mrb[31].mxu1  ;;  %4255 = vmatprep.mubr.f32.mxu0 %v1457_v44  ;;  %4424 = vmatpush1.bf16.msra.mxu0 %v4423_v25  ;;  %v1982_v25 = vld [vmem:[#allocation11 + $0x1b8] sm:$0xff]  ;;  %v2250_v18 = vld [vmem:[#allocation13 + $0x10] sm:$0xff] }
 0x44b   : > { %vm1427_vm3 = vcmp.gt.f32.partialorder %v1404_v33, 0.0  ;;  %v1443_v36 = vmul.f32 0.2, %v1404_v33  ;;  %4256 = vmatmul.mubr.f32.gmra.mrb[44].mxu0 %v1458_v29  ;;  %v1954_v29 = vld [vmem:[#allocation11 + $0xd8] sm:$0xff]  ;;  %4426 = vmatprep.subr.bf16.mxu0 %v4425_v28  ;;  %v4455_v28 = vpack.c.bf16 %v1977_v26, %v1975_v23  ;;  %v2257_v23 = vld [vmem:[#allocation13 + $0x48] sm:$0xff] }
 0x44c   : > { %v1460_v46 = vsel %vm1428_vm2, %v4204_v32, %v1444_v31  ;;  %v4427_v32 = vpack.c.bf16 %v1949_v41, %v1947_v27  ;;  %v4429_v44 = vpack.c.bf16 %v1954_v29, %v1952_v30  ;;  %v1951_v31 = vld [vmem:[#allocation11 + $0xc0] sm:$0xff]  ;;  %v4457_v27 = vpack.c.bf16 %v1982_v25, %v1980_v38  ;;  %v1981_v30 = vld [vmem:[#allocation11 + $0x1b0] sm:$0xff]  ;;  %v1984_v29 = vld [vmem:[#allocation11 + $0x1c8] sm:$0xff] }
 0x44d   : > { %v1459_v47 = vsel %vm1427_vm3, %v1404_v33, %v1443_v36  ;;  %v1953_v33 = vld [vmem:[#allocation11 + $0xd0] sm:$0xff]  ;;  %v1956_v36 = vld [vmem:[#allocation11 + $0xe8] sm:$0xff]  ;;  %v1979_v41 = vld [vmem:[#allocation11 + $0x1a0] sm:$0xff] }
 0x44e   : > { %4258 = vmatprep.mubr.f32.mxu0 %v1459_v47  ;;  %4428 = vmatpush1.bf16.msra.mxu0 %v4427_v32  ;;  %v4431_v47 = vpack.c.bf16 %v1953_v33, %v1951_v31  ;;  %v1986_v32 = vld [vmem:[#allocation11 + $0x1d8] sm:$0xff]  ;;  %v1983_v33 = vld [vmem:[#allocation11 + $0x1c0] sm:$0xff] }
 0x44f   : > { %4259 = vmatmul.mubr.f32.gmra.mrb[46].mxu0 %v1460_v46  ;;  %v1958_v46 = vld [vmem:[#allocation11 + $0xf8] sm:$0xff]  ;;  %4430 = vmatprep.subr.bf16.mxu0 %v4429_v44  ;;  %v4459_v44 = vpack.c.bf16 %v1981_v30, %v1979_v41  ;;  %v4461_v31 = vpack.c.bf16 %v1986_v32, %v1984_v29  ;;  %v2261_v41 = vld [vmem:[#allocation13 + $0x68] sm:$0xff] }
 0x450   : > { %v4433_v49 = vpack.c.bf16 %v1958_v46, %v1956_v36  ;;  %v1985_v36 = vld [vmem:[#allocation11 + $0x1d0] sm:$0xff]  ;;  %v1990_v9 = vld [vmem:[#allocation11 + $0x1f8] sm:$0xff] }
 0x451   : > { %v4463_v46 = vpack.c.bf16 %v1985_v36, %v1983_v33  ;;  %v4465_v10 = vpack.c.bf16 %v1990_v9, %v1988_v5  ;;  %v2255_v20 = vld [vmem:[#allocation13 + $0x38] sm:$0xff]  ;;  %v2265_v33 = vld [vmem:[#allocation13 + $0x88] sm:$0xff]  ;;  %v2286_v5 = vld [vmem:[#allocation13 + $0x130] sm:$0xff] }
 0x452   : > { %4432 = vmatpush1.bf16.msra.mxu0 %v4431_v47  ;;  %v2259_v26 = vld [vmem:[#allocation13 + $0x58] sm:$0xff]  ;;  %v2289_v9 = vld [vmem:[#allocation13 + $0x148] sm:$0xff] }
 0x453   : > { %4434 = vmatprep.subr.bf16.mxu0 %v4433_v49  ;;  %v4477_v25 = vpack.c.bf16 %v2259_v26, %v2257_v23  ;;  %v2263_v30 = vld [vmem:[#allocation13 + $0x78] sm:$0xff]  ;;  %v2296_v23 = vld [vmem:[#allocation13 + $0x180] sm:$0xff]  ;;  %v2298_v26 = vld [vmem:[#allocation13 + $0x190] sm:$0xff] }
 0x454   : > { %v4481_v32 = vpack.c.bf16 %v2263_v30, %v2261_v41  ;;  %v2267_v36 = vld [vmem:[#allocation13 + $0x98] sm:$0xff]  ;;  %v2300_v41 = vld [vmem:[#allocation13 + $0x1a0] sm:$0xff]  ;;  %v2302_v30 = vld [vmem:[#allocation13 + $0x1b0] sm:$0xff] }
 0x456   : > { %4436 = vmatpush1.bf16.msra.mxu0 %v4435_v55 }
 0x457   : > { %4438 = vmatprep.subr.bf16.mxu0 %v4437_v56 }
 0x45a   : > { %4440 = vmatpush1.bf16.msra.mxu0 %v4439_v61 }
 0x45b   : > { %4442 = vmatprep.subr.bf16.mxu0 %v4441_v62 }
 0x45e   : > { %4444 = vmatpush1.bf16.msra.mxu0 %v4443_v3 }
 0x45f   : > { %4446 = vmatprep.subr.bf16.mxu0 %v4445_v4 }
 0x462   : > { %4448 = vmatpush1.bf16.msra.mxu0 %v4447_v12 }
 0x463   : > { %4450 = vmatprep.subr.bf16.mxu0 %v4449_v14  ;;  %v2251_v14 = vld [vmem:[#allocation13 + $0x18] sm:$0xff] }
 0x466   : > { %4452 = vmatpush1.bf16.msra.mxu0 %v4451_v8  ;;  %v4471_v8 = vpack.c.bf16 %v2250_v18, %v2248_v15  ;;  %v2295_v15 = vld [vmem:[#allocation13 + $0x178] sm:$0xff] }
 0x467   : > { %4454 = vmatprep.subr.bf16.mxu0 %v4453_v21  ;;  %v2252_v21 = vld [vmem:[#allocation13 + $0x20] sm:$0xff] }
 0x46a   : > { %4456 = vmatpush1.bf16.msra.mxu0 %v4455_v28  ;;  %v2256_v28 = vld [vmem:[#allocation13 + $0x40] sm:$0xff] }
 0x46b   : > { %4458 = vmatprep.subr.bf16.mxu0 %v4457_v27  ;;  %v2258_v27 = vld [vmem:[#allocation13 + $0x50] sm:$0xff] }
 0x46c   : > { %v4479_v29 = vpack.c.bf16 %v2258_v27, %v2256_v28  ;;  %v4519_v28 = vpack.c.bf16 %v2298_v26, %v2296_v23 }
 0x46e   : > { %4460 = vmatpush1.bf16.msra.mxu0 %v4459_v44  ;;  %v2260_v44 = vld [vmem:[#allocation13 + $0x60] sm:$0xff] }
 0x46f   : > { %4462 = vmatprep.subr.bf16.mxu0 %v4461_v31  ;;  %v2262_v31 = vld [vmem:[#allocation13 + $0x70] sm:$0xff] }
 0x472   : > { %4464 = vmatpush1.bf16.msra.mxu0 %v4463_v46  ;;  %v4483_v46 = vpack.c.bf16 %v2262_v31, %v2260_v44  ;;  %v4523_v44 = vpack.c.bf16 %v2302_v30, %v2300_v41 }
 0x473   : > { %4466 = vmatprep.subr.bf16.mxu0 %v4465_v10  ;;  %v2291_v10 = vld [vmem:[#allocation13 + $0x158] sm:$0xff] }
 0x506   : > { %v4239_v47 = vpop.f32.mrb[32].mxu0 }
 0x507   : > { %v1543_v49 = vpop.f32.mrb[33].mxu0  ;;  %v1623_v54 = vadd.f32 %v4239_v47, %v5545_v7  ;;  %v4485_v47 = vpack.c.bf16 %v2267_v36, %v2265_v33  ;;  %v2304_v33 = vld [vmem:[#allocation13 + $0x1c0] sm:$0xff]  ;;  %v2306_v36 = vld [vmem:[#allocation13 + $0x1d0] sm:$0xff] }
 0x508   : > { %v1622_v50 = vadd.f32 %v1543_v49, %v5543_v6  ;;  %v2264_v49 = vld [vmem:[#allocation13 + $0x80] sm:$0xff] }
 0x50a   : > { %v4242_v51 = vpop.f32.mrb[34].mxu0  ;;  %1735 = vmatmul.mubr.f32.vlgmr.msra.gmra.mrb[32].mxu1 %v1622_v50  ;;  %v2266_v50 = vld [vmem:[#allocation13 + $0x90] sm:$0xff] }
 0x50b   : > { %v1553_v53 = vpop.f32.mrb[35].mxu0  ;;  %1740 = vmatprep.mubr.f32.mxu1 %v5072_v52  ;;  %v1625_v6 = vadd.f32 %v4242_v51, %v5552_v16  ;;  %v2269_v51 = vld [vmem:[#allocation13 + $0xa8] sm:$0xff] }
 0x50c   : > { %v1624_v57 = vadd.f32 %v1553_v53, %v5549_v13  ;;  %v2271_v53 = vld [vmem:[#allocation13 + $0xb8] sm:$0xff] }
 0x50e   : > { %v4245_v55 = vpop.f32.mrb[36].mxu0  ;;  %1741 = vmatmul.mubr.f32.gmra.mrb[34].mxu1 %v1623_v54  ;;  %v4487_v54 = vpack.c.bf16 %v2266_v50, %v2264_v49 }
 0x50f   : > { %v1563_v56 = vpop.f32.mrb[37].mxu0  ;;  %1746 = vmatprep.mubr.f32.mxu1 %v5072_v52  ;;  %v1627_v13 = vadd.f32 %v4245_v55, %v5558_v22  ;;  %v4489_v55 = vpack.c.bf16 %v2271_v53, %v2269_v51 }
 0x510   : > { %v1626_v7 = vadd.f32 %v1563_v56, %v5555_v19  ;;  %v2268_v56 = vld [vmem:[#allocation13 + $0xa0] sm:$0xff] }
 0x512   : > { %v4248_v58 = vpop.f32.mrb[38].mxu0  ;;  %1747 = vmatmul.mubr.f32.gmra.mrb[36].mxu1 %v1624_v57  ;;  %v2270_v57 = vld [vmem:[#allocation13 + $0xb0] sm:$0xff] }
 0x513   : > { %v1573_v59 = vpop.f32.mrb[39].mxu0  ;;  %1752 = vmatprep.mubr.f32.mxu1 %v5072_v52  ;;  %v1629_v19 = vadd.f32 %v4248_v58, %v5561_v37  ;;  %v2273_v58 = vld [vmem:[#allocation13 + $0xc8] sm:$0xff] }
 0x514   : > { %v1628_v16 = vadd.f32 %v1573_v59, %v5563_v24  ;;  %v2275_v59 = vld [vmem:[#allocation13 + $0xd8] sm:$0xff] }
 0x516   : > { %v4251_v60 = vpop.f32.mrb[40].mxu0  ;;  %1753 = vmatmul.mubr.f32.gmra.mrb[38].mxu1 %v1625_v6  ;;  %v4491_v6 = vpack.c.bf16 %v2270_v57, %v2268_v56 }
 0x517   : > { %v1583_v61 = vpop.f32.mrb[41].mxu0  ;;  %1758 = vmatprep.mubr.f32.mxu1 %v5072_v52  ;;  %v1631_v22 = vadd.f32 %v4251_v60, %v5567_v39  ;;  %v4493_v60 = vpack.c.bf16 %v2275_v59, %v2273_v58 }
 0x518   : > { %v1630_v4 = vadd.f32 %v1583_v61, %v5569_v40  ;;  %v2272_v61 = vld [vmem:[#allocation13 + $0xc0] sm:$0xff] }
 0x51a   : > { %v4254_v62 = vpop.f32.mrb[42].mxu0  ;;  %1759 = vmatmul.mubr.f32.gmra.mrb[40].mxu1 %v1626_v7  ;;  %v2274_v7 = vld [vmem:[#allocation13 + $0xd0] sm:$0xff] }
 0x51b   : > { %v1593_v63 = vpop.f32.mrb[43].mxu0  ;;  %1764 = vmatprep.mubr.f32.mxu1 %v5072_v52  ;;  %v1633_v37 = vadd.f32 %v4254_v62, %v5573_v42  ;;  %v2277_v62 = vld [vmem:[#allocation13 + $0xe8] sm:$0xff] }
 0x51c   : > { %v1632_v24 = vadd.f32 %v1593_v63, %v5575_v43  ;;  %v2279_v63 = vld [vmem:[#allocation13 + $0xf8] sm:$0xff] }
 0x51e   : > { %v4257_v0 = vpop.f32.mrb[44].mxu0  ;;  %1765 = vmatmul.mubr.f32.gmra.mrb[42].mxu1 %v1627_v13  ;;  %v4495_v13 = vpack.c.bf16 %v2274_v7, %v2272_v61 }
 0x51f   : > { %v1603_v1 = vpop.f32.mrb[45].mxu0  ;;  %1770 = vmatprep.mubr.f32.mxu1 %v5072_v52  ;;  %v1635_v39 = vadd.f32 %v4257_v0, %v5579_v34  ;;  %v2249_v34 = vld [vmem:[#allocation13 + $0x8] sm:$0xff]  ;;  %v4497_v0 = vpack.c.bf16 %v2279_v63, %v2277_v62 }
 0x520   : > { %v1634_v40 = vadd.f32 %v1603_v1, %v5581_v45  ;;  %v1987_v45 = vld [vmem:[#allocation11 + $0x1e0] sm:$0xff]  ;;  %v4469_v17 = vpack.c.bf16 %v2251_v14, %v2249_v34  ;;  %v2290_v34 = vld [vmem:[#allocation13 + $0x150] sm:$0xff]  ;;  %v2293_v14 = vld [vmem:[#allocation13 + $0x168] sm:$0xff] }
 0x521   : > { %v4467_v12 = vpack.c.bf16 %v1989_v11, %v1987_v45  ;;  %v2276_v1 = vld [vmem:[#allocation13 + $0xe0] sm:$0xff]  ;;  %v4509_v11 = vpack.c.bf16 %v2291_v10, %v2289_v9  ;;  %v4513_v18 = vpack.c.bf16 %v2295_v15, %v2293_v14 }
 0x522   : > { %v4260_v2 = vpop.f32.mrb[46].mxu0  ;;  %1771 = vmatmul.mubr.f32.gmra.mrb[44].mxu1 %v1628_v16  ;;  %4470 = vmatprep.subr.bf16.mxu1 %v4469_v17  ;;  %v2278_v16 = vld [vmem:[#allocation13 + $0xf0] sm:$0xff] }
 0x523   : > { %v1613_v3 = vpop.f32.mrb[47].mxu0  ;;  %1776 = vmatprep.mubr.f32.mxu1 %v5072_v52  ;;  %v1637_v42 = vadd.f32 %v4260_v2, %v5585_v48  ;;  %4468 = vmatpush1.bf16.msra.mxu0 %v4467_v12  ;;  %v2254_v48 = vld [vmem:[#allocation13 + $0x30] sm:$0xff]  ;;  %v2281_v2 = vld [vmem:[#allocation13 + $0x108] sm:$0xff]  ;;  %v2288_v12 = vld [vmem:[#allocation13 + $0x140] sm:$0xff] }
 0x524   : > { %v1636_v43 = vadd.f32 %v1613_v3, %v5587_v35  ;;  %v2253_v35 = vld [vmem:[#allocation13 + $0x28] sm:$0xff]  ;;  %4472 = vmatpush1.bf16.msra.mxu1 %v4471_v8  ;;  %v4475_v38 = vpack.c.bf16 %v2254_v48, %v2252_v21  ;;  %v2283_v3 = vld [vmem:[#allocation13 + $0x118] sm:$0xff]  ;;  %v4511_v17 = vpack.c.bf16 %v2290_v34, %v2288_v12 }
 0x525   : > { %v2297_v8 = vld [vmem:[#allocation13 + $0x188] sm:$0xff] }
 0x526   : > { %1777 = vmatmul.mubr.f32.gmra.mrb[46].mxu1 %v1629_v19  ;;  %v4499_v19 = vpack.c.bf16 %v2278_v16, %v2276_v1 }
 0x527   : > { %1782 = vmatprep.mubr.f32.mxu1 %v5072_v52 }
 0x52a   : > { %1783 = vmatmul.mubr.f32.gmra.mrb[48].mxu1 %v1630_v4  ;;  %v4501_v4 = vpack.c.bf16 %v2283_v3, %v2281_v2 }
 0x52b   : > { %1788 = vmatprep.mubr.f32.mxu1 %v5072_v52 }
 0x52e   : > { %1789 = vmatmul.mubr.f32.gmra.mrb[50].mxu1 %v1631_v22  ;;  %v2280_v22 = vld [vmem:[#allocation13 + $0x100] sm:$0xff] }
 0x52f   : > { %1794 = vmatprep.mubr.f32.mxu1 %v5072_v52 }
 0x532   : > { %1795 = vmatmul.mubr.f32.gmra.mrb[52].mxu1 %v1632_v24  ;;  %v2282_v24 = vld [vmem:[#allocation13 + $0x110] sm:$0xff] }
 0x533   : > { %1800 = vmatprep.mubr.f32.mxu1 %v5072_v52 }
 0x536   : > { %1801 = vmatmul.mubr.f32.gmra.mrb[54].mxu1 %v1633_v37  ;;  %v2285_v37 = vld [vmem:[#allocation13 + $0x128] sm:$0xff] }
 0x537   : > { %1806 = vmatprep.mubr.f32.mxu1 %v5072_v52 }
 0x53a   : > { %1807 = vmatmul.mubr.f32.gmra.mrb[56].mxu1 %v1634_v40  ;;  %v2287_v40 = vld [vmem:[#allocation13 + $0x138] sm:$0xff] }
 0x53b   : > { %1812 = vmatprep.mubr.f32.mxu1 %v5072_v52 }
 0x53e   : > { %1813 = vmatmul.mubr.f32.gmra.mrb[58].mxu1 %v1635_v39  ;;  %v4503_v39 = vpack.c.bf16 %v2282_v24, %v2280_v22 }
 0x53f   : > { %1818 = vmatprep.mubr.f32.mxu1 %v5072_v52 }
 0x542   : > { %1819 = vmatmul.mubr.f32.gmra.mrb[60].mxu1 %v1636_v43  ;;  %v4505_v43 = vpack.c.bf16 %v2287_v40, %v2285_v37 }
 0x543   : > { %1824 = vmatprep.mubr.f32.mxu1 %v5072_v52  ;;  %v4473_v52 = vpack.c.bf16 %v2255_v20, %v2253_v35  ;;  %v2292_v35 = vld [vmem:[#allocation13 + $0x160] sm:$0xff]  ;;  %v2294_v20 = vld [vmem:[#allocation13 + $0x170] sm:$0xff] }
 0x544   : > { %v4515_v21 = vpack.c.bf16 %v2294_v20, %v2292_v35 }
 0x545   : > { %4474 = vmatprep.subr.bf16.mxu1 %v4473_v52  ;;  %v2299_v52 = vld [vmem:[#allocation13 + $0x198] sm:$0xff] }
 0x546   : > { %1825 = vmatmul.mubr.f32.gmra.mrb[62].mxu1 %v1637_v42  ;;  %v2284_v42 = vld [vmem:[#allocation13 + $0x120] sm:$0xff]  ;;  %v4517_v48 = vpack.c.bf16 %v2299_v52, %v2297_v8 }
 0x547   : > { %4476 = vmatpush1.bf16.msra.mxu1 %v4475_v38  ;;  %v4507_v45 = vpack.c.bf16 %v2286_v5, %v2284_v42  ;;  %v2301_v38 = vld [vmem:[#allocation13 + $0x1a8] sm:$0xff] }
 0x548   : > { %4478 = vmatprep.subr.bf16.mxu1 %v4477_v25  ;;  %v2303_v25 = vld [vmem:[#allocation13 + $0x1b8] sm:$0xff] }
 0x549   : > { %v4521_v27 = vpack.c.bf16 %v2303_v25, %v2301_v38 }
 0x54b   : > { %4480 = vmatpush1.bf16.msra.mxu1 %v4479_v29  ;;  %v2305_v29 = vld [vmem:[#allocation13 + $0x1c8] sm:$0xff] }
 0x54c   : > { %4482 = vmatprep.subr.bf16.mxu1 %v4481_v32  ;;  %v2307_v32 = vld [vmem:[#allocation13 + $0x1d8] sm:$0xff] }
 0x54d   : > { %v4525_v31 = vpack.c.bf16 %v2307_v32, %v2305_v29 }
 0x54f   : > { %4484 = vmatpush1.bf16.msra.mxu1 %v4483_v46  ;;  %v4527_v46 = vpack.c.bf16 %v2306_v36, %v2304_v33 }
 0x550   : > { %4486 = vmatprep.subr.bf16.mxu1 %v4485_v47 }
 0x553   : > { %4488 = vmatpush1.bf16.msra.mxu1 %v4487_v54 }
 0x554   : > { %4490 = vmatprep.subr.bf16.mxu1 %v4489_v55 }
 0x557   : > { %4492 = vmatpush1.bf16.msra.mxu1 %v4491_v6 }
 0x558   : > { %4494 = vmatprep.subr.bf16.mxu1 %v4493_v60 }
 0x55b   : > { %4496 = vmatpush1.bf16.msra.mxu1 %v4495_v13 }
 0x55c   : > { %4498 = vmatprep.subr.bf16.mxu1 %v4497_v0 }
 0x55f   : > { %4500 = vmatpush1.bf16.msra.mxu1 %v4499_v19 }
 0x560   : > { %4502 = vmatprep.subr.bf16.mxu1 %v4501_v4 }
 0x563   : > { %4504 = vmatpush1.bf16.msra.mxu1 %v4503_v39 }
 0x564   : > { %4506 = vmatprep.subr.bf16.mxu1 %v4505_v43 }
 0x567   : > { %4508 = vmatpush1.bf16.msra.mxu1 %v4507_v45 }
 0x568   : > { %4510 = vmatprep.subr.bf16.mxu1 %v4509_v11 }
 0x56b   : > { %4512 = vmatpush1.bf16.msra.mxu1 %v4511_v17 }
 0x56c   : > { %4514 = vmatprep.subr.bf16.mxu1 %v4513_v18 }
 0x56f   : > { %4516 = vmatpush1.bf16.msra.mxu1 %v4515_v21 }
 0x570   : > { %4518 = vmatprep.subr.bf16.mxu1 %v4517_v48 }
 0x573   : > { %4520 = vmatpush1.bf16.msra.mxu1 %v4519_v28 }
 0x574   : > { %4522 = vmatprep.subr.bf16.mxu1 %v4521_v27 }
 0x577   : > { %4524 = vmatpush1.bf16.msra.mxu1 %v4523_v44 }
 0x578   : > { %4526 = vmatprep.subr.bf16.mxu1 %v4525_v31 }
 0x57b   : > { %4528 = vmatpush1.bf16.msra.mxu1 %v4527_v46 }
 0x5dd   : > { %v1736_v47 = vpop.f32.mrb[32].mxu1 }
 0x5de   : > { %v1863_v49 = vmul.f32 0.2, %v1736_v47  ;;  %v1738_v50 = vpop.f32.mrb[33].mxu1  ;;  %vm1831_vm4 = vcmp.gt.f32.partialorder %v1736_v47, 0.0 }
 0x5df   : > { %vm1832_vm5 = vcmp.gt.f32.partialorder %v1738_v50, 0.0  ;;  %v1864_v51 = vmul.f32 0.2, %v1738_v50 }
 0x5e0   : > { %v5625_v55 = vsel %vm1831_vm4, %v1736_v47, %v1863_v49 }
 0x5e1   : > { %v1742_v53 = vpop.f32.mrb[34].mxu1  ;;  %v5623_v54 = vsel %vm1832_vm5, %v1738_v50, %v1864_v51 }
 0x5e2   : > { %v1865_v56 = vmul.f32 0.2, %v1742_v53  ;;  %v1744_v57 = vpop.f32.mrb[35].mxu1  ;;  %2055 = vmatprep.mubr.f32.mxu0 %v5623_v54  ;;  %vm1833_vm6 = vcmp.gt.f32.partialorder %v1742_v53, 0.0 }
 0x5e3   : > { %vm1834_vm7 = vcmp.gt.f32.partialorder %v1744_v57, 0.0  ;;  %v1866_v58 = vmul.f32 0.2, %v1744_v57  ;;  %2056 = vmatmul.mubr.f32.vlgmr.msra.gmra.mrb[48].mxu0 %v5625_v55 }
 0x5e4   : > { %v5632_v7 = vsel %vm1833_vm6, %v1742_v53, %v1865_v56 }
 0x5e5   : > { %v1748_v59 = vpop.f32.mrb[36].mxu1  ;;  %v5629_v6 = vsel %vm1834_vm7, %v1744_v57, %v1866_v58 }
 0x5e6   : > { %v1867_v60 = vmul.f32 0.2, %v1748_v59  ;;  %v1750_v61 = vpop.f32.mrb[37].mxu1  ;;  %2061 = vmatprep.mubr.f32.mxu0 %v5629_v6  ;;  %vm1835_vm8 = vcmp.gt.f32.partialorder %v1748_v59, 0.0 }
 0x5e7   : > { %vm1836_vm9 = vcmp.gt.f32.partialorder %v1750_v61, 0.0  ;;  %v1868_v62 = vmul.f32 0.2, %v1750_v61  ;;  %2062 = vmatmul.mubr.f32.gmra.mrb[50].mxu0 %v5632_v7 }
 0x5e8   : > { %v5638_v16 = vsel %vm1835_vm8, %v1748_v59, %v1867_v60 }
 0x5e9   : > { %v1754_v63 = vpop.f32.mrb[38].mxu1  ;;  %v5635_v13 = vsel %vm1836_vm9, %v1750_v61, %v1868_v62 }
 0x5ea   : > { %v1869_v0 = vmul.f32 0.2, %v1754_v63  ;;  %v1756_v1 = vpop.f32.mrb[39].mxu1  ;;  %2067 = vmatprep.mubr.f32.mxu0 %v5635_v13  ;;  %vm1837_vm10 = vcmp.gt.f32.partialorder %v1754_v63, 0.0 }
 0x5eb   : > { %vm1838_vm11 = vcmp.gt.f32.partialorder %v1756_v1, 0.0  ;;  %v1870_v2 = vmul.f32 0.2, %v1756_v1  ;;  %2068 = vmatmul.mubr.f32.gmra.mrb[52].mxu0 %v5638_v16 }
 0x5ec   : > { %v5644_v24 = vsel %vm1837_vm10, %v1754_v63, %v1869_v0 }
 0x5ed   : > { %v1760_v3 = vpop.f32.mrb[40].mxu1  ;;  %v5641_v19 = vsel %vm1838_vm11, %v1756_v1, %v1870_v2 }
 0x5ee   : > { %v1871_v4 = vmul.f32 0.2, %v1760_v3  ;;  %v1762_v22 = vpop.f32.mrb[41].mxu1  ;;  %2073 = vmatprep.mubr.f32.mxu0 %v5641_v19  ;;  %vm1839_vm12 = vcmp.gt.f32.partialorder %v1760_v3, 0.0 }
 0x5ef   : > { %vm1840_vm13 = vcmp.gt.f32.partialorder %v1762_v22, 0.0  ;;  %v1872_v37 = vmul.f32 0.2, %v1762_v22  ;;  %2074 = vmatmul.mubr.f32.gmra.mrb[54].mxu0 %v5644_v24 }
 0x5f0   : > { %v5650_v5 = vsel %vm1839_vm12, %v1760_v3, %v1871_v4 }
 0x5f1   : > { %v1766_v40 = vpop.f32.mrb[42].mxu1  ;;  %v5647_v39 = vsel %vm1840_vm13, %v1762_v22, %v1872_v37 }
 0x5f2   : > { %v1873_v43 = vmul.f32 0.2, %v1766_v40  ;;  %v1768_v42 = vpop.f32.mrb[43].mxu1  ;;  %2079 = vmatprep.mubr.f32.mxu0 %v5647_v39  ;;  %vm1841_vm14 = vcmp.gt.f32.partialorder %v1766_v40, 0.0 }
 0x5f3   : > { %vm1842_vm15 = vcmp.gt.f32.partialorder %v1768_v42, 0.0  ;;  %v1874_v9 = vmul.f32 0.2, %v1768_v42  ;;  %2080 = vmatmul.mubr.f32.gmra.mrb[56].mxu0 %v5650_v5 }
 0x5f4   : > { %v5656_v34 = vsel %vm1841_vm14, %v1766_v40, %v1873_v43 }
 0x5f5   : > { %v1772_v10 = vpop.f32.mrb[44].mxu1  ;;  %v5653_v45 = vsel %vm1842_vm15, %v1768_v42, %v1874_v9 }
 0x5f6   : > { %v1875_v11 = vmul.f32 0.2, %v1772_v10  ;;  %v1774_v12 = vpop.f32.mrb[45].mxu1  ;;  %2085 = vmatprep.mubr.f32.mxu0 %v5653_v45  ;;  %vm1843_vm1 = vcmp.gt.f32.partialorder %v1772_v10, 0.0 }
 0x5f7   : > { %vm1844_vm2 = vcmp.gt.f32.partialorder %v1774_v12, 0.0  ;;  %v1876_v14 = vmul.f32 0.2, %v1774_v12  ;;  %2086 = vmatmul.mubr.f32.gmra.mrb[58].mxu0 %v5656_v34 }
 0x5f8   : > { %v5662_v20 = vsel %vm1843_vm1, %v1772_v10, %v1875_v11 }
 0x5f9   : > { %v1778_v15 = vpop.f32.mrb[46].mxu1  ;;  %v5659_v17 = vsel %vm1844_vm2, %v1774_v12, %v1876_v14 }
 0x5fa   : > { %v1877_v18 = vmul.f32 0.2, %v1778_v15  ;;  %v1780_v35 = vpop.f32.mrb[47].mxu1  ;;  %2091 = vmatprep.mubr.f32.mxu0 %v5659_v17  ;;  %vm1845_vm3 = vcmp.gt.f32.partialorder %v1778_v15, 0.0 }
 0x5fb   : > { %vm1846_vm4 = vcmp.gt.f32.partialorder %v1780_v35, 0.0  ;;  %v1878_v8 = vmul.f32 0.2, %v1780_v35  ;;  %2092 = vmatmul.mubr.f32.gmra.mrb[60].mxu0 %v5662_v20 }
 0x5fc   : > { %v5668_v26 = vsel %vm1845_vm3, %v1778_v15, %v1877_v18 }
 0x5fd   : > { %v1784_v52 = vpop.f32.mrb[48].mxu1  ;;  %v5665_v21 = vsel %vm1846_vm4, %v1780_v35, %v1878_v8 }
 0x5fe   : > { %v1879_v48 = vmul.f32 0.2, %v1784_v52  ;;  %v1786_v23 = vpop.f32.mrb[49].mxu1  ;;  %2097 = vmatprep.mubr.f32.mxu0 %v5665_v21  ;;  %vm1847_vm5 = vcmp.gt.f32.partialorder %v1784_v52, 0.0 }
 0x5ff   : > { %vm1848_vm6 = vcmp.gt.f32.partialorder %v1786_v23, 0.0  ;;  %v1880_v38 = vmul.f32 0.2, %v1786_v23  ;;  %2098 = vmatmul.mubr.f32.gmra.mrb[62].mxu0 %v5668_v26 }
 0x600   : > { %v5674_v30 = vsel %vm1847_vm5, %v1784_v52, %v1879_v48  ;;  %v2309_v52 = vld [vmem:[#allocation13 + $0x1e8] sm:$0xff]  ;;  %v2311_v48 = vld [vmem:[#allocation13 + $0x1f8] sm:$0xff] }
 0x601   : > { %v1790_v25 = vpop.f32.mrb[50].mxu1  ;;  %v5671_v28 = vsel %vm1848_vm6, %v1786_v23, %v1880_v38  ;;  %v4529_v23 = vpack.c.bf16 %v2311_v48, %v2309_v52  ;;  %v2308_v38 = vld [vmem:[#allocation13 + $0x1e0] sm:$0xff]  ;;  %v2538_v52 = vld [vmem:[%s6451_s9 + $0x108] sm:$0xff] }
 0x602   : > { %v1881_v27 = vmul.f32 0.2, %v1790_v25  ;;  %v1792_v41 = vpop.f32.mrb[51].mxu1  ;;  %2103 = vmatprep.mubr.f32.mxu0 %v5671_v28  ;;  %vm1849_vm7 = vcmp.gt.f32.partialorder %v1790_v25, 0.0  ;;  %v2542_v48 = vld [vmem:[%s6451_s9 + $0x128] sm:$0xff] }
 0x603   : > { %vm1850_vm8 = vcmp.gt.f32.partialorder %v1792_v41, 0.0  ;;  %v1882_v29 = vmul.f32 0.2, %v1792_v41  ;;  %2104 = vmatmul.mubr.f32.gmra.mrb[64].mxu0 %v5674_v30  ;;  %4530 = vmatprep.subr.bf16.mxu1 %v4529_v23 }
 0x604   : > { %v5680_v36 = vsel %vm1849_vm7, %v1790_v25, %v1881_v27  ;;  %v2310_v25 = vld [vmem:[#allocation13 + $0x1f0] sm:$0xff] }
 0x605   : > { %v1796_v32 = vpop.f32.mrb[52].mxu1  ;;  %v5677_v44 = vsel %vm1850_vm8, %v1792_v41, %v1882_v29  ;;  %v4531_v27 = vpack.c.bf16 %v2310_v25, %v2308_v38  ;;  %v2506_v41 = vld [vmem:[%s6451_s9 + $0x8] sm:$0xff]  ;;  %v4549_v38 = vpack.c.bf16 %v2542_v48, %v2538_v52  ;;  %v2537_v25 = vld [vmem:[%s6451_s9 + $0x100] sm:$0xff] }
 0x606   : > { %v1883_v31 = vmul.f32 0.2, %v1796_v32  ;;  %v1798_v33 = vpop.f32.mrb[53].mxu1  ;;  %2109 = vmatprep.mubr.f32.mxu0 %v5677_v44  ;;  %vm1851_vm9 = vcmp.gt.f32.partialorder %v1796_v32, 0.0  ;;  %v2510_v29 = vld [vmem:[%s6451_s9 + $0x28] sm:$0xff] }
 0x607   : > { %vm1852_vm10 = vcmp.gt.f32.partialorder %v1798_v33, 0.0  ;;  %v1884_v46 = vmul.f32 0.2, %v1798_v33  ;;  %2110 = vmatmul.mubr.f32.gmra.mrb[66].mxu0 %v5680_v36  ;;  %4532 = vmatpush1.bf16.msra.mxu1 %v4531_v27  ;;  %v2541_v27 = vld [vmem:[%s6451_s9 + $0x120] sm:$0xff] }
 0x608   : > { %v5686_v53 = vsel %vm1851_vm9, %v1796_v32, %v1883_v31  ;;  %v2505_v32 = vld [vmem:[%s6451_s9] sm:$0xff]  ;;  %v4533_v31 = vpack.c.bf16 %v2510_v29, %v2506_v41  ;;  %v2546_v41 = vld [vmem:[%s6451_s9 + $0x148] sm:$0xff] }
 0x609   : > { %v1802_v47 = vpop.f32.mrb[54].mxu1  ;;  %v5683_v49 = vsel %vm1852_vm10, %v1798_v33, %v1884_v46  ;;  %v2509_v33 = vld [vmem:[%s6451_s9 + $0x20] sm:$0xff]  ;;  %v2508_v46 = vld [vmem:[%s6451_s9 + $0x18] sm:$0xff]  ;;  %v2550_v29 = vld [vmem:[%s6451_s9 + $0x168] sm:$0xff] }
 0x60a   : > { %v1885_v50 = vmul.f32 0.2, %v1802_v47  ;;  %v1804_v51 = vpop.f32.mrb[55].mxu1  ;;  %2115 = vmatprep.mubr.f32.mxu0 %v5683_v49  ;;  %vm1853_vm11 = vcmp.gt.f32.partialorder %v1802_v47, 0.0  ;;  %4534 = vmatprep.subr.bf16.mxu0 %v4533_v31  ;;  %v4553_v31 = vpack.c.bf16 %v2550_v29, %v2546_v41 }
 0x60b   : > { %vm1854_vm12 = vcmp.gt.f32.partialorder %v1804_v51, 0.0  ;;  %v1886_v56 = vmul.f32 0.2, %v1804_v51  ;;  %2116 = vmatmul.mubr.f32.gmra.mrb[68].mxu0 %v5686_v53 }
 0x60c   : > { %v5692_v61 = vsel %vm1853_vm11, %v1802_v47, %v1885_v50  ;;  %v2512_v47 = vld [vmem:[%s6451_s9 + $0x38] sm:$0xff]  ;;  %v4535_v50 = vpack.c.bf16 %v2509_v33, %v2505_v32  ;;  %v4551_v32 = vpack.c.bf16 %v2541_v27, %v2537_v25  ;;  %v2545_v33 = vld [vmem:[%s6451_s9 + $0x140] sm:$0xff]  ;;  %v2586_v25 = vld [vmem:[%s6451_s9 + $0x288] sm:$0xff] }
 0x60d   : > { %v1808_v57 = vpop.f32.mrb[56].mxu1  ;;  %v5689_v58 = vsel %vm1854_vm12, %v1804_v51, %v1886_v56  ;;  %v4597_v51 = vpack.c.bf16 %v2512_v47, %v2508_v46  ;;  %v2514_v56 = vld [vmem:[%s6451_s9 + $0x48] sm:$0xff]  ;;  %v2549_v46 = vld [vmem:[%s6451_s9 + $0x160] sm:$0xff] }
 0x60e   : > { %v1887_v59 = vmul.f32 0.2, %v1808_v57  ;;  %v1810_v60 = vpop.f32.mrb[57].mxu1  ;;  %2121 = vmatprep.mubr.f32.mxu0 %v5689_v58  ;;  %vm1855_vm13 = vcmp.gt.f32.partialorder %v1808_v57, 0.0  ;;  %4536 = vmatpush1.bf16.msra.mxu0 %v4535_v50  ;;  %v2554_v47 = vld [vmem:[%s6451_s9 + $0x188] sm:$0xff] }
 0x60f   : > { %vm1856_vm14 = vcmp.gt.f32.partialorder %v1810_v60, 0.0  ;;  %v1888_v62 = vmul.f32 0.2, %v1810_v60  ;;  %2122 = vmatmul.mubr.f32.gmra.mrb[70].mxu0 %v5692_v61  ;;  %4598 = vmatprep.subr.bf16.mxu1 %v4597_v51  ;;  %v2558_v50 = vld [vmem:[%s6451_s9 + $0x1a8] sm:$0xff]  ;;  %v4555_v51 = vpack.c.bf16 %v2549_v46, %v2545_v33 }
 0x610   : > { %v5698_v3 = vsel %vm1855_vm13, %v1808_v57, %v1887_v59  ;;  %v2518_v57 = vld [vmem:[%s6451_s9 + $0x68] sm:$0xff]  ;;  %v2513_v59 = vld [vmem:[%s6451_s9 + $0x40] sm:$0xff] }
 0x611   : > { %v1814_v63 = vpop.f32.mrb[58].mxu1  ;;  %v5695_v0 = vsel %vm1856_vm14, %v1810_v60, %v1888_v62  ;;  %v2517_v60 = vld [vmem:[%s6451_s9 + $0x60] sm:$0xff]  ;;  %v4537_v62 = vpack.c.bf16 %v2518_v57, %v2514_v56  ;;  %v4557_v56 = vpack.c.bf16 %v2558_v50, %v2554_v47  ;;  %v2590_v27 = vld [vmem:[%s6451_s9 + $0x2a8] sm:$0xff] }
 0x612   : > { %v1889_v1 = vmul.f32 0.2, %v1814_v63  ;;  %v1816_v2 = vpop.f32.mrb[59].mxu1  ;;  %2127 = vmatprep.mubr.f32.mxu0 %v5695_v0  ;;  %vm1857_vm15 = vcmp.gt.f32.partialorder %v1814_v63, 0.0  ;;  %v2553_v57 = vld [vmem:[%s6451_s9 + $0x180] sm:$0xff]  ;;  %v4573_v29 = vpack.c.bf16 %v2590_v27, %v2586_v25  ;;  %v2594_v33 = vld [vmem:[%s6451_s9 + $0x2c8] sm:$0xff] }
 0x613   : > { %vm1858_vm1 = vcmp.gt.f32.partialorder %v1816_v2, 0.0  ;;  %v1890_v4 = vmul.f32 0.2, %v1816_v2  ;;  %2128 = vmatmul.mubr.f32.gmra.mrb[72].mxu0 %v5698_v3  ;;  %4538 = vmatprep.subr.bf16.mxu0 %v4537_v62  ;;  %v2566_v62 = vld [vmem:[%s6451_s9 + $0x1e8] sm:$0xff]  ;;  %v2507_v25 = vld [vmem:[%s6451_s9 + $0x10] sm:$0xff] }
 0x614   : > { %v5704_v42 = vsel %vm1857_vm15, %v1814_v63, %v1889_v1  ;;  %v4539_v63 = vpack.c.bf16 %v2517_v60, %v2513_v59  ;;  %v2522_v1 = vld [vmem:[%s6451_s9 + $0x88] sm:$0xff]  ;;  %v2557_v59 = vld [vmem:[%s6451_s9 + $0x1a0] sm:$0xff]  ;;  %v2511_v27 = vld [vmem:[%s6451_s9 + $0x30] sm:$0xff] }
 0x615   : > { %v1820_v22 = vpop.f32.mrb[60].mxu1  ;;  %v5701_v37 = vsel %vm1858_vm1, %v1816_v2, %v1890_v4  ;;  %v2526_v2 = vld [vmem:[%s6451_s9 + $0xa8] sm:$0xff] }
 0x616   : > { %v1891_v40 = vmul.f32 0.2, %v1820_v22  ;;  %v1822_v43 = vpop.f32.mrb[61].mxu1  ;;  %2133 = vmatprep.mubr.f32.mxu0 %v5701_v37  ;;  %vm1859_vm2 = vcmp.gt.f32.partialorder %v1820_v22, 0.0  ;;  %v4541_v4 = vpack.c.bf16 %v2526_v2, %v2522_v1  ;;  %4540 = vmatpush1.bf16.msra.mxu0 %v4539_v63  ;;  %v2562_v60 = vld [vmem:[%s6451_s9 + $0x1c8] sm:$0xff]  ;;  %v4559_v63 = vpack.c.bf16 %v2557_v59, %v2553_v57  ;;  %v2561_v2 = vld [vmem:[%s6451_s9 + $0x1c0] sm:$0xff] }
 0x617   : > { %vm1860_vm3 = vcmp.gt.f32.partialorder %v1822_v43, 0.0  ;;  %v1892_v9 = vmul.f32 0.2, %v1822_v43  ;;  %2134 = vmatmul.mubr.f32.gmra.mrb[74].mxu0 %v5704_v42  ;;  %v4561_v1 = vpack.c.bf16 %v2566_v62, %v2562_v60  ;;  %v2598_v46 = vld [vmem:[%s6451_s9 + $0x2e8] sm:$0xff] }
 0x618   : > { %v5710_v15 = vsel %vm1859_vm2, %v1820_v22, %v1891_v40  ;;  %v2521_v22 = vld [vmem:[%s6451_s9 + $0x80] sm:$0xff]  ;;  %4542 = vmatprep.subr.bf16.mxu0 %v4541_v4  ;;  %v4577_v50 = vpack.c.bf16 %v2598_v46, %v2594_v33  ;;  %v2602_v57 = vld [vmem:[%s6451_s9 + $0x308] sm:$0xff]  ;;  %v4599_v46 = vpack.c.bf16 %v2511_v27, %v2507_v25 }
 0x619   : > { %v1826_v10 = vpop.f32.mrb[62].mxu1  ;;  %v5707_v11 = vsel %vm1860_vm3, %v1822_v43, %v1892_v9  ;;  %v2525_v40 = vld [vmem:[%s6451_s9 + $0xa0] sm:$0xff]  ;;  %v2530_v9 = vld [vmem:[%s6451_s9 + $0xc8] sm:$0xff] }
 0x61a   : > { %v1893_v12 = vmul.f32 0.2, %v1826_v10  ;;  %v1828_v14 = vpop.f32.mrb[63].mxu1  ;;  %2139 = vmatprep.mubr.f32.mxu0 %v5707_v11  ;;  %vm1861_vm4 = vcmp.gt.f32.partialorder %v1826_v10, 0.0  ;;  %v4543_v43 = vpack.c.bf16 %v2525_v40, %v2521_v22  ;;  %v2565_v4 = vld [vmem:[%s6451_s9 + $0x1e0] sm:$0xff]  ;;  %v2570_v22 = vld [vmem:[%s6451_s9 + $0x208] sm:$0xff] }
 0x61b   : > { %vm1862_vm5 = vcmp.gt.f32.partialorder %v1828_v14, 0.0  ;;  %v1894_v18 = vmul.f32 0.2, %v1828_v14  ;;  %2140 = vmatmul.mubr.f32.gmra.mrb[76].mxu0 %v5710_v15  ;;  %v2574_v40 = vld [vmem:[%s6451_s9 + $0x228] sm:$0xff] }
 0x61c   : > { %v5716_v8 = vsel %vm1861_vm4, %v1826_v10, %v1893_v12  ;;  %v2534_v10 = vld [vmem:[%s6451_s9 + $0xe8] sm:$0xff]  ;;  %4544 = vmatpush1.bf16.msra.mxu0 %v4543_v43  ;;  %v4563_v43 = vpack.c.bf16 %v2565_v4, %v2561_v2 }
 0x61d   : > { %v5713_v35 = vsel %vm1862_vm5, %v1828_v14, %v1894_v18  ;;  %v4545_v12 = vpack.c.bf16 %v2534_v10, %v2530_v9  ;;  %v2529_v14 = vld [vmem:[%s6451_s9 + $0xc0] sm:$0xff]  ;;  %v4565_v9 = vpack.c.bf16 %v2574_v40, %v2570_v22  ;;  %v2606_v59 = vld [vmem:[%s6451_s9 + $0x328] sm:$0xff] }
 0x61e   : > { %2145 = vmatprep.mubr.f32.mxu0 %v5713_v35  ;;  %v2533_v18 = vld [vmem:[%s6451_s9 + $0xe0] sm:$0xff]  ;;  %v4581_v62 = vpack.c.bf16 %v2606_v59, %v2602_v57  ;;  %v2610_v2 = vld [vmem:[%s6451_s9 + $0x348] sm:$0xff]  ;;  %v2519_v57 = vld [vmem:[%s6451_s9 + $0x70] sm:$0xff] }
 0x61f   : > { %2146 = vmatmul.mubr.f32.gmra.mrb[78].mxu0 %v5716_v8  ;;  %v4547_v23 = vpack.c.bf16 %v2533_v18, %v2529_v14  ;;  %4546 = vmatprep.subr.bf16.mxu0 %v4545_v12  ;;  %v2569_v10 = vld [vmem:[%s6451_s9 + $0x200] sm:$0xff]  ;;  %v2578_v14 = vld [vmem:[%s6451_s9 + $0x248] sm:$0xff] }
 0x620   : > { %v2573_v12 = vld [vmem:[%s6451_s9 + $0x220] sm:$0xff]  ;;  %v2582_v18 = vld [vmem:[%s6451_s9 + $0x268] sm:$0xff] }
 0x621   : > { %4548 = vmatpush1.bf16.msra.mxu0 %v4547_v23  ;;  %v4567_v52 = vpack.c.bf16 %v2573_v12, %v2569_v10  ;;  %v4569_v48 = vpack.c.bf16 %v2582_v18, %v2578_v14  ;;  %v2577_v23 = vld [vmem:[%s6451_s9 + $0x240] sm:$0xff]  ;;  %v2614_v4 = vld [vmem:[%s6451_s9 + $0x368] sm:$0xff] }
 0x622   : > { %4550 = vmatprep.subr.bf16.mxu0 %v4549_v38  ;;  %v2581_v38 = vld [vmem:[%s6451_s9 + $0x260] sm:$0xff]  ;;  %v4585_v40 = vpack.c.bf16 %v2614_v4, %v2610_v2  ;;  %v2618_v10 = vld [vmem:[%s6451_s9 + $0x388] sm:$0xff] }
 0x623   : > { %v4571_v41 = vpack.c.bf16 %v2581_v38, %v2577_v23  ;;  %v2622_v12 = vld [vmem:[%s6451_s9 + $0x3a8] sm:$0xff] }
 0x624   : > { %v4589_v18 = vpack.c.bf16 %v2622_v12, %v2618_v10  ;;  %v2527_v10 = vld [vmem:[%s6451_s9 + $0xb0] sm:$0xff] }
 0x625   : > { %4552 = vmatpush1.bf16.msra.mxu0 %v4551_v32  ;;  %v2585_v32 = vld [vmem:[%s6451_s9 + $0x280] sm:$0xff] }
 0x626   : > { %4554 = vmatprep.subr.bf16.mxu0 %v4553_v31  ;;  %v2589_v31 = vld [vmem:[%s6451_s9 + $0x2a0] sm:$0xff] }
 0x627   : > { %v4575_v47 = vpack.c.bf16 %v2589_v31, %v2585_v32  ;;  %v2516_v32 = vld [vmem:[%s6451_s9 + $0x58] sm:$0xff] }
 0x628   : > { %v2520_v31 = vld [vmem:[%s6451_s9 + $0x78] sm:$0xff] }
 0x629   : > { %4556 = vmatpush1.bf16.msra.mxu0 %v4555_v51  ;;  %v2593_v51 = vld [vmem:[%s6451_s9 + $0x2c0] sm:$0xff] }
 0x62a   : > { %4558 = vmatprep.subr.bf16.mxu0 %v4557_v56  ;;  %v2597_v56 = vld [vmem:[%s6451_s9 + $0x2e0] sm:$0xff] }
 0x62b   : > { %v4579_v60 = vpack.c.bf16 %v2597_v56, %v2593_v51  ;;  %v4601_v51 = vpack.c.bf16 %v2520_v31, %v2516_v32  ;;  %v2515_v56 = vld [vmem:[%s6451_s9 + $0x50] sm:$0xff] }
 0x62c   : > { %v4603_v4 = vpack.c.bf16 %v2519_v57, %v2515_v56  ;;  %v2535_v32 = vld [vmem:[%s6451_s9 + $0xf0] sm:$0xff] }
 0x62d   : > { %4560 = vmatpush1.bf16.msra.mxu0 %v4559_v63  ;;  %v2601_v63 = vld [vmem:[%s6451_s9 + $0x300] sm:$0xff] }
 0x62e   : > { %4562 = vmatprep.subr.bf16.mxu0 %v4561_v1  ;;  %v2605_v1 = vld [vmem:[%s6451_s9 + $0x320] sm:$0xff] }
 0x62f   : > { %v4583_v22 = vpack.c.bf16 %v2605_v1, %v2601_v63  ;;  %v2524_v63 = vld [vmem:[%s6451_s9 + $0x98] sm:$0xff] }
 0x630   : > { %v2528_v1 = vld [vmem:[%s6451_s9 + $0xb8] sm:$0xff] }
 0x631   : > { %4564 = vmatpush1.bf16.msra.mxu0 %v4563_v43  ;;  %v2609_v43 = vld [vmem:[%s6451_s9 + $0x340] sm:$0xff] }
 0x632   : > { %4566 = vmatprep.subr.bf16.mxu0 %v4565_v9  ;;  %v2613_v9 = vld [vmem:[%s6451_s9 + $0x360] sm:$0xff] }
 0x633   : > { %v4587_v14 = vpack.c.bf16 %v2613_v9, %v2609_v43  ;;  %v4605_v43 = vpack.c.bf16 %v2528_v1, %v2524_v63  ;;  %v2523_v9 = vld [vmem:[%s6451_s9 + $0x90] sm:$0xff] }
 0x634   : > { %v2543_v63 = vld [vmem:[%s6451_s9 + $0x130] sm:$0xff] }
 0x635   : > { %4568 = vmatpush1.bf16.msra.mxu0 %v4567_v52  ;;  %v2617_v52 = vld [vmem:[%s6451_s9 + $0x380] sm:$0xff] }
 0x636   : > { %4570 = vmatprep.subr.bf16.mxu0 %v4569_v48  ;;  %v2621_v48 = vld [vmem:[%s6451_s9 + $0x3a0] sm:$0xff] }
 0x637   : > { %v4591_v23 = vpack.c.bf16 %v2621_v48, %v2617_v52  ;;  %v2532_v52 = vld [vmem:[%s6451_s9 + $0xd8] sm:$0xff] }
 0x638   : > { %v2536_v48 = vld [vmem:[%s6451_s9 + $0xf8] sm:$0xff] }
 0x639   : > { %4572 = vmatpush1.bf16.msra.mxu0 %v4571_v41 }
 0x63a   : > { %4574 = vmatprep.subr.bf16.mxu0 %v4573_v29 }
 0x63d   : > { %4576 = vmatpush1.bf16.msra.mxu0 %v4575_v47 }
 0x63e   : > { %4578 = vmatprep.subr.bf16.mxu0 %v4577_v50 }
 0x641   : > { %4580 = vmatpush1.bf16.msra.mxu0 %v4579_v60 }
 0x642   : > { %4582 = vmatprep.subr.bf16.mxu0 %v4581_v62 }
 0x645   : > { %4584 = vmatpush1.bf16.msra.mxu0 %v4583_v22 }
 0x646   : > { %4586 = vmatprep.subr.bf16.mxu0 %v4585_v40 }
 0x649   : > { %4588 = vmatpush1.bf16.msra.mxu0 %v4587_v14 }
 0x64a   : > { %4590 = vmatprep.subr.bf16.mxu0 %v4589_v18 }
 0x64d   : > { %4592 = vmatpush1.bf16.msra.mxu0 %v4591_v23 }
 0x6b6   : > { %v2057_v38 = vpop.f32.mrb[48].mxu0 }
 0x6b7   : > { %v2184_v41 = vmul.f32 0.2, %v2057_v38  ;;  %v2059_v29 = vpop.f32.mrb[49].mxu0  ;;  %vm2152_vm6 = vcmp.gt.f32.partialorder %v2057_v38, 0.0 }
 0x6b8   : > { %vm2153_vm7 = vcmp.gt.f32.partialorder %v2059_v29, 0.0  ;;  %v2185_v33 = vmul.f32 0.2, %v2059_v29 }
 0x6b9   : > { %v2216_v59 = vsel %vm2152_vm6, %v2057_v38, %v2184_v41  ;;  %v4607_v38 = vpack.c.bf16 %v2527_v10, %v2523_v9  ;;  %v4609_v41 = vpack.c.bf16 %v2536_v48, %v2532_v52  ;;  %v2551_v52 = vld [vmem:[%s6451_s9 + $0x170] sm:$0xff] }
 0x6ba   : > { %v2063_v47 = vpop.f32.mrb[50].mxu0  ;;  %v2217_v50 = vsel %vm2153_vm7, %v2059_v29, %v2185_v33  ;;  %v2531_v29 = vld [vmem:[%s6451_s9 + $0xd0] sm:$0xff] }
 0x6bb   : > { %v2186_v60 = vmul.f32 0.2, %v2063_v47  ;;  %v2065_v62 = vpop.f32.mrb[51].mxu0  ;;  %2376 = vmatprep.mubr.f32.mxu1 %v2217_v50  ;;  %vm2154_vm8 = vcmp.gt.f32.partialorder %v2063_v47, 0.0  ;;  %v2544_v50 = vld [vmem:[%s6451_s9 + $0x138] sm:$0xff]  ;;  %v4611_v56 = vpack.c.bf16 %v2535_v32, %v2531_v29 }
 0x6bc   : > { %vm2155_vm9 = vcmp.gt.f32.partialorder %v2065_v62, 0.0  ;;  %v2187_v2 = vmul.f32 0.2, %v2065_v62  ;;  %2377 = vmatmul.mubr.f32.vlgmr.msra.gmra.mrb[64].mxu1 %v2216_v59 }
 0x6bd   : > { %4600 = vmatpush1.bf16.msra.mxu1 %v4599_v46  ;;  %v2218_v18 = vsel %vm2154_vm8, %v2063_v47, %v2186_v60  ;;  %v2540_v47 = vld [vmem:[%s6451_s9 + $0x118] sm:$0xff] }
 0x6be   : > { %v2069_v22 = vpop.f32.mrb[52].mxu0  ;;  %v2219_v40 = vsel %vm2155_vm9, %v2065_v62, %v2187_v2  ;;  %4602 = vmatprep.subr.bf16.mxu1 %v4601_v51  ;;  %v4613_v60 = vpack.c.bf16 %v2544_v50, %v2540_v47  ;;  %v2539_v62 = vld [vmem:[%s6451_s9 + $0x110] sm:$0xff] }
 0x6bf   : > { %v2188_v12 = vmul.f32 0.2, %v2069_v22  ;;  %v2071_v14 = vpop.f32.mrb[53].mxu0  ;;  %2382 = vmatprep.mubr.f32.mxu1 %v2219_v40  ;;  %vm2156_vm10 = vcmp.gt.f32.partialorder %v2069_v22, 0.0  ;;  %v2552_v40 = vld [vmem:[%s6451_s9 + $0x178] sm:$0xff]  ;;  %v4615_v9 = vpack.c.bf16 %v2543_v63, %v2539_v62  ;;  %v2559_v47 = vld [vmem:[%s6451_s9 + $0x1b0] sm:$0xff] }
 0x6c0   : > { %vm2157_vm11 = vcmp.gt.f32.partialorder %v2071_v14, 0.0  ;;  %v2189_v23 = vmul.f32 0.2, %v2071_v14  ;;  %2383 = vmatmul.mubr.f32.gmra.mrb[66].mxu1 %v2218_v18  ;;  %v2547_v18 = vld [vmem:[%s6451_s9 + $0x150] sm:$0xff] }
 0x6c1   : > { %4604 = vmatpush1.bf16.msra.mxu1 %v4603_v4  ;;  %v2220_v46 = vsel %vm2156_vm10, %v2069_v22, %v2188_v12  ;;  %v2548_v22 = vld [vmem:[%s6451_s9 + $0x158] sm:$0xff]  ;;  %v4619_v29 = vpack.c.bf16 %v2551_v52, %v2547_v18 }
 0x6c2   : > { %v2075_v25 = vpop.f32.mrb[54].mxu0  ;;  %v2221_v27 = vsel %vm2157_vm11, %v2071_v14, %v2189_v23  ;;  %4606 = vmatprep.subr.bf16.mxu1 %v4605_v43  ;;  %v4617_v14 = vpack.c.bf16 %v2552_v40, %v2548_v22  ;;  %v2567_v22 = vld [vmem:[%s6451_s9 + $0x1f0] sm:$0xff] }
 0x6c3   : > { %v2190_v31 = vmul.f32 0.2, %v2075_v25  ;;  %v2077_v33 = vpop.f32.mrb[55].mxu0  ;;  %2388 = vmatprep.mubr.f32.mxu1 %v2221_v27  ;;  %vm2158_vm12 = vcmp.gt.f32.partialorder %v2075_v25, 0.0  ;;  %v2560_v27 = vld [vmem:[%s6451_s9 + $0x1b8] sm:$0xff] }
 0x6c4   : > { %vm2159_vm13 = vcmp.gt.f32.partialorder %v2077_v33, 0.0  ;;  %v2191_v51 = vmul.f32 0.2, %v2077_v33  ;;  %2389 = vmatmul.mubr.f32.gmra.mrb[68].mxu1 %v2220_v46  ;;  %v2555_v46 = vld [vmem:[%s6451_s9 + $0x190] sm:$0xff] }
 0x6c5   : > { %4608 = vmatpush1.bf16.msra.mxu1 %v4607_v38  ;;  %v2222_v4 = vsel %vm2158_vm12, %v2075_v25, %v2190_v31  ;;  %v2556_v25 = vld [vmem:[%s6451_s9 + $0x198] sm:$0xff]  ;;  %v4623_v62 = vpack.c.bf16 %v2559_v47, %v2555_v46 }
 0x6c6   : > { %v2081_v57 = vpop.f32.mrb[56].mxu0  ;;  %v2223_v59 = vsel %vm2159_vm13, %v2077_v33, %v2191_v51  ;;  %4610 = vmatprep.subr.bf16.mxu1 %v4609_v41  ;;  %v4621_v33 = vpack.c.bf16 %v2560_v27, %v2556_v25  ;;  %v2575_v25 = vld [vmem:[%s6451_s9 + $0x230] sm:$0xff] }
 0x6c7   : > { %v2192_v1 = vmul.f32 0.2, %v2081_v57  ;;  %v2083_v2 = vpop.f32.mrb[57].mxu0  ;;  %2394 = vmatprep.mubr.f32.mxu1 %v2223_v59  ;;  %vm2160_vm14 = vcmp.gt.f32.partialorder %v2081_v57, 0.0  ;;  %v2568_v59 = vld [vmem:[%s6451_s9 + $0x1f8] sm:$0xff] }
 0x6c8   : > { %vm2161_vm15 = vcmp.gt.f32.partialorder %v2083_v2, 0.0  ;;  %v2193_v43 = vmul.f32 0.2, %v2083_v2  ;;  %2395 = vmatmul.mubr.f32.gmra.mrb[70].mxu1 %v2222_v4  ;;  %v2563_v4 = vld [vmem:[%s6451_s9 + $0x1d0] sm:$0xff] }
 0x6c9   : > { %4612 = vmatpush1.bf16.msra.mxu1 %v4611_v56  ;;  %v2224_v38 = vsel %vm2160_vm14, %v2081_v57, %v2192_v1  ;;  %v2564_v57 = vld [vmem:[%s6451_s9 + $0x1d8] sm:$0xff]  ;;  %v4627_v18 = vpack.c.bf16 %v2567_v22, %v2563_v4 }
 0x6ca   : > { %v2087_v10 = vpop.f32.mrb[58].mxu0  ;;  %v2225_v12 = vsel %vm2161_vm15, %v2083_v2, %v2193_v43  ;;  %4614 = vmatprep.subr.bf16.mxu1 %v4613_v60  ;;  %v4625_v2 = vpack.c.bf16 %v2568_v59, %v2564_v57  ;;  %v2583_v57 = vld [vmem:[%s6451_s9 + $0x270] sm:$0xff] }
 0x6cb   : > { %v2194_v48 = vmul.f32 0.2, %v2087_v10  ;;  %v2089_v23 = vpop.f32.mrb[59].mxu0  ;;  %2400 = vmatprep.mubr.f32.mxu1 %v2225_v12  ;;  %vm2162_vm1 = vcmp.gt.f32.partialorder %v2087_v10, 0.0  ;;  %v2576_v12 = vld [vmem:[%s6451_s9 + $0x238] sm:$0xff] }
 0x6cc   : > { %vm2163_vm2 = vcmp.gt.f32.partialorder %v2089_v23, 0.0  ;;  %v2195_v41 = vmul.f32 0.2, %v2089_v23  ;;  %2401 = vmatmul.mubr.f32.gmra.mrb[72].mxu1 %v2224_v38  ;;  %v2571_v38 = vld [vmem:[%s6451_s9 + $0x210] sm:$0xff] }
 0x6cd   : > { %4616 = vmatpush1.bf16.msra.mxu1 %v4615_v9  ;;  %v2226_v56 = vsel %vm2162_vm1, %v2087_v10, %v2194_v48  ;;  %v2572_v10 = vld [vmem:[%s6451_s9 + $0x218] sm:$0xff]  ;;  %v4631_v46 = vpack.c.bf16 %v2575_v25, %v2571_v38 }
 0x6ce   : > { %v2093_v32 = vpop.f32.mrb[60].mxu0  ;;  %v2227_v31 = vsel %vm2163_vm2, %v2089_v23, %v2195_v41  ;;  %4618 = vmatprep.subr.bf16.mxu1 %v4617_v14  ;;  %v4629_v23 = vpack.c.bf16 %v2576_v12, %v2572_v10  ;;  %v2591_v10 = vld [vmem:[%s6451_s9 + $0x2b0] sm:$0xff] }
 0x6cf   : > { %v2196_v50 = vmul.f32 0.2, %v2093_v32  ;;  %v2095_v51 = vpop.f32.mrb[61].mxu0  ;;  %2406 = vmatprep.mubr.f32.mxu1 %v2227_v31  ;;  %vm2164_vm3 = vcmp.gt.f32.partialorder %v2093_v32, 0.0  ;;  %v2584_v31 = vld [vmem:[%s6451_s9 + $0x278] sm:$0xff] }
 0x6d0   : > { %vm2165_vm4 = vcmp.gt.f32.partialorder %v2095_v51, 0.0  ;;  %v2197_v60 = vmul.f32 0.2, %v2095_v51  ;;  %2407 = vmatmul.mubr.f32.gmra.mrb[74].mxu1 %v2226_v56  ;;  %v2579_v56 = vld [vmem:[%s6451_s9 + $0x250] sm:$0xff] }
 0x6d1   : > { %4620 = vmatpush1.bf16.msra.mxu1 %v4619_v29  ;;  %v2228_v9 = vsel %vm2164_vm3, %v2093_v32, %v2196_v50  ;;  %v2580_v32 = vld [vmem:[%s6451_s9 + $0x258] sm:$0xff]  ;;  %v4635_v4 = vpack.c.bf16 %v2583_v57, %v2579_v56 }
 0x6d2   : > { %v2099_v63 = vpop.f32.mrb[62].mxu0  ;;  %v2229_v1 = vsel %vm2165_vm4, %v2095_v51, %v2197_v60  ;;  %4622 = vmatprep.subr.bf16.mxu1 %v4621_v33  ;;  %v4633_v51 = vpack.c.bf16 %v2584_v31, %v2580_v32  ;;  %v2599_v32 = vld [vmem:[%s6451_s9 + $0x2f0] sm:$0xff] }
 0x6d3   : > { %v2198_v40 = vmul.f32 0.2, %v2099_v63  ;;  %v2101_v43 = vpop.f32.mrb[63].mxu0  ;;  %2412 = vmatprep.mubr.f32.mxu1 %v2229_v1  ;;  %vm2166_vm5 = vcmp.gt.f32.partialorder %v2099_v63, 0.0  ;;  %v2592_v1 = vld [vmem:[%s6451_s9 + $0x2b8] sm:$0xff] }
 0x6d4   : > { %vm2167_vm6 = vcmp.gt.f32.partialorder %v2101_v43, 0.0  ;;  %v2199_v14 = vmul.f32 0.2, %v2101_v43  ;;  %2413 = vmatmul.mubr.f32.gmra.mrb[76].mxu1 %v2228_v9  ;;  %v2587_v9 = vld [vmem:[%s6451_s9 + $0x290] sm:$0xff] }
 0x6d5   : > { %4624 = vmatpush1.bf16.msra.mxu1 %v4623_v62  ;;  %v2230_v29 = vsel %vm2166_vm5, %v2099_v63, %v2198_v40  ;;  %v2588_v63 = vld [vmem:[%s6451_s9 + $0x298] sm:$0xff]  ;;  %v4639_v38 = vpack.c.bf16 %v2591_v10, %v2587_v9 }
 0x6d6   : > { %v2105_v52 = vpop.f32.mrb[64].mxu0  ;;  %v2231_v48 = vsel %vm2167_vm6, %v2101_v43, %v2199_v14  ;;  %4626 = vmatprep.subr.bf16.mxu1 %v4625_v2  ;;  %v4637_v43 = vpack.c.bf16 %v2592_v1, %v2588_v63  ;;  %v2607_v63 = vld [vmem:[%s6451_s9 + $0x330] sm:$0xff] }
 0x6d7   : > { %v2200_v27 = vmul.f32 0.2, %v2105_v52  ;;  %v2107_v41 = vpop.f32.mrb[65].mxu0  ;;  %2418 = vmatprep.mubr.f32.mxu1 %v2231_v48  ;;  %vm2168_vm7 = vcmp.gt.f32.partialorder %v2105_v52, 0.0  ;;  %v2600_v48 = vld [vmem:[%s6451_s9 + $0x2f8] sm:$0xff] }
 0x6d8   : > { %vm2169_vm8 = vcmp.gt.f32.partialorder %v2107_v41, 0.0  ;;  %v2201_v33 = vmul.f32 0.2, %v2107_v41  ;;  %2419 = vmatmul.mubr.f32.gmra.mrb[78].mxu1 %v2230_v29  ;;  %v2595_v29 = vld [vmem:[%s6451_s9 + $0x2d0] sm:$0xff] }
 0x6d9   : > { %4628 = vmatpush1.bf16.msra.mxu1 %v4627_v18  ;;  %v2232_v62 = vsel %vm2168_vm7, %v2105_v52, %v2200_v27  ;;  %v2596_v52 = vld [vmem:[%s6451_s9 + $0x2d8] sm:$0xff]  ;;  %v4643_v56 = vpack.c.bf16 %v2599_v32, %v2595_v29 }
 0x6da   : > { %v2111_v47 = vpop.f32.mrb[66].mxu0  ;;  %v2233_v50 = vsel %vm2169_vm8, %v2107_v41, %v2201_v33  ;;  %4630 = vmatprep.subr.bf16.mxu1 %v4629_v23  ;;  %v4641_v41 = vpack.c.bf16 %v2600_v48, %v2596_v52  ;;  %v2615_v52 = vld [vmem:[%s6451_s9 + $0x370] sm:$0xff] }
 0x6db   : > { %v2202_v59 = vmul.f32 0.2, %v2111_v47  ;;  %v2113_v60 = vpop.f32.mrb[67].mxu0  ;;  %2424 = vmatprep.mubr.f32.mxu1 %v2233_v50  ;;  %vm2170_vm9 = vcmp.gt.f32.partialorder %v2111_v47, 0.0  ;;  %v2608_v50 = vld [vmem:[%s6451_s9 + $0x338] sm:$0xff] }
 0x6dc   : > { %vm2171_vm10 = vcmp.gt.f32.partialorder %v2113_v60, 0.0  ;;  %v2203_v2 = vmul.f32 0.2, %v2113_v60  ;;  %2425 = vmatmul.mubr.f32.gmra.mrb[80].mxu1 %v2232_v62  ;;  %v2603_v62 = vld [vmem:[%s6451_s9 + $0x310] sm:$0xff] }
 0x6dd   : > { %4632 = vmatpush1.bf16.msra.mxu1 %v4631_v46  ;;  %v2234_v18 = vsel %vm2170_vm9, %v2111_v47, %v2202_v59  ;;  %v2604_v47 = vld [vmem:[%s6451_s9 + $0x318] sm:$0xff]  ;;  %v4647_v9 = vpack.c.bf16 %v2607_v63, %v2603_v62 }
 0x6de   : > { %v2117_v22 = vpop.f32.mrb[68].mxu0  ;;  %v2235_v40 = vsel %vm2171_vm10, %v2113_v60, %v2203_v2  ;;  %4634 = vmatprep.subr.bf16.mxu1 %v4633_v51  ;;  %v4645_v60 = vpack.c.bf16 %v2608_v50, %v2604_v47  ;;  %v2623_v47 = vld [vmem:[%s6451_s9 + $0x3b0] sm:$0xff] }
 0x6df   : > { %v2204_v12 = vmul.f32 0.2, %v2117_v22  ;;  %v2119_v14 = vpop.f32.mrb[69].mxu0  ;;  %2430 = vmatprep.mubr.f32.mxu1 %v2235_v40  ;;  %vm2172_vm11 = vcmp.gt.f32.partialorder %v2117_v22, 0.0  ;;  %v2616_v40 = vld [vmem:[%s6451_s9 + $0x378] sm:$0xff] }
 0x6e0   : > { %vm2173_vm12 = vcmp.gt.f32.partialorder %v2119_v14, 0.0  ;;  %v2205_v23 = vmul.f32 0.2, %v2119_v14  ;;  %2431 = vmatmul.mubr.f32.gmra.mrb[82].mxu1 %v2234_v18  ;;  %v2611_v18 = vld [vmem:[%s6451_s9 + $0x350] sm:$0xff] }
 0x6e1   : > { %4636 = vmatpush1.bf16.msra.mxu1 %v4635_v4  ;;  %v2236_v46 = vsel %vm2172_vm11, %v2117_v22, %v2204_v12  ;;  %v2612_v22 = vld [vmem:[%s6451_s9 + $0x358] sm:$0xff]  ;;  %v4651_v29 = vpack.c.bf16 %v2615_v52, %v2611_v18  ;;  %v2629_v18 = vld [vmem:[%s6451_s9 + $0x3e0] sm:$0xff] }
 0x6e2   : > { %v2123_v25 = vpop.f32.mrb[70].mxu0  ;;  %v2237_v27 = vsel %vm2173_vm12, %v2119_v14, %v2205_v23  ;;  %4638 = vmatprep.subr.bf16.mxu1 %v4637_v43  ;;  %v4649_v14 = vpack.c.bf16 %v2616_v40, %v2612_v22  ;;  %v2632_v52 = vld [vmem:[%s6451_s9 + $0x3f8] sm:$0xff] }
 0x6e3   : > { %v2206_v31 = vmul.f32 0.2, %v2123_v25  ;;  %v2125_v33 = vpop.f32.mrb[71].mxu0  ;;  %2436 = vmatprep.mubr.f32.mxu1 %v2237_v27  ;;  %vm2174_vm13 = vcmp.gt.f32.partialorder %v2123_v25, 0.0  ;;  %v2624_v27 = vld [vmem:[%s6451_s9 + $0x3b8] sm:$0xff] }
 0x6e4   : > { %vm2175_vm14 = vcmp.gt.f32.partialorder %v2125_v33, 0.0  ;;  %v2207_v51 = vmul.f32 0.2, %v2125_v33  ;;  %2437 = vmatmul.mubr.f32.gmra.mrb[84].mxu1 %v2236_v46  ;;  %v2619_v46 = vld [vmem:[%s6451_s9 + $0x390] sm:$0xff] }
 0x6e5   : > { %4640 = vmatpush1.bf16.msra.mxu1 %v4639_v38  ;;  %v2238_v4 = vsel %vm2174_vm13, %v2123_v25, %v2206_v31  ;;  %v2620_v25 = vld [vmem:[%s6451_s9 + $0x398] sm:$0xff] }
 0x6e6   : > { %v2129_v57 = vpop.f32.mrb[72].mxu0  ;;  %v2239_v59 = vsel %vm2175_vm14, %v2125_v33, %v2207_v51  ;;  %4642 = vmatprep.subr.bf16.mxu1 %v4641_v41  ;;  %v4653_v33 = vpack.c.bf16 %v2624_v27, %v2620_v25  ;;  %v2631_v25 = vld [vmem:[%s6451_s9 + $0x3f0] sm:$0xff] }
 0x6e7   : > { %v2208_v1 = vmul.f32 0.2, %v2129_v57  ;;  %v2131_v2 = vpop.f32.mrb[73].mxu0  ;;  %2442 = vmatprep.mubr.f32.mxu1 %v2239_v59  ;;  %vm2176_vm15 = vcmp.gt.f32.partialorder %v2129_v57, 0.0  ;;  %v4655_v59 = vpack.c.bf16 %v2623_v47, %v2619_v46  ;;  %v3147_v47 = vld [vmem:[%s6452_s10] sm:$0xff] }
 0x6e8   : > { %vm2177_vm1 = vcmp.gt.f32.partialorder %v2131_v2, 0.0  ;;  %v2209_v43 = vmul.f32 0.2, %v2131_v2  ;;  %2443 = vmatmul.mubr.f32.gmra.mrb[86].mxu1 %v2238_v4 }
 0x6e9   : > { %4644 = vmatpush1.bf16.msra.mxu1 %v4643_v56  ;;  %v2240_v38 = vsel %vm2176_vm15, %v2129_v57, %v2208_v1 }
 0x6ea   : > { %v2135_v10 = vpop.f32.mrb[74].mxu0  ;;  %v2241_v12 = vsel %vm2177_vm1, %v2131_v2, %v2209_v43  ;;  %4646 = vmatprep.subr.bf16.mxu1 %v4645_v60  ;;  %v2626_v43 = vld [vmem:[%s6451_s9 + $0x3c8] sm:$0xff] }
 0x6eb   : > { %v2210_v48 = vmul.f32 0.2, %v2135_v10  ;;  %v2137_v23 = vpop.f32.mrb[75].mxu0  ;;  %2448 = vmatprep.mubr.f32.mxu1 %v2241_v12  ;;  %vm2178_vm2 = vcmp.gt.f32.partialorder %v2135_v10, 0.0 }
 0x6ec   : > { %vm2179_vm3 = vcmp.gt.f32.partialorder %v2137_v23, 0.0  ;;  %v2211_v41 = vmul.f32 0.2, %v2137_v23  ;;  %2449 = vmatmul.mubr.f32.gmra.mrb[88].mxu1 %v2240_v38  ;;  %v2627_v38 = vld [vmem:[%s6451_s9 + $0x3d0] sm:$0xff] }
 0x6ed   : > { %4648 = vmatpush1.bf16.msra.mxu1 %v4647_v9  ;;  %v2242_v56 = vsel %vm2178_vm2, %v2135_v10, %v2210_v48  ;;  %v2630_v9 = vld [vmem:[%s6451_s9 + $0x3e8] sm:$0xff]  ;;  %v2628_v10 = vld [vmem:[%s6451_s9 + $0x3d8] sm:$0xff]  ;;  %v4659_v27 = vpack.c.bf16 %v2631_v25, %v2627_v38 }
 0x6ee   : > { %v2141_v32 = vpop.f32.mrb[76].mxu0  ;;  %v2243_v31 = vsel %vm2179_vm3, %v2137_v23, %v2211_v41  ;;  %4650 = vmatprep.subr.bf16.mxu1 %v4649_v14  ;;  %v4593_v12 = vpack.c.bf16 %v2630_v9, %v2626_v43  ;;  %v2625_v14 = vld [vmem:[%s6451_s9 + $0x3c0] sm:$0xff]  ;;  %v4657_v23 = vpack.c.bf16 %v2632_v52, %v2628_v10  ;;  %v3150_v43 = vld [vmem:[%s6452_s10 + $0x18] sm:$0xff] }
 0x6ef   : > { %v2212_v50 = vmul.f32 0.2, %v2141_v32  ;;  %v2143_v51 = vpop.f32.mrb[77].mxu0  ;;  %2454 = vmatprep.mubr.f32.mxu1 %v2243_v31  ;;  %vm2180_vm4 = vcmp.gt.f32.partialorder %v2141_v32, 0.0  ;;  %v4595_v48 = vpack.c.bf16 %v2629_v18, %v2625_v14  ;;  %v3163_v41 = vld [vmem:[%s6452_s10 + $0x80] sm:$0xff]  ;;  %v3181_v14 = vld [vmem:[%s6452_s10 + $0x110] sm:$0xff] }
 0x6f0   : > { %vm2181_vm5 = vcmp.gt.f32.partialorder %v2143_v51, 0.0  ;;  %v2213_v57 = vmul.f32 0.2, %v2143_v51  ;;  %2455 = vmatmul.mubr.f32.gmra.mrb[90].mxu1 %v2242_v56  ;;  %4594 = vmatprep.subr.bf16.mxu0 %v4593_v12  ;;  %v3195_v31 = vld [vmem:[%s6452_s10 + $0x180] sm:$0xff]  ;;  %v3180_v56 = vld [vmem:[%s6452_s10 + $0x108] sm:$0xff] }
 0x6f1   : > { %4652 = vmatpush1.bf16.msra.mxu1 %v4651_v29  ;;  %v2244_v2 = vsel %vm2180_vm4, %v2141_v32, %v2212_v50  ;;  %4596 = vmatpush1.bf16.msra.mxu0 %v4595_v48  ;;  %v3164_v29 = vld [vmem:[%s6452_s10 + $0x88] sm:$0xff]  ;;  %v3167_v18 = vld [vmem:[%s6452_s10 + $0xa0] sm:$0xff] }
 0x6f2   : > { %v2147_v60 = vpop.f32.mrb[78].mxu0  ;;  %v2245_v62 = vsel %vm2181_vm5, %v2143_v51, %v2213_v57  ;;  %4654 = vmatprep.subr.bf16.mxu1 %v4653_v33  ;;  %v4661_v32 = vpack.c.bf16 %v3164_v29, %v3163_v41  ;;  %v3196_v33 = vld [vmem:[%s6452_s10 + $0x188] sm:$0xff]  ;;  %v3179_v51 = vld [vmem:[%s6452_s10 + $0x100] sm:$0xff]  ;;  %v3165_v57 = vld [vmem:[%s6452_s10 + $0x90] sm:$0xff] }
 0x6f3   : > { %v2214_v63 = vmul.f32 0.2, %v2147_v60  ;;  %v2149_v1 = vpop.f32.mrb[79].mxu0  ;;  %2460 = vmatprep.mubr.f32.mxu1 %v2245_v62  ;;  %vm2182_vm6 = vcmp.gt.f32.partialorder %v2147_v60, 0.0  ;;  %v4693_v46 = vpack.c.bf16 %v3196_v33, %v3195_v31  ;;  %v3148_v50 = vld [vmem:[%s6452_s10 + $0x8] sm:$0xff]  ;;  %v3197_v62 = vld [vmem:[%s6452_s10 + $0x190] sm:$0xff] }
 0x6f4   : > { %vm2183_vm7 = vcmp.gt.f32.partialorder %v2149_v1, 0.0  ;;  %v2215_v4 = vmul.f32 0.2, %v2149_v1  ;;  %2461 = vmatmul.mubr.f32.gmra.mrb[92].mxu1 %v2244_v2  ;;  %4662 = vmatprep.subr.bf16.mxu0 %v4661_v32  ;;  %v3199_v48 = vld [vmem:[%s6452_s10 + $0x1a0] sm:$0xff]  ;;  %v3152_v32 = vld [vmem:[%s6452_s10 + $0x28] sm:$0xff] }
 0x6f5   : > { %4656 = vmatpush1.bf16.msra.mxu1 %v4655_v59  ;;  %v2246_v40 = vsel %vm2182_vm6, %v2147_v60, %v2214_v63  ;;  %v3166_v60 = vld [vmem:[%s6452_s10 + $0x98] sm:$0xff]  ;;  %v3151_v29 = vld [vmem:[%s6452_s10 + $0x20] sm:$0xff] }
 0x6f6   : > { %v2247_v22 = vsel %vm2183_vm7, %v2149_v1, %v2215_v4  ;;  %4658 = vmatprep.subr.bf16.mxu1 %v4657_v23  ;;  %v3198_v63 = vld [vmem:[%s6452_s10 + $0x198] sm:$0xff]  ;;  %v4663_v4 = vpack.c.bf16 %v3148_v50, %v3147_v47  ;;  %v4665_v10 = vpack.c.bf16 %v3166_v60, %v3165_v57  ;;  %v3200_v23 = vld [vmem:[%s6452_s10 + $0x1a8] sm:$0xff]  ;;  %v3169_v50 = vld [vmem:[%s6452_s10 + $0xb0] sm:$0xff] }
 0x6f7   : > { %2466 = vmatprep.mubr.f32.mxu1 %v2247_v22  ;;  %v4695_v22 = vpack.c.bf16 %v3180_v56, %v3179_v51  ;;  %v4697_v12 = vpack.c.bf16 %v3198_v63, %v3197_v62  ;;  %v3184_v47 = vld [vmem:[%s6452_s10 + $0x128] sm:$0xff]  ;;  %v3201_v56 = vld [vmem:[%s6452_s10 + $0x1b0] sm:$0xff]  ;;  %v3202_v57 = vld [vmem:[%s6452_s10 + $0x1b8] sm:$0xff]  ;;  %v4671_v62 = vpack.c.bf16 %v3152_v32, %v3151_v29 }
 0x6f8   : > { %2467 = vmatmul.mubr.f32.gmra.mrb[94].mxu1 %v2246_v40  ;;  %v3149_v40 = vld [vmem:[%s6452_s10 + $0x10] sm:$0xff] }
 0x6f9   : > { %4660 = vmatpush1.bf16.msra.mxu1 %v4659_v27  ;;  %v4667_v27 = vpack.c.bf16 %v3150_v43, %v3149_v40  ;;  %v4705_v40 = vpack.c.bf16 %v3202_v57, %v3201_v56  ;;  %v3186_v43 = vld [vmem:[%s6452_s10 + $0x138] sm:$0xff]  ;;  %v3173_v29 = vld [vmem:[%s6452_s10 + $0xd0] sm:$0xff] }
 0x6fa   : > { %4694 = vmatprep.subr.bf16.mxu1 %v4693_v46  ;;  %v4701_v46 = vpack.c.bf16 %v3200_v23, %v3199_v48  ;;  %v3155_v48 = vld [vmem:[%s6452_s10 + $0x40] sm:$0xff]  ;;  %v3156_v23 = vld [vmem:[%s6452_s10 + $0x48] sm:$0xff] }
 0x78f   : > { %v2378_v59 = vpop.f32.mrb[64].mxu1 }
 0x790   : > { %v2380_v1 = vpop.f32.mrb[65].mxu1  ;;  %v2473_v9 = vadd.f32 %v2378_v59, %v5625_v55  ;;  %v3168_v55 = vld [vmem:[%s6452_s10 + $0xa8] sm:$0xff] }
 0x791   : > { %v2474_v2 = vadd.f32 %v2380_v1, %v5623_v54  ;;  %v3182_v54 = vld [vmem:[%s6452_s10 + $0x118] sm:$0xff]  ;;  %v4669_v33 = vpack.c.bf16 %v3168_v55, %v3167_v18  ;;  %v3153_v1 = vld [vmem:[%s6452_s10 + $0x30] sm:$0xff] }
 0x792   : > { %v4699_v41 = vpack.c.bf16 %v3182_v54, %v3181_v14  ;;  %v3204_v14 = vld [vmem:[%s6452_s10 + $0x1c8] sm:$0xff] }
 0x793   : > { %v2384_v52 = vpop.f32.mrb[66].mxu1  ;;  %2697 = vmatprep.mubr.f32.mxu0 %v2474_v2  ;;  %2858 = vmatprep.mubr.f32.mxu1 %v2474_v2  ;;  %v3154_v2 = vld [vmem:[%s6452_s10 + $0x38] sm:$0xff] }
 0x794   : > { %v2386_v38 = vpop.f32.mrb[67].mxu1  ;;  %2698 = vmatmul.mubr.f32.vlgmr.msra.gmra.mrb[80].mxu0 %v2473_v9  ;;  %2859 = vmatmul.mubr.f32.vlgmr.msra.gmra.mrb[96].mxu1 %v2473_v9  ;;  %v2475_v31 = vadd.f32 %v2384_v52, %v5632_v7  ;;  %v3170_v7 = vld [vmem:[%s6452_s10 + $0xb8] sm:$0xff]  ;;  %v3171_v9 = vld [vmem:[%s6452_s10 + $0xc0] sm:$0xff]  ;;  %v4675_v52 = vpack.c.bf16 %v3154_v2, %v3153_v1  ;;  %v3208_v2 = vld [vmem:[%s6452_s10 + $0x1e8] sm:$0xff] }
 0x795   : > { %v2476_v25 = vadd.f32 %v2386_v38, %v5629_v6  ;;  %4664 = vmatpush3.bf16.msra.mxu0 %v4663_v4  ;;  %4696 = vmatpush3.bf16.msra.mxu1 %v4695_v22  ;;  %v3183_v6 = vld [vmem:[%s6452_s10 + $0x120] sm:$0xff]  ;;  %v4673_v22 = vpack.c.bf16 %v3170_v7, %v3169_v50  ;;  %v3158_v7 = vld [vmem:[%s6452_s10 + $0x58] sm:$0xff] }
 0x796   : > { %4666 = vmatprep.subr.bf16.mxu0 %v4665_v10  ;;  %4698 = vmatprep.subr.bf16.mxu1 %v4697_v12  ;;  %v4703_v63 = vpack.c.bf16 %v3184_v47, %v3183_v6  ;;  %v3203_v12 = vld [vmem:[%s6452_s10 + $0x1c0] sm:$0xff]  ;;  %v4679_v47 = vpack.c.bf16 %v3156_v23, %v3155_v48 }
 0x797   : > { %v2390_v51 = vpop.f32.mrb[68].mxu1  ;;  %2703 = vmatprep.mubr.f32.mxu0 %v2476_v25  ;;  %2864 = vmatprep.mubr.f32.mxu1 %v2476_v25  ;;  %v3207_v1 = vld [vmem:[%s6452_s10 + $0x1e0] sm:$0xff] }
 0x798   : > { %v2392_v59 = vpop.f32.mrb[69].mxu1  ;;  %2704 = vmatmul.mubr.f32.gmra.mrb[82].mxu0 %v2475_v31  ;;  %2865 = vmatmul.mubr.f32.gmra.mrb[98].mxu1 %v2475_v31  ;;  %v2477_v4 = vadd.f32 %v2390_v51, %v5638_v16  ;;  %v3172_v16 = vld [vmem:[%s6452_s10 + $0xc8] sm:$0xff]  ;;  %v3205_v31 = vld [vmem:[%s6452_s10 + $0x1d0] sm:$0xff] }
 0x799   : > { %v2478_v60 = vadd.f32 %v2392_v59, %v5635_v13  ;;  %4668 = vmatpush3.bf16.msra.mxu0 %v4667_v27  ;;  %4700 = vmatpush3.bf16.msra.mxu1 %v4699_v41  ;;  %v3185_v13 = vld [vmem:[%s6452_s10 + $0x130] sm:$0xff]  ;;  %v4677_v25 = vpack.c.bf16 %v3172_v16, %v3171_v9  ;;  %v4709_v27 = vpack.c.bf16 %v3204_v14, %v3203_v12  ;;  %v3188_v41 = vld [vmem:[%s6452_s10 + $0x148] sm:$0xff] }
 0x79a   : > { %4670 = vmatprep.subr.bf16.mxu0 %v4669_v33  ;;  %4702 = vmatprep.subr.bf16.mxu1 %v4701_v46  ;;  %v4707_v55 = vpack.c.bf16 %v3186_v43, %v3185_v13  ;;  %v3206_v33 = vld [vmem:[%s6452_s10 + $0x1d8] sm:$0xff]  ;;  %v3157_v51 = vld [vmem:[%s6452_s10 + $0x50] sm:$0xff]  ;;  %v3159_v43 = vld [vmem:[%s6452_s10 + $0x60] sm:$0xff]  ;;  %v4717_v12 = vpack.c.bf16 %v3208_v2, %v3207_v1 }
 0x79b   : > { %v2396_v10 = vpop.f32.mrb[70].mxu1  ;;  %2709 = vmatprep.mubr.f32.mxu0 %v2478_v60  ;;  %2870 = vmatprep.mubr.f32.mxu1 %v2478_v60  ;;  %v4713_v59 = vpack.c.bf16 %v3206_v33, %v3205_v31  ;;  %v3190_v60 = vld [vmem:[%s6452_s10 + $0x158] sm:$0xff]  ;;  %v3160_v9 = vld [vmem:[%s6452_s10 + $0x68] sm:$0xff] }
 0x79c   : > { %v2398_v54 = vpop.f32.mrb[71].mxu1  ;;  %2710 = vmatmul.mubr.f32.gmra.mrb[84].mxu0 %v2477_v4  ;;  %2871 = vmatmul.mubr.f32.gmra.mrb[100].mxu1 %v2477_v4  ;;  %v2479_v38 = vadd.f32 %v2396_v10, %v5644_v24  ;;  %v3174_v24 = vld [vmem:[%s6452_s10 + $0xd8] sm:$0xff]  ;;  %v3192_v14 = vld [vmem:[%s6452_s10 + $0x168] sm:$0xff] }
 0x79d   : > { %v2480_v18 = vadd.f32 %v2398_v54, %v5641_v19  ;;  %4672 = vmatpush3.bf16.msra.mxu0 %v4671_v62  ;;  %4704 = vmatpush3.bf16.msra.mxu1 %v4703_v63  ;;  %v3187_v19 = vld [vmem:[%s6452_s10 + $0x140] sm:$0xff]  ;;  %v4681_v57 = vpack.c.bf16 %v3174_v24, %v3173_v29  ;;  %v3177_v54 = vld [vmem:[%s6452_s10 + $0xf0] sm:$0xff]  ;;  %v3162_v29 = vld [vmem:[%s6452_s10 + $0x78] sm:$0xff] }
 0x79e   : > { %4674 = vmatprep.subr.bf16.mxu0 %v4673_v22  ;;  %4706 = vmatprep.subr.bf16.mxu1 %v4705_v40  ;;  %v4711_v50 = vpack.c.bf16 %v3188_v41, %v3187_v19  ;;  %v3175_v62 = vld [vmem:[%s6452_s10 + $0xe0] sm:$0xff]  ;;  %v4683_v40 = vpack.c.bf16 %v3158_v7, %v3157_v51  ;;  %v3161_v41 = vld [vmem:[%s6452_s10 + $0x70] sm:$0xff] }
 0x79f   : > { %v2402_v32 = vpop.f32.mrb[72].mxu1  ;;  %2715 = vmatprep.mubr.f32.mxu0 %v2480_v18  ;;  %2876 = vmatprep.mubr.f32.mxu1 %v2480_v18  ;;  %v4691_v31 = vpack.c.bf16 %v3162_v29, %v3161_v41 }
 0x7a0   : > { %v2404_v46 = vpop.f32.mrb[73].mxu1  ;;  %2716 = vmatmul.mubr.f32.gmra.mrb[86].mxu0 %v2479_v38  ;;  %2877 = vmatmul.mubr.f32.gmra.mrb[102].mxu1 %v2479_v38  ;;  %v2481_v56 = vadd.f32 %v2402_v32, %v5650_v5  ;;  %v3176_v5 = vld [vmem:[%s6452_s10 + $0xe8] sm:$0xff]  ;;  %v4687_v38 = vpack.c.bf16 %v3160_v9, %v3159_v43 }
 0x7a1   : > { %v2482_v6 = vadd.f32 %v2404_v46, %v5647_v39  ;;  %4676 = vmatpush3.bf16.msra.mxu0 %v4675_v52  ;;  %4708 = vmatpush3.bf16.msra.mxu1 %v4707_v55  ;;  %v3189_v39 = vld [vmem:[%s6452_s10 + $0x150] sm:$0xff]  ;;  %v4685_v16 = vpack.c.bf16 %v3176_v5, %v3175_v62  ;;  %v3210_v55 = vld [vmem:[%s6452_s10 + $0x1f8] sm:$0xff] }
 0x7a2   : > { %4678 = vmatprep.subr.bf16.mxu0 %v4677_v25  ;;  %4710 = vmatprep.subr.bf16.mxu1 %v4709_v27  ;;  %v4715_v13 = vpack.c.bf16 %v3190_v60, %v3189_v39  ;;  %v3209_v52 = vld [vmem:[%s6452_s10 + $0x1f0] sm:$0xff] }
 0x7a3   : > { %v2408_v63 = vpop.f32.mrb[74].mxu1  ;;  %2721 = vmatprep.mubr.f32.mxu0 %v2482_v6  ;;  %2882 = vmatprep.mubr.f32.mxu1 %v2482_v6  ;;  %v4721_v32 = vpack.c.bf16 %v3210_v55, %v3209_v52 }
 0x7a4   : > { %v2410_v4 = vpop.f32.mrb[75].mxu1  ;;  %2722 = vmatmul.mubr.f32.gmra.mrb[88].mxu0 %v2481_v56  ;;  %2883 = vmatmul.mubr.f32.gmra.mrb[104].mxu1 %v2481_v56  ;;  %v2483_v10 = vadd.f32 %v2408_v63, %v5656_v34  ;;  %v3178_v34 = vld [vmem:[%s6452_s10 + $0xf8] sm:$0xff] }
 0x7a5   : > { %v2484_v22 = vadd.f32 %v2410_v4, %v5653_v45  ;;  %4680 = vmatpush3.bf16.msra.mxu0 %v4679_v47  ;;  %4712 = vmatpush3.bf16.msra.mxu1 %v4711_v50  ;;  %v3191_v45 = vld [vmem:[%s6452_s10 + $0x160] sm:$0xff]  ;;  %v4689_v19 = vpack.c.bf16 %v3178_v34, %v3177_v54 }
 0x7a6   : > { %4682 = vmatprep.subr.bf16.mxu0 %v4681_v57  ;;  %4714 = vmatprep.subr.bf16.mxu1 %v4713_v59  ;;  %v4719_v25 = vpack.c.bf16 %v3192_v14, %v3191_v45 }
 0x7a7   : > { %v2414_v18 = vpop.f32.mrb[76].mxu1  ;;  %2727 = vmatprep.mubr.f32.mxu0 %v2484_v22  ;;  %2888 = vmatprep.mubr.f32.mxu1 %v2484_v22 }
 0x7a8   : > { %v2416_v48 = vpop.f32.mrb[77].mxu1  ;;  %2728 = vmatmul.mubr.f32.gmra.mrb[90].mxu0 %v2483_v10  ;;  %2889 = vmatmul.mubr.f32.gmra.mrb[106].mxu1 %v2483_v10  ;;  %v2485_v27 = vadd.f32 %v2414_v18, %v5662_v20 }
 0x7a9   : > { %v2486_v23 = vadd.f32 %v2416_v48, %v5659_v17  ;;  %4684 = vmatpush3.bf16.msra.mxu0 %v4683_v40  ;;  %4716 = vmatpush3.bf16.msra.mxu1 %v4715_v13 }
 0x7aa   : > { %4686 = vmatprep.subr.bf16.mxu0 %v4685_v16  ;;  %4718 = vmatprep.subr.bf16.mxu1 %v4717_v12 }
 0x7ab   : > { %v2420_v24 = vpop.f32.mrb[78].mxu1  ;;  %2733 = vmatprep.mubr.f32.mxu0 %v2486_v23  ;;  %2894 = vmatprep.mubr.f32.mxu1 %v2486_v23 }
 0x7ac   : > { %v2422_v17 = vpop.f32.mrb[79].mxu1  ;;  %2734 = vmatmul.mubr.f32.gmra.mrb[92].mxu0 %v2485_v27  ;;  %2895 = vmatmul.mubr.f32.gmra.mrb[108].mxu1 %v2485_v27  ;;  %v2487_v33 = vadd.f32 %v2420_v24, %v5668_v26 }
 0x7ad   : > { %v2488_v20 = vadd.f32 %v2422_v17, %v5665_v21  ;;  %4688 = vmatpush3.bf16.msra.mxu0 %v4687_v38  ;;  %4720 = vmatpush3.bf16.msra.mxu1 %v4719_v25 }
 0x7ae   : > { %4690 = vmatprep.subr.bf16.mxu0 %v4689_v19  ;;  %4722 = vmatprep.subr.bf16.mxu1 %v4721_v32 }
 0x7af   : > { %v2426_v46 = vpop.f32.mrb[80].mxu1  ;;  %2739 = vmatprep.mubr.f32.mxu0 %v2488_v20  ;;  %2900 = vmatprep.mubr.f32.mxu1 %v2488_v20 }
 0x7b0   : > { %v2428_v6 = vpop.f32.mrb[81].mxu1  ;;  %2740 = vmatmul.mubr.f32.gmra.mrb[94].mxu0 %v2487_v33  ;;  %2901 = vmatmul.mubr.f32.gmra.mrb[110].mxu1 %v2487_v33  ;;  %v2489_v50 = vadd.f32 %v2426_v46, %v5674_v30 }
 0x7b1   : > { %v2490_v47 = vadd.f32 %v2428_v6, %v5671_v28  ;;  %4692 = vmatpush3.bf16.msra.mxu0 %v4691_v31 }
 0x7b3   : > { %v2432_v51 = vpop.f32.mrb[82].mxu1  ;;  %2745 = vmatprep.mubr.f32.mxu0 %v2490_v47  ;;  %2906 = vmatprep.mubr.f32.mxu1 %v2490_v47 }
 0x7b4   : > { %v2434_v21 = vpop.f32.mrb[83].mxu1  ;;  %2746 = vmatmul.mubr.f32.gmra.mrb[96].mxu0 %v2489_v50  ;;  %2907 = vmatmul.mubr.f32.gmra.mrb[112].mxu1 %v2489_v50  ;;  %v2491_v7 = vadd.f32 %v2432_v51, %v5680_v36 }
 0x7b5   : > { %v2492_v26 = vadd.f32 %v2434_v21, %v5677_v44 }
 0x7b7   : > { %v2438_v56 = vpop.f32.mrb[84].mxu1  ;;  %2751 = vmatprep.mubr.f32.mxu0 %v2492_v26  ;;  %2912 = vmatprep.mubr.f32.mxu1 %v2492_v26 }
 0x7b8   : > { %v2440_v57 = vpop.f32.mrb[85].mxu1  ;;  %2752 = vmatmul.mubr.f32.gmra.mrb[98].mxu0 %v2491_v7  ;;  %2913 = vmatmul.mubr.f32.gmra.mrb[114].mxu1 %v2491_v7  ;;  %v2493_v30 = vadd.f32 %v2438_v56, %v5686_v53 }
 0x7b9   : > { %v2494_v28 = vadd.f32 %v2440_v57, %v5683_v49 }
 0x7bb   : > { %v2444_v59 = vpop.f32.mrb[86].mxu1  ;;  %2757 = vmatprep.mubr.f32.mxu0 %v2494_v28  ;;  %2918 = vmatprep.mubr.f32.mxu1 %v2494_v28 }
 0x7bc   : > { %v2446_v39 = vpop.f32.mrb[87].mxu1  ;;  %2758 = vmatmul.mubr.f32.gmra.mrb[100].mxu0 %v2493_v30  ;;  %2919 = vmatmul.mubr.f32.gmra.mrb[116].mxu1 %v2493_v30  ;;  %v2495_v36 = vadd.f32 %v2444_v59, %v5692_v61 }
 0x7bd   : > { %v2496_v44 = vadd.f32 %v2446_v39, %v5689_v58 }
 0x7bf   : > { %v2450_v60 = vpop.f32.mrb[88].mxu1  ;;  %2763 = vmatprep.mubr.f32.mxu0 %v2496_v44  ;;  %2924 = vmatprep.mubr.f32.mxu1 %v2496_v44 }
 0x7c0   : > { %v2452_v62 = vpop.f32.mrb[89].mxu1  ;;  %2764 = vmatmul.mubr.f32.gmra.mrb[102].mxu0 %v2495_v36  ;;  %2925 = vmatmul.mubr.f32.gmra.mrb[118].mxu1 %v2495_v36  ;;  %v2497_v53 = vadd.f32 %v2450_v60, %v5698_v3 }
 0x7c1   : > { %v2498_v49 = vadd.f32 %v2452_v62, %v5695_v0 }
 0x7c3   : > { %v2456_v63 = vpop.f32.mrb[90].mxu1  ;;  %2769 = vmatprep.mubr.f32.mxu0 %v2498_v49  ;;  %2930 = vmatprep.mubr.f32.mxu1 %v2498_v49 }
 0x7c4   : > { %v2458_v5 = vpop.f32.mrb[91].mxu1  ;;  %2770 = vmatmul.mubr.f32.gmra.mrb[104].mxu0 %v2497_v53  ;;  %2931 = vmatmul.mubr.f32.gmra.mrb[120].mxu1 %v2497_v53  ;;  %v2499_v61 = vadd.f32 %v2456_v63, %v5704_v42 }
 0x7c5   : > { %v2500_v58 = vadd.f32 %v2458_v5, %v5701_v37 }
 0x7c7   : > { %v2462_v1 = vpop.f32.mrb[92].mxu1  ;;  %2775 = vmatprep.mubr.f32.mxu0 %v2500_v58  ;;  %2936 = vmatprep.mubr.f32.mxu1 %v2500_v58 }
 0x7c8   : > { %v2464_v2 = vpop.f32.mrb[93].mxu1  ;;  %2776 = vmatmul.mubr.f32.gmra.mrb[106].mxu0 %v2499_v61  ;;  %2937 = vmatmul.mubr.f32.gmra.mrb[122].mxu1 %v2499_v61  ;;  %v2501_v3 = vadd.f32 %v2462_v1, %v5710_v15  ;;  %v3194_v15 = vld [vmem:[%s6452_s10 + $0x178] sm:$0xff] }
 0x7c9   : > { %v2502_v0 = vadd.f32 %v2464_v2, %v5707_v11  ;;  %v3193_v11 = vld [vmem:[%s6452_s10 + $0x170] sm:$0xff] }
 0x7ca   : > { %v4723_v40 = vpack.c.bf16 %v3194_v15, %v3193_v11 }
 0x7cb   : > { %v2468_v4 = vpop.f32.mrb[94].mxu1  ;;  %2781 = vmatprep.mubr.f32.mxu0 %v2502_v0  ;;  %2942 = vmatprep.mubr.f32.mxu1 %v2502_v0 }
 0x7cc   : > { %v2470_v22 = vpop.f32.mrb[95].mxu1  ;;  %2782 = vmatmul.mubr.f32.gmra.mrb[108].mxu0 %v2501_v3  ;;  %2943 = vmatmul.mubr.f32.gmra.mrb[124].mxu1 %v2501_v3  ;;  %v2503_v42 = vadd.f32 %v2468_v4, %v5716_v8 }
 0x7cd   : > { %v2504_v37 = vadd.f32 %v2470_v22, %v5713_v35  ;;  %4724 = vmatpush3.bf16.msra.mxu1 %v4723_v40 }
 0x7cf   : > { %2787 = vmatprep.mubr.f32.mxu0 %v2504_v37  ;;  %2948 = vmatprep.mubr.f32.mxu1 %v2504_v37 }
 0x7d0   : > { %2788 = vmatmul.mubr.f32.gmra.mrb[110].mxu0 %v2503_v42  ;;  %2949 = vmatmul.mubr.f32.gmra.mrb[126].mxu1 %v2503_v42 }
 0x867   : > { %v2699_v13 = vpop.f32.mrb[80].mxu0  ;;  %v2860_v43 = vpop.f32.mrb[96].mxu1 }
 0x868   : > { %v3019_v9 = vmul.f32 0.2, %v2699_v13  ;;  %v3021_v35 = vmul.f32 0.2, %v2860_v43  ;;  %vm2955_vm8 = vcmp.gt.f32.partialorder %v2699_v13, 0.0  ;;  %vm2957_vm9 = vcmp.gt.f32.partialorder %v2860_v43, 0.0 }
 0x869   : > { %v2701_v8 = vpop.f32.mrb[81].mxu0  ;;  %v2862_v10 = vpop.f32.mrb[97].mxu1 }
 0x86a   : > { %vm2956_vm10 = vcmp.gt.f32.partialorder %v2701_v8, 0.0  ;;  %v3020_v16 = vmul.f32 0.2, %v2701_v8  ;;  %vm2958_vm11 = vcmp.gt.f32.partialorder %v2862_v10, 0.0  ;;  %v3022_v12 = vmul.f32 0.2, %v2862_v10 }
 0x86b   : > { %v2705_v45 = vpop.f32.mrb[82].mxu0  ;;  %v2866_v14 = vpop.f32.mrb[98].mxu1  ;;  %v3083_v54 = vsel %vm2955_vm8, %v2699_v13, %v3019_v9  ;;  %v3085_v18 = vsel %vm2957_vm9, %v2860_v43, %v3021_v35 }
 0x86c   : > { %v3023_v34 = vmul.f32 0.2, %v2705_v45  ;;  %v3025_v52 = vmul.f32 0.2, %v2866_v14  ;;  %vm2959_vm12 = vcmp.gt.f32.partialorder %v2705_v45, 0.0  ;;  %vm2961_vm13 = vcmp.gt.f32.partialorder %v2866_v14, 0.0 }
 0x86d   : > { %v2707_v55 = vpop.f32.mrb[83].mxu0  ;;  %v2868_v48 = vpop.f32.mrb[99].mxu1  ;;  %v3084_v23 = vsel %vm2956_vm10, %v2701_v8, %v3020_v16  ;;  %v3086_v38 = vsel %vm2958_vm11, %v2862_v10, %v3022_v12 }
 0x86e   : > { %vm2960_vm14 = vcmp.gt.f32.partialorder %v2707_v55, 0.0  ;;  %v3024_v25 = vmul.f32 0.2, %v2707_v55  ;;  %vm2962_vm15 = vcmp.gt.f32.partialorder %v2868_v48, 0.0  ;;  %v3026_v27 = vmul.f32 0.2, %v2868_v48  ;;  %3277 = vmatprep.mubr.f32.mxu0 %v3084_v23  ;;  %3422 = vmatprep.mubr.f32.mxu1 %v3086_v38 }
 0x86f   : > { %3278 = vmatmul.mubr.f32.vlgmr.msra.gmra.mrb[112].mxu0 %v3083_v54  ;;  %3423 = vmatmul.mubr.f32.vlgmr.msra.gmra.mrb[128].mxu1 %v3085_v18  ;;  %v2711_v19 = vpop.f32.mrb[84].mxu0  ;;  %v2872_v41 = vpop.f32.mrb[100].mxu1  ;;  %v3087_v24 = vsel %vm2959_vm12, %v2705_v45, %v3023_v34  ;;  %v3089_v17 = vsel %vm2961_vm13, %v2866_v14, %v3025_v52 }
 0x870   : > { %v3027_v29 = vmul.f32 0.2, %v2711_v19  ;;  %v3029_v32 = vmul.f32 0.2, %v2872_v41  ;;  %vm2963_vm1 = vcmp.gt.f32.partialorder %v2711_v19, 0.0  ;;  %vm2965_vm2 = vcmp.gt.f32.partialorder %v2872_v41, 0.0 }
 0x871   : > { %v2713_v20 = vpop.f32.mrb[85].mxu0  ;;  %v2874_v31 = vpop.f32.mrb[101].mxu1  ;;  %v3088_v33 = vsel %vm2960_vm14, %v2707_v55, %v3024_v25  ;;  %v3090_v46 = vsel %vm2962_vm15, %v2868_v48, %v3026_v27 }
 0x872   : > { %vm2964_vm3 = vcmp.gt.f32.partialorder %v2713_v20, 0.0  ;;  %v3028_v6 = vmul.f32 0.2, %v2713_v20  ;;  %vm2966_vm4 = vcmp.gt.f32.partialorder %v2874_v31, 0.0  ;;  %v3030_v47 = vmul.f32 0.2, %v2874_v31  ;;  %3282 = vmatprep.mubr.f32.mxu0 %v3088_v33  ;;  %3427 = vmatprep.mubr.f32.mxu1 %v3090_v46 }
 0x873   : > { %3283 = vmatmul.mubr.f32.gmra.mrb[114].mxu0 %v3087_v24  ;;  %3428 = vmatmul.mubr.f32.gmra.mrb[130].mxu1 %v3089_v17  ;;  %v2717_v50 = vpop.f32.mrb[86].mxu0  ;;  %v2878_v51 = vpop.f32.mrb[102].mxu1  ;;  %v3091_v7 = vsel %vm2963_vm1, %v2711_v19, %v3027_v29  ;;  %v3093_v56 = vsel %vm2965_vm2, %v2872_v41, %v3029_v32 }
 0x874   : > { %v3031_v21 = vmul.f32 0.2, %v2717_v50  ;;  %v3033_v26 = vmul.f32 0.2, %v2878_v51  ;;  %vm2967_vm5 = vcmp.gt.f32.partialorder %v2717_v50, 0.0  ;;  %vm2969_vm6 = vcmp.gt.f32.partialorder %v2878_v51, 0.0 }
 0x875   : > { %v2719_v57 = vpop.f32.mrb[87].mxu0  ;;  %v2880_v28 = vpop.f32.mrb[103].mxu1  ;;  %v3092_v30 = vsel %vm2964_vm3, %v2713_v20, %v3028_v6  ;;  %v3094_v59 = vsel %vm2966_vm4, %v2874_v31, %v3030_v47 }
 0x876   : > { %vm2968_vm7 = vcmp.gt.f32.partialorder %v2719_v57, 0.0  ;;  %v3032_v39 = vmul.f32 0.2, %v2719_v57  ;;  %vm2970_vm8 = vcmp.gt.f32.partialorder %v2880_v28, 0.0  ;;  %v3034_v44 = vmul.f32 0.2, %v2880_v28  ;;  %3287 = vmatprep.mubr.f32.mxu0 %v3092_v30  ;;  %3432 = vmatprep.mubr.f32.mxu1 %v3094_v59 }
 0x877   : > { %3288 = vmatmul.mubr.f32.gmra.mrb[116].mxu0 %v3091_v7  ;;  %3433 = vmatmul.mubr.f32.gmra.mrb[132].mxu1 %v3093_v56  ;;  %v2723_v36 = vpop.f32.mrb[88].mxu0  ;;  %v2884_v60 = vpop.f32.mrb[104].mxu1  ;;  %v3095_v53 = vsel %vm2967_vm5, %v2717_v50, %v3031_v21  ;;  %v3097_v63 = vsel %vm2969_vm6, %v2878_v51, %v3033_v26 }
 0x878   : > { %v3035_v62 = vmul.f32 0.2, %v2723_v36  ;;  %v3037_v49 = vmul.f32 0.2, %v2884_v60  ;;  %vm2971_vm9 = vcmp.gt.f32.partialorder %v2723_v36, 0.0  ;;  %vm2973_vm10 = vcmp.gt.f32.partialorder %v2884_v60, 0.0 }
 0x879   : > { %v2725_v5 = vpop.f32.mrb[89].mxu0  ;;  %v2886_v58 = vpop.f32.mrb[105].mxu1  ;;  %v3096_v61 = vsel %vm2968_vm7, %v2719_v57, %v3032_v39  ;;  %v3098_v1 = vsel %vm2970_vm8, %v2880_v28, %v3034_v44 }
 0x87a   : > { %vm2972_vm11 = vcmp.gt.f32.partialorder %v2725_v5, 0.0  ;;  %v3036_v2 = vmul.f32 0.2, %v2725_v5  ;;  %vm2974_vm12 = vcmp.gt.f32.partialorder %v2886_v58, 0.0  ;;  %v3038_v0 = vmul.f32 0.2, %v2886_v58  ;;  %3292 = vmatprep.mubr.f32.mxu0 %v3096_v61  ;;  %3437 = vmatprep.mubr.f32.mxu1 %v3098_v1 }
 0x87b   : > { %3293 = vmatmul.mubr.f32.gmra.mrb[118].mxu0 %v3095_v53  ;;  %3438 = vmatmul.mubr.f32.gmra.mrb[134].mxu1 %v3097_v63  ;;  %v2729_v3 = vpop.f32.mrb[90].mxu0  ;;  %v2890_v4 = vpop.f32.mrb[106].mxu1  ;;  %v3099_v42 = vsel %vm2971_vm9, %v2723_v36, %v3035_v62  ;;  %v3101_v11 = vsel %vm2973_vm10, %v2884_v60, %v3037_v49 }
 0x87c   : > { %v3039_v22 = vmul.f32 0.2, %v2729_v3  ;;  %v3041_v37 = vmul.f32 0.2, %v2890_v4  ;;  %vm2975_vm13 = vcmp.gt.f32.partialorder %v2729_v3, 0.0  ;;  %vm2977_vm14 = vcmp.gt.f32.partialorder %v2890_v4, 0.0 }
 0x87d   : > { %v2731_v15 = vpop.f32.mrb[91].mxu0  ;;  %v2892_v40 = vpop.f32.mrb[107].mxu1  ;;  %v3100_v13 = vsel %vm2972_vm11, %v2725_v5, %v3036_v2  ;;  %v3102_v43 = vsel %vm2974_vm12, %v2886_v58, %v3038_v0 }
 0x87e   : > { %vm2976_vm15 = vcmp.gt.f32.partialorder %v2731_v15, 0.0  ;;  %v3040_v9 = vmul.f32 0.2, %v2731_v15  ;;  %vm2978_vm1 = vcmp.gt.f32.partialorder %v2892_v40, 0.0  ;;  %v3042_v35 = vmul.f32 0.2, %v2892_v40  ;;  %3297 = vmatprep.mubr.f32.mxu0 %v3100_v13  ;;  %3442 = vmatprep.mubr.f32.mxu1 %v3102_v43 }
 0x87f   : > { %3298 = vmatmul.mubr.f32.gmra.mrb[120].mxu0 %v3099_v42  ;;  %3443 = vmatmul.mubr.f32.gmra.mrb[136].mxu1 %v3101_v11  ;;  %v2735_v8 = vpop.f32.mrb[92].mxu0  ;;  %v2896_v10 = vpop.f32.mrb[108].mxu1  ;;  %v3103_v45 = vsel %vm2975_vm13, %v2729_v3, %v3039_v22  ;;  %v3105_v14 = vsel %vm2977_vm14, %v2890_v4, %v3041_v37 }
 0x880   : > { %v3043_v16 = vmul.f32 0.2, %v2735_v8  ;;  %v3045_v12 = vmul.f32 0.2, %v2896_v10  ;;  %vm2979_vm2 = vcmp.gt.f32.partialorder %v2735_v8, 0.0  ;;  %vm2981_vm3 = vcmp.gt.f32.partialorder %v2896_v10, 0.0 }
 0x881   : > { %v2737_v54 = vpop.f32.mrb[93].mxu0  ;;  %v2898_v18 = vpop.f32.mrb[109].mxu1  ;;  %v3104_v34 = vsel %vm2976_vm15, %v2731_v15, %v3040_v9  ;;  %v3106_v52 = vsel %vm2978_vm1, %v2892_v40, %v3042_v35 }
 0x882   : > { %vm2980_vm4 = vcmp.gt.f32.partialorder %v2737_v54, 0.0  ;;  %v3044_v55 = vmul.f32 0.2, %v2737_v54  ;;  %vm2982_vm5 = vcmp.gt.f32.partialorder %v2898_v18, 0.0  ;;  %v3046_v48 = vmul.f32 0.2, %v2898_v18  ;;  %3302 = vmatprep.mubr.f32.mxu0 %v3104_v34  ;;  %3447 = vmatprep.mubr.f32.mxu1 %v3106_v52 }
 0x883   : > { %3303 = vmatmul.mubr.f32.gmra.mrb[122].mxu0 %v3103_v45  ;;  %3448 = vmatmul.mubr.f32.gmra.mrb[138].mxu1 %v3105_v14  ;;  %v2741_v23 = vpop.f32.mrb[94].mxu0  ;;  %v2902_v38 = vpop.f32.mrb[110].mxu1  ;;  %v3107_v19 = vsel %vm2979_vm2, %v2735_v8, %v3043_v16  ;;  %v3109_v41 = vsel %vm2981_vm3, %v2896_v10, %v3045_v12 }
 0x884   : > { %v3047_v25 = vmul.f32 0.2, %v2741_v23  ;;  %v3049_v27 = vmul.f32 0.2, %v2902_v38  ;;  %vm2983_vm6 = vcmp.gt.f32.partialorder %v2741_v23, 0.0  ;;  %vm2985_vm7 = vcmp.gt.f32.partialorder %v2902_v38, 0.0 }
 0x885   : > { %v2743_v29 = vpop.f32.mrb[95].mxu0  ;;  %v2904_v32 = vpop.f32.mrb[111].mxu1  ;;  %v3108_v24 = vsel %vm2980_vm4, %v2737_v54, %v3044_v55  ;;  %v3110_v17 = vsel %vm2982_vm5, %v2898_v18, %v3046_v48 }
 0x886   : > { %vm2984_vm8 = vcmp.gt.f32.partialorder %v2743_v29, 0.0  ;;  %v3048_v20 = vmul.f32 0.2, %v2743_v29  ;;  %vm2986_vm9 = vcmp.gt.f32.partialorder %v2904_v32, 0.0  ;;  %v3050_v31 = vmul.f32 0.2, %v2904_v32  ;;  %3307 = vmatprep.mubr.f32.mxu0 %v3108_v24  ;;  %3452 = vmatprep.mubr.f32.mxu1 %v3110_v17 }
 0x887   : > { %3308 = vmatmul.mubr.f32.gmra.mrb[124].mxu0 %v3107_v19  ;;  %3453 = vmatmul.mubr.f32.gmra.mrb[140].mxu1 %v3109_v41  ;;  %v2747_v33 = vpop.f32.mrb[96].mxu0  ;;  %v2908_v46 = vpop.f32.mrb[112].mxu1  ;;  %v3111_v50 = vsel %vm2983_vm6, %v2741_v23, %v3047_v25  ;;  %v3113_v51 = vsel %vm2985_vm7, %v2902_v38, %v3049_v27 }
 0x888   : > { %v3051_v6 = vmul.f32 0.2, %v2747_v33  ;;  %v3053_v47 = vmul.f32 0.2, %v2908_v46  ;;  %vm2987_vm10 = vcmp.gt.f32.partialorder %v2747_v33, 0.0  ;;  %vm2989_vm11 = vcmp.gt.f32.partialorder %v2908_v46, 0.0 }
 0x889   : > { %v2749_v21 = vpop.f32.mrb[97].mxu0  ;;  %v2910_v26 = vpop.f32.mrb[113].mxu1  ;;  %v3112_v7 = vsel %vm2984_vm8, %v2743_v29, %v3048_v20  ;;  %v3114_v56 = vsel %vm2986_vm9, %v2904_v32, %v3050_v31 }
 0x88a   : > { %vm2988_vm12 = vcmp.gt.f32.partialorder %v2749_v21, 0.0  ;;  %v3052_v57 = vmul.f32 0.2, %v2749_v21  ;;  %vm2990_vm13 = vcmp.gt.f32.partialorder %v2910_v26, 0.0  ;;  %v3054_v28 = vmul.f32 0.2, %v2910_v26  ;;  %3312 = vmatprep.mubr.f32.mxu0 %v3112_v7  ;;  %3457 = vmatprep.mubr.f32.mxu1 %v3114_v56 }
 0x88b   : > { %3313 = vmatmul.mubr.f32.gmra.mrb[126].mxu0 %v3111_v50  ;;  %3458 = vmatmul.mubr.f32.gmra.mrb[142].mxu1 %v3113_v51  ;;  %v2753_v30 = vpop.f32.mrb[98].mxu0  ;;  %v2914_v59 = vpop.f32.mrb[114].mxu1  ;;  %v3115_v36 = vsel %vm2987_vm10, %v2747_v33, %v3051_v6  ;;  %v3117_v60 = vsel %vm2989_vm11, %v2908_v46, %v3053_v47 }
 0x88c   : > { %v3055_v39 = vmul.f32 0.2, %v2753_v30  ;;  %v3057_v44 = vmul.f32 0.2, %v2914_v59  ;;  %vm2991_vm14 = vcmp.gt.f32.partialorder %v2753_v30, 0.0  ;;  %vm2993_vm15 = vcmp.gt.f32.partialorder %v2914_v59, 0.0 }
 0x88d   : > { %v2755_v62 = vpop.f32.mrb[99].mxu0  ;;  %v2916_v49 = vpop.f32.mrb[115].mxu1  ;;  %v3116_v53 = vsel %vm2988_vm12, %v2749_v21, %v3052_v57  ;;  %v3118_v63 = vsel %vm2990_vm13, %v2910_v26, %v3054_v28 }
 0x88e   : > { %vm2992_vm1 = vcmp.gt.f32.partialorder %v2755_v62, 0.0  ;;  %v3056_v5 = vmul.f32 0.2, %v2755_v62  ;;  %vm2994_vm2 = vcmp.gt.f32.partialorder %v2916_v49, 0.0  ;;  %v3058_v58 = vmul.f32 0.2, %v2916_v49  ;;  %3317 = vmatprep.mubr.f32.mxu0 %v3116_v53  ;;  %3462 = vmatprep.mubr.f32.mxu1 %v3118_v63 }
 0x88f   : > { %3318 = vmatmul.mubr.f32.gmra.mrb[128].mxu0 %v3115_v36  ;;  %3463 = vmatmul.mubr.f32.gmra.mrb[144].mxu1 %v3117_v60  ;;  %v2759_v61 = vpop.f32.mrb[100].mxu0  ;;  %v2920_v1 = vpop.f32.mrb[116].mxu1  ;;  %v3119_v3 = vsel %vm2991_vm14, %v2753_v30, %v3055_v39  ;;  %v3121_v4 = vsel %vm2993_vm15, %v2914_v59, %v3057_v44 }
 0x890   : > { %v3059_v2 = vmul.f32 0.2, %v2759_v61  ;;  %v3061_v0 = vmul.f32 0.2, %v2920_v1  ;;  %vm2995_vm3 = vcmp.gt.f32.partialorder %v2759_v61, 0.0  ;;  %vm2997_vm4 = vcmp.gt.f32.partialorder %v2920_v1, 0.0 }
 0x891   : > { %v2761_v22 = vpop.f32.mrb[101].mxu0  ;;  %v2922_v37 = vpop.f32.mrb[117].mxu1  ;;  %v3120_v42 = vsel %vm2992_vm1, %v2755_v62, %v3056_v5  ;;  %v3122_v11 = vsel %vm2994_vm2, %v2916_v49, %v3058_v58 }
 0x892   : > { %vm2996_vm5 = vcmp.gt.f32.partialorder %v2761_v22, 0.0  ;;  %v3060_v15 = vmul.f32 0.2, %v2761_v22  ;;  %vm2998_vm6 = vcmp.gt.f32.partialorder %v2922_v37, 0.0  ;;  %v3062_v40 = vmul.f32 0.2, %v2922_v37  ;;  %3322 = vmatprep.mubr.f32.mxu0 %v3120_v42  ;;  %3467 = vmatprep.mubr.f32.mxu1 %v3122_v11 }
 0x893   : > { %3323 = vmatmul.mubr.f32.gmra.mrb[130].mxu0 %v3119_v3  ;;  %3468 = vmatmul.mubr.f32.gmra.mrb[146].mxu1 %v3121_v4  ;;  %v2765_v13 = vpop.f32.mrb[102].mxu0  ;;  %v2926_v43 = vpop.f32.mrb[118].mxu1  ;;  %v3123_v8 = vsel %vm2995_vm3, %v2759_v61, %v3059_v2  ;;  %v3125_v10 = vsel %vm2997_vm4, %v2920_v1, %v3061_v0 }
 0x894   : > { %v3063_v9 = vmul.f32 0.2, %v2765_v13  ;;  %v3065_v35 = vmul.f32 0.2, %v2926_v43  ;;  %vm2999_vm7 = vcmp.gt.f32.partialorder %v2765_v13, 0.0  ;;  %vm3001_vm8 = vcmp.gt.f32.partialorder %v2926_v43, 0.0 }
 0x895   : > { %v2767_v16 = vpop.f32.mrb[103].mxu0  ;;  %v2928_v12 = vpop.f32.mrb[119].mxu1  ;;  %v3124_v45 = vsel %vm2996_vm5, %v2761_v22, %v3060_v15  ;;  %v3126_v14 = vsel %vm2998_vm6, %v2922_v37, %v3062_v40 }
 0x896   : > { %vm3000_vm9 = vcmp.gt.f32.partialorder %v2767_v16, 0.0  ;;  %v3064_v54 = vmul.f32 0.2, %v2767_v16  ;;  %vm3002_vm10 = vcmp.gt.f32.partialorder %v2928_v12, 0.0  ;;  %v3066_v18 = vmul.f32 0.2, %v2928_v12  ;;  %3327 = vmatprep.mubr.f32.mxu0 %v3124_v45  ;;  %3472 = vmatprep.mubr.f32.mxu1 %v3126_v14 }
 0x897   : > { %3328 = vmatmul.mubr.f32.gmra.mrb[132].mxu0 %v3123_v8  ;;  %3473 = vmatmul.mubr.f32.gmra.mrb[148].mxu1 %v3125_v10  ;;  %v2771_v34 = vpop.f32.mrb[104].mxu0  ;;  %v2932_v52 = vpop.f32.mrb[120].mxu1  ;;  %v3127_v23 = vsel %vm2999_vm7, %v2765_v13, %v3063_v9  ;;  %v3129_v38 = vsel %vm3001_vm8, %v2926_v43, %v3065_v35  ;;  %v6382_v9 = vstv %s3211_s29 }
 0x898   : > { %v3067_v55 = vmul.f32 0.2, %v2771_v34  ;;  %v3069_v48 = vmul.f32 0.2, %v2932_v52  ;;  %vm3003_vm11 = vcmp.gt.f32.partialorder %v2771_v34, 0.0  ;;  %vm3005_vm12 = vcmp.gt.f32.partialorder %v2932_v52, 0.0 }
 0x899   : > { %v2773_v25 = vpop.f32.mrb[105].mxu0  ;;  %v2934_v27 = vpop.f32.mrb[121].mxu1  ;;  %v3128_v19 = vsel %vm3000_vm9, %v2767_v16, %v3064_v54  ;;  %v3130_v41 = vsel %vm3002_vm10, %v2928_v12, %v3066_v18 }
 0x89a   : > { %vm3004_vm13 = vcmp.gt.f32.partialorder %v2773_v25, 0.0  ;;  %v3068_v29 = vmul.f32 0.2, %v2773_v25  ;;  %vm3006_vm14 = vcmp.gt.f32.partialorder %v2934_v27, 0.0  ;;  %v3070_v32 = vmul.f32 0.2, %v2934_v27  ;;  %3332 = vmatprep.mubr.f32.mxu0 %v3128_v19  ;;  %3477 = vmatprep.mubr.f32.mxu1 %v3130_v41 }
 0x89b   : > { %3333 = vmatmul.mubr.f32.gmra.mrb[134].mxu0 %v3127_v23  ;;  %3478 = vmatmul.mubr.f32.gmra.mrb[150].mxu1 %v3129_v38  ;;  %v2777_v24 = vpop.f32.mrb[106].mxu0  ;;  %v2938_v17 = vpop.f32.mrb[122].mxu1  ;;  %v3131_v33 = vsel %vm3003_vm11, %v2771_v34, %v3067_v55  ;;  %v3133_v46 = vsel %vm3005_vm12, %v2932_v52, %v3069_v48 }
 0x89c   : > { %v3071_v20 = vmul.f32 0.2, %v2777_v24  ;;  %v3073_v31 = vmul.f32 0.2, %v2938_v17  ;;  %vm3007_vm15 = vcmp.gt.f32.partialorder %v2777_v24, 0.0  ;;  %vm3009_vm1 = vcmp.gt.f32.partialorder %v2938_v17, 0.0 }
 0x89d   : > { %v2779_v6 = vpop.f32.mrb[107].mxu0  ;;  %v2940_v47 = vpop.f32.mrb[123].mxu1  ;;  %v3132_v50 = vsel %vm3004_vm13, %v2773_v25, %v3068_v29  ;;  %v3134_v51 = vsel %vm3006_vm14, %v2934_v27, %v3070_v32 }
 0x89e   : > { %vm3008_vm2 = vcmp.gt.f32.partialorder %v2779_v6, 0.0  ;;  %v3072_v21 = vmul.f32 0.2, %v2779_v6  ;;  %vm3010_vm3 = vcmp.gt.f32.partialorder %v2940_v47, 0.0  ;;  %v3074_v26 = vmul.f32 0.2, %v2940_v47  ;;  %3337 = vmatprep.mubr.f32.mxu0 %v3132_v50  ;;  %3482 = vmatprep.mubr.f32.mxu1 %v3134_v51 }
 0x89f   : > { %3338 = vmatmul.mubr.f32.gmra.mrb[136].mxu0 %v3131_v33  ;;  %3483 = vmatmul.mubr.f32.gmra.mrb[152].mxu1 %v3133_v46  ;;  %v2783_v7 = vpop.f32.mrb[108].mxu0  ;;  %v2944_v56 = vpop.f32.mrb[124].mxu1  ;;  %v3135_v30 = vsel %vm3007_vm15, %v2777_v24, %v3071_v20  ;;  %v3137_v59 = vsel %vm3009_vm1, %v2938_v17, %v3073_v31 }
 0x8a0   : > { %v3075_v57 = vmul.f32 0.2, %v2783_v7  ;;  %v3077_v28 = vmul.f32 0.2, %v2944_v56  ;;  %vm3011_vm4 = vcmp.gt.f32.partialorder %v2783_v7, 0.0  ;;  %vm3013_vm5 = vcmp.gt.f32.partialorder %v2944_v56, 0.0 }
 0x8a1   : > { %v2785_v39 = vpop.f32.mrb[109].mxu0  ;;  %v2946_v44 = vpop.f32.mrb[125].mxu1  ;;  %v3136_v36 = vsel %vm3008_vm2, %v2779_v6, %v3072_v21  ;;  %v3138_v60 = vsel %vm3010_vm3, %v2940_v47, %v3074_v26 }
 0x8a2   : > { %vm3012_vm6 = vcmp.gt.f32.partialorder %v2785_v39, 0.0  ;;  %v3076_v62 = vmul.f32 0.2, %v2785_v39  ;;  %vm3014_vm7 = vcmp.gt.f32.partialorder %v2946_v44, 0.0  ;;  %v3078_v49 = vmul.f32 0.2, %v2946_v44  ;;  %3342 = vmatprep.mubr.f32.mxu0 %v3136_v36  ;;  %3487 = vmatprep.mubr.f32.mxu1 %v3138_v60 }
 0x8a3   : > { %3343 = vmatmul.mubr.f32.gmra.mrb[138].mxu0 %v3135_v30  ;;  %3488 = vmatmul.mubr.f32.gmra.mrb[154].mxu1 %v3137_v59  ;;  %v2789_v53 = vpop.f32.mrb[110].mxu0  ;;  %v2950_v63 = vpop.f32.mrb[126].mxu1  ;;  %v3139_v5 = vsel %vm3011_vm4, %v2783_v7, %v3075_v57  ;;  %v3141_v58 = vsel %vm3013_vm5, %v2944_v56, %v3077_v28 }
 0x8a4   : > { %v3079_v61 = vmul.f32 0.2, %v2789_v53  ;;  %v3081_v1 = vmul.f32 0.2, %v2950_v63  ;;  %v2791_v2 = vpop.f32.mrb[111].mxu0  ;;  %v2952_v0 = vpop.f32.mrb[127].mxu1  ;;  %v3140_v3 = vsel %vm3012_vm6, %v2785_v39, %v3076_v62  ;;  %v3142_v4 = vsel %vm3014_vm7, %v2946_v44, %v3078_v49 }
 0x8a5   : > { %vm3016_vm8 = vcmp.gt.f32.partialorder %v2791_v2, 0.0  ;;  %v3080_v22 = vmul.f32 0.2, %v2791_v2  ;;  %vm3018_vm9 = vcmp.gt.f32.partialorder %v2952_v0, 0.0  ;;  %v3082_v37 = vmul.f32 0.2, %v2952_v0  ;;  %3347 = vmatprep.mubr.f32.mxu0 %v3140_v3  ;;  %3492 = vmatprep.mubr.f32.mxu1 %v3142_v4 }
 0x8a6   : > { %vm3015_vm10 = vcmp.gt.f32.partialorder %v2789_v53, 0.0  ;;  %vm3017_vm11 = vcmp.gt.f32.partialorder %v2950_v63, 0.0 }
 0x8a7   : > { %3348 = vmatmul.mubr.f32.gmra.mrb[140].mxu0 %v3139_v5  ;;  %3493 = vmatmul.mubr.f32.gmra.mrb[156].mxu1 %v3141_v58  ;;  %v3144_v42 = vsel %vm3016_vm8, %v2791_v2, %v3080_v22  ;;  %v3146_v11 = vsel %vm3018_vm9, %v2952_v0, %v3082_v37  ;;  %v3143_v15 = vsel %vm3015_vm10, %v2789_v53, %v3079_v61 }
 0x8a8   : > { %3352 = vmatprep.mubr.f32.mxu0 %v3144_v42  ;;  %3497 = vmatprep.mubr.f32.mxu1 %v3146_v11  ;;  %v3145_v40 = vsel %vm3017_vm11, %v2950_v63, %v3081_v1 }
 0x8ab   : > { %3353 = vmatmul.mubr.f32.gmra.mrb[142].mxu0 %v3143_v15  ;;  %3498 = vmatmul.mubr.f32.gmra.mrb[158].mxu1 %v3145_v40 }
 0x942   : > { %v3901_v13 = vpop.f32.mrb[112].mxu0  ;;  %v3981_v43 = vpop.f32.mrb[128].mxu1 }
 0x943   : > { %v3902_v35 = vpop.f32.mrb[113].mxu0  ;;  %v3982_v8 = vpop.f32.mrb[129].mxu1 }
 0x944   : > { %v3903_v10 = vadd.f32 %v3902_v35, %v3901_v13  ;;  %v3983_v16 = vadd.f32 %v3982_v8, %v3981_v43 }
 0x946   : > { %v3280_v12 = vadd.f32 %v3903_v10, %v6382_v9  ;;  %v3904_v45 = vpop.f32.mrb[114].mxu0  ;;  %v3984_v14 = vpop.f32.mrb[130].mxu1 }
 0x947   : > { %v3905_v54 = vpop.f32.mrb[115].mxu0  ;;  %v3985_v18 = vpop.f32.mrb[131].mxu1 }
 0x948   : > { %v3425_v34 = vadd.f32 %v3983_v16, %v3280_v12  ;;  %v3906_v52 = vadd.f32 %v3905_v54, %v3904_v45  ;;  %v3986_v55 = vadd.f32 %v3985_v18, %v3984_v14 }
 0x94a   : > { %4809 = vtanh.f32 %v3425_v34  ;;  %v3285_v48 = vadd.f32 %v3906_v52, %v6382_v9  ;;  %v3907_v23 = vpop.f32.mrb[116].mxu0  ;;  %v3987_v38 = vpop.f32.mrb[132].mxu1 }
 0x94b   : > { %v3908_v25 = vpop.f32.mrb[117].mxu0  ;;  %v3988_v27 = vpop.f32.mrb[133].mxu1 }
 0x94c   : > { %v3430_v19 = vadd.f32 %v3986_v55, %v3285_v48  ;;  %v3909_v41 = vadd.f32 %v3908_v25, %v3907_v23  ;;  %v3989_v29 = vadd.f32 %v3988_v27, %v3987_v38 }
 0x94e   : > { %4811 = vtanh.f32 %v3430_v19  ;;  %v3290_v32 = vadd.f32 %v3909_v41, %v6382_v9  ;;  %v3910_v24 = vpop.f32.mrb[118].mxu0  ;;  %v3990_v17 = vpop.f32.mrb[134].mxu1 }
 0x94f   : > { %v3911_v20 = vpop.f32.mrb[119].mxu0  ;;  %v3991_v31 = vpop.f32.mrb[135].mxu1 }
 0x950   : > { %v3435_v33 = vadd.f32 %v3989_v29, %v3290_v32  ;;  %v3912_v46 = vadd.f32 %v3911_v20, %v3910_v24  ;;  %v3992_v6 = vadd.f32 %v3991_v31, %v3990_v17 }
 0x952   : > { %4813 = vtanh.f32 %v3435_v33  ;;  %v3295_v47 = vadd.f32 %v3912_v46, %v6382_v9  ;;  %v3913_v50 = vpop.f32.mrb[120].mxu0  ;;  %v3993_v51 = vpop.f32.mrb[136].mxu1 }
 0x953   : > { %v3914_v21 = vpop.f32.mrb[121].mxu0  ;;  %v3994_v26 = vpop.f32.mrb[137].mxu1 }
 0x954   : > { %v4810_v7 = vpop.eup %4809  ;;  %v3440_v56 = vadd.f32 %v3992_v6, %v3295_v47  ;;  %v3915_v57 = vadd.f32 %v3914_v21, %v3913_v50  ;;  %v3995_v28 = vadd.f32 %v3994_v26, %v3993_v51 }
 0x955   : > { %3519 = vst.msk [vmem:[%s6392_s14] sm:$0xff] %vm544_vm0, %v4810_v7 }
 0x956   : > { %4815 = vtanh.f32 %v3440_v56  ;;  %v3300_v30 = vadd.f32 %v3915_v57, %v6382_v9  ;;  %v3916_v59 = vpop.f32.mrb[122].mxu0  ;;  %v3996_v39 = vpop.f32.mrb[138].mxu1 }
 0x957   : > { %v3917_v44 = vpop.f32.mrb[123].mxu0  ;;  %v3997_v36 = vpop.f32.mrb[139].mxu1 }
 0x958   : > { %v4812_v60 = vpop.eup %4811  ;;  %v3445_v62 = vadd.f32 %v3995_v28, %v3300_v30  ;;  %v3918_v49 = vadd.f32 %v3917_v44, %v3916_v59  ;;  %v3998_v53 = vadd.f32 %v3997_v36, %v3996_v39 }
 0x959   : > { %3520 = vst.msk [vmem:[%s6392_s14 + $0x8] sm:$0xff] %vm544_vm0, %v4812_v60 }
 0x95a   : > { %4817 = vtanh.f32 %v3445_v62  ;;  %v3305_v63 = vadd.f32 %v3918_v49, %v6382_v9  ;;  %v3919_v5 = vpop.f32.mrb[124].mxu0  ;;  %v3999_v58 = vpop.f32.mrb[140].mxu1 }
 0x95b   : > { %v3920_v61 = vpop.f32.mrb[125].mxu0  ;;  %v4000_v1 = vpop.f32.mrb[141].mxu1 }
 0x95c   : > { %v4814_v2 = vpop.eup %4813  ;;  %v3450_v0 = vadd.f32 %v3998_v53, %v3305_v63  ;;  %v3921_v3 = vadd.f32 %v3920_v61, %v3919_v5  ;;  %v4001_v4 = vadd.f32 %v4000_v1, %v3999_v58 }
 0x95d   : > { %3521 = vst.msk [vmem:[%s6392_s14 + $0x10] sm:$0xff] %vm544_vm0, %v4814_v2 }
 0x95e   : > { %4819 = vtanh.f32 %v3450_v0  ;;  %v3310_v22 = vadd.f32 %v3921_v3, %v6382_v9  ;;  %v3922_v37 = vpop.f32.mrb[126].mxu0  ;;  %v4002_v42 = vpop.f32.mrb[142].mxu1 }
 0x95f   : > { %v3923_v11 = vpop.f32.mrb[127].mxu0  ;;  %v4003_v15 = vpop.f32.mrb[143].mxu1 }
 0x960   : > { %v4816_v40 = vpop.eup %4815  ;;  %v3455_v13 = vadd.f32 %v4001_v4, %v3310_v22  ;;  %v3924_v43 = vadd.f32 %v3923_v11, %v3922_v37  ;;  %v4004_v35 = vadd.f32 %v4003_v15, %v4002_v42 }
 0x961   : > { %3522 = vst.msk [vmem:[%s6392_s14 + $0x18] sm:$0xff] %vm544_vm0, %v4816_v40 }
 0x962   : > { %4821 = vtanh.f32 %v3455_v13  ;;  %v3315_v8 = vadd.f32 %v3924_v43, %v6382_v9  ;;  %v3925_v10 = vpop.f32.mrb[128].mxu0  ;;  %v4005_v16 = vpop.f32.mrb[144].mxu1 }
 0x963   : > { %v3926_v12 = vpop.f32.mrb[129].mxu0  ;;  %v4006_v45 = vpop.f32.mrb[145].mxu1 }
 0x964   : > { %v4818_v14 = vpop.eup %4817  ;;  %v3460_v54 = vadd.f32 %v4004_v35, %v3315_v8  ;;  %v3927_v18 = vadd.f32 %v3926_v12, %v3925_v10  ;;  %v4007_v34 = vadd.f32 %v4006_v45, %v4005_v16 }
 0x965   : > { %3523 = vst.msk [vmem:[%s6392_s14 + $0x20] sm:$0xff] %vm544_vm0, %v4818_v14 }
 0x966   : > { %4823 = vtanh.f32 %v3460_v54  ;;  %v3320_v52 = vadd.f32 %v3927_v18, %v6382_v9  ;;  %v3928_v55 = vpop.f32.mrb[130].mxu0  ;;  %v4008_v48 = vpop.f32.mrb[146].mxu1 }
 0x967   : > { %v3929_v23 = vpop.f32.mrb[131].mxu0  ;;  %v4009_v38 = vpop.f32.mrb[147].mxu1 }
 0x968   : > { %v4820_v25 = vpop.eup %4819  ;;  %v3465_v27 = vadd.f32 %v4007_v34, %v3320_v52  ;;  %v3930_v19 = vadd.f32 %v3929_v23, %v3928_v55  ;;  %v4010_v41 = vadd.f32 %v4009_v38, %v4008_v48 }
 0x969   : > { %3524 = vst.msk [vmem:[%s6392_s14 + $0x28] sm:$0xff] %vm544_vm0, %v4820_v25 }
 0x96a   : > { %4825 = vtanh.f32 %v3465_v27  ;;  %v3325_v29 = vadd.f32 %v3930_v19, %v6382_v9  ;;  %v3931_v32 = vpop.f32.mrb[132].mxu0  ;;  %v4011_v24 = vpop.f32.mrb[148].mxu1 }
 0x96b   : > { %v3932_v17 = vpop.f32.mrb[133].mxu0  ;;  %v4012_v20 = vpop.f32.mrb[149].mxu1 }
 0x96c   : > { %v4822_v31 = vpop.eup %4821  ;;  %v3470_v33 = vadd.f32 %v4010_v41, %v3325_v29  ;;  %v3933_v46 = vadd.f32 %v3932_v17, %v3931_v32  ;;  %v4013_v6 = vadd.f32 %v4012_v20, %v4011_v24 }
 0x96d   : > { %3525 = vst.msk [vmem:[%s6392_s14 + $0x30] sm:$0xff] %vm544_vm0, %v4822_v31 }
 0x96e   : > { %4827 = vtanh.f32 %v3470_v33  ;;  %v3330_v47 = vadd.f32 %v3933_v46, %v6382_v9  ;;  %v3934_v50 = vpop.f32.mrb[134].mxu0  ;;  %v4014_v51 = vpop.f32.mrb[150].mxu1 }
 0x96f   : > { %v3935_v21 = vpop.f32.mrb[135].mxu0  ;;  %v4015_v26 = vpop.f32.mrb[151].mxu1 }
 0x970   : > { %v4824_v7 = vpop.eup %4823  ;;  %v3475_v56 = vadd.f32 %v4013_v6, %v3330_v47  ;;  %v3936_v57 = vadd.f32 %v3935_v21, %v3934_v50  ;;  %v4016_v28 = vadd.f32 %v4015_v26, %v4014_v51 }
 0x971   : > { %3526 = vst.msk [vmem:[%s6392_s14 + $0x38] sm:$0xff] %vm544_vm0, %v4824_v7 }
 0x972   : > { %4829 = vtanh.f32 %v3475_v56  ;;  %v3335_v30 = vadd.f32 %v3936_v57, %v6382_v9  ;;  %v3937_v59 = vpop.f32.mrb[136].mxu0  ;;  %v4017_v39 = vpop.f32.mrb[152].mxu1 }
 0x973   : > { %v3938_v44 = vpop.f32.mrb[137].mxu0  ;;  %v4018_v36 = vpop.f32.mrb[153].mxu1 }
 0x974   : > { %v4826_v60 = vpop.eup %4825  ;;  %v3480_v62 = vadd.f32 %v4016_v28, %v3335_v30  ;;  %v3939_v49 = vadd.f32 %v3938_v44, %v3937_v59  ;;  %v4019_v53 = vadd.f32 %v4018_v36, %v4017_v39 }
 0x975   : > { %3527 = vst.msk [vmem:[%s6392_s14 + $0x40] sm:$0xff] %vm544_vm0, %v4826_v60 }
 0x976   : > { %4831 = vtanh.f32 %v3480_v62  ;;  %v3340_v63 = vadd.f32 %v3939_v49, %v6382_v9  ;;  %v3940_v5 = vpop.f32.mrb[138].mxu0  ;;  %v4020_v58 = vpop.f32.mrb[154].mxu1 }
 0x977   : > { %v3941_v61 = vpop.f32.mrb[139].mxu0  ;;  %v4021_v1 = vpop.f32.mrb[155].mxu1 }
 0x978   : > { %v4828_v2 = vpop.eup %4827  ;;  %v3485_v0 = vadd.f32 %v4019_v53, %v3340_v63  ;;  %v3942_v3 = vadd.f32 %v3941_v61, %v3940_v5  ;;  %v4022_v4 = vadd.f32 %v4021_v1, %v4020_v58 }
 0x979   : > { %3528 = vst.msk [vmem:[%s6392_s14 + $0x48] sm:$0xff] %vm544_vm0, %v4828_v2 }
 0x97a   : > { %4833 = vtanh.f32 %v3485_v0  ;;  %v3345_v22 = vadd.f32 %v3942_v3, %v6382_v9  ;;  %v3943_v37 = vpop.f32.mrb[140].mxu0  ;;  %v4023_v42 = vpop.f32.mrb[156].mxu1 }
 0x97b   : > { %v3944_v11 = vpop.f32.mrb[141].mxu0  ;;  %v4024_v15 = vpop.f32.mrb[157].mxu1 }
 0x97c   : > { %v4830_v40 = vpop.eup %4829  ;;  %v3490_v13 = vadd.f32 %v4022_v4, %v3345_v22  ;;  %v3945_v43 = vadd.f32 %v3944_v11, %v3943_v37  ;;  %v4025_v35 = vadd.f32 %v4024_v15, %v4023_v42 }
 0x97d   : > { %3529 = vst.msk [vmem:[%s6392_s14 + $0x50] sm:$0xff] %vm544_vm0, %v4830_v40 }
 0x97e   : > { %4835 = vtanh.f32 %v3490_v13  ;;  %v3350_v8 = vadd.f32 %v3945_v43, %v6382_v9  ;;  %v3946_v10 = vpop.f32.mrb[142].mxu0  ;;  %v4026_v16 = vpop.f32.mrb[158].mxu1 }
 0x97f   : > { %v3947_v12 = vpop.f32.mrb[143].mxu0  ;;  %v4027_v45 = vpop.f32.mrb[159].mxu1 }
 0x980   : > { %v4832_v14 = vpop.eup %4831  ;;  %v3495_v54 = vadd.f32 %v4025_v35, %v3350_v8  ;;  %v3948_v18 = vadd.f32 %v3947_v12, %v3946_v10  ;;  %v4028_v34 = vadd.f32 %v4027_v45, %v4026_v16 }
 0x981   : > { %3530 = vst.msk [vmem:[%s6392_s14 + $0x58] sm:$0xff] %vm544_vm0, %v4832_v14 }
 0x982   : > { %4837 = vtanh.f32 %v3495_v54  ;;  %v3355_v52 = vadd.f32 %v3948_v18, %v6382_v9 }
 0x984   : > { %v4834_v55 = vpop.eup %4833  ;;  %v3500_v48 = vadd.f32 %v4028_v34, %v3355_v52 }
 0x985   : > { %3531 = vst.msk [vmem:[%s6392_s14 + $0x60] sm:$0xff] %vm544_vm0, %v4834_v55 }
 0x986   : > { %4839 = vtanh.f32 %v3500_v48 }
 0x988   : > { %v4836_v23 = vpop.eup %4835 }
 0x989   : > { %3532 = vst.msk [vmem:[%s6392_s14 + $0x68] sm:$0xff] %vm544_vm0, %v4836_v23 }
 0x98c   : > { %v4838_v38 = vpop.eup %4837 }
 0x98d   : > { %3533 = vst.msk [vmem:[%s6392_s14 + $0x70] sm:$0xff] %vm544_vm0, %v4838_v38 }
 0x990   : > { %v4840_v25 = vpop.eup %4839 }
 0x991   : > { %3534 = vst.msk [vmem:[%s6392_s14 + $0x78] sm:$0xff] %vm544_vm0, %v4840_v25 }
 0x992 PF: > { %s27_s23 = sadd.s32 1, %s5059_s23  }
 0x993   : > { %p24_p3 = scmp.ge.s32.totalorder %s27_s23, 4  }
 0x995   :  { %26 = sbr.rel (!%p24_p3) target bundleno = 7 (0x7), region = 127 }
 0x99c   :  { %3557 = vsyncpa [#allocation4], 1 }
 0x99d   :  { %3559 = vsyncpa [#allocation4 + $0x1], 1 }
 0x99e   :  { %3560 = vsyncpa [#allocation6], 1 }
 0x99f   :  { %3561 = vsyncpa [#allocation9], 1 }
 0x9a0   :  { %3562 = vsyncpa [#allocation12], 1 }

</bundles_post_ra>
